<compile_context>
chip_gen: v7x
topology: tpu7x:2x2x1
jax: 0.10.0
libtpu: 0.0.40
codegen_flags: <defaults>
</compile_context>

<pallas_src>
import functools

import numpy as np

import jax
import jax.numpy as jnp
from jax.experimental import pallas as pl
from jax.experimental.pallas import tpu as pltpu

# ---- hyper-parameters (LstmRNN.__init__ defaults) ---------------------------
INPUT_SIZE = 2
INPUT_PAD = 8          # input features zero padded to 8
HIDDEN = 32
OUTPUT_SIZE = 6
NUM_LAYERS = 3
SEQ_LEN = 8
PRED_SEQ_LEN = 6
N_TXPCNN = 5           # forward uses tpcnns[0..3]/prelus[0..3] + tpcnn_ouput
DT = 0.5
LANES = 128


# =============================================================================
# Single fused kernel: LSTM + Linear-scatter + TXP-CNN stack + GMM2D epilogue
# =============================================================================
def fused_kernel(x_ref, wih0_ref, wih12_ref, whh_ref, blstm_ref,
                 wfold_ref, mlane_ref, ssel_ref, biasfm_ref, cmask_ref,
                 wconv0_ref, wconvm_ref, wconvo_ref, bconv_ref,
                 xlast_ref, alpha_ref, out_ref, *, A):
    f32 = jnp.float32
    bf16 = jnp.bfloat16
    H = HIDDEN
    S = SEQ_LEN
    PW = A + 2                      # padded conv width (agents + 2)

    # ---------------- 3-layer LSTM, [agents, features] rows -------------------
    def lstm_layer(gx_all, whhT, bias):
        # gx_all: [S*A, 4H] hoisted input contribution; the recurrence keeps
        # only the h @ Whh bf16 matmul on the serial critical path.
        h = jnp.zeros((A, H), f32)
        c = jnp.zeros((A, H), f32)
        hs = []
        for t in range(S):                                   # static, S = 8
            g = (gx_all[t * A:(t + 1) * A, :]
                 + jnp.dot(h.astype(bf16), whhT, preferred_element_type=f32)
                 + bias)                                     # [A, 4H] i,f,g,o
            sg = jax.nn.sigmoid(g)       # one EUP push covers i, f, o gates
            tg = jnp.tanh(g)             # one EUP push covers the g gate
            c = sg[:, H:2 * H] * c + sg[:, 0:H] * tg[:, 2 * H:3 * H]
            h = sg[:, 3 * H:4 * H] * jnp.tanh(c)
            hs.append(h)                                     # stays in vregs
        return jnp.concatenate(hs, axis=0)                   # [S*A, H], r=t*A+a

    gx = jnp.dot(x_ref[...].astype(bf16), wih0_ref[...],
                 preferred_element_type=f32)                 # [S*A, 4H]
    hcat = lstm_layer(gx, whh_ref[0], blstm_ref[0])
    for l in range(1, NUM_LAYERS):
        gx = jnp.dot(hcat.astype(bf16), wih12_ref[l - 1],
                     preferred_element_type=f32)
        hcat = lstm_layer(gx, whh_ref[l], blstm_ref[l])

    # ---------------- Linear + layout shuffle as two scatter matmuls ----------
    # t1[r, p] = Linear feature h(p) of LSTM row r (r = s*A + a); wfold columns
    # at non-center lanes are zero, so padding lanes are exactly 0.
    t1 = jnp.dot(hcat.astype(bf16), wfold_ref[...],
                 preferred_element_type=f32)                 # [S*A, 128]
    # keep only rows whose agent matches lane p's agent, then collapse each
    # timestep's A-row block with the 0/1 selection matmul -> conv0 input fm.
    fm = (jnp.dot(ssel_ref[...], t1 * mlane_ref[...],
                  preferred_element_type=f32)
          + biasfm_ref[...])                                 # [8, 128]

    # ---------------- TXP-CNN stack: roll + im2col matmul ---------------------
    # lane index p = padded_row * PW + padded_col; a 3x3 conv at valid center
    # p needs inputs at p + (dy-1)*PW + (dx-1): contiguous lane rotations.
    offsets = [(dy - 1) * PW + (dx - 1) for dy in range(3) for dx in range(3)]

    def conv3x3(v_in, wmat, bias):
        shifted = [v_in if r == 0
                   else pltpu.roll(v_in, shift=(-r) % LANES, axis=1)
                   for r in offsets]
        patch = jnp.concatenate(shifted, axis=0).astype(bf16)   # [72, 128]
        return jnp.dot(wmat, patch, preferred_element_type=f32) + bias  # [8,128]

    def prelu(x, alpha):
        return jnp.where(x > 0, x, alpha * x)

    cmask = cmask_ref[...]                                   # 1 at centers else 0
    v = prelu(conv3x3(fm, wconv0_ref[...], bconv_ref[0]), alpha_ref[0, 0]) * cmask
    for k in range(N_TXPCNN - 2):                            # residual blocks
        v = (prelu(conv3x3(v, wconvm_ref[k], bconv_ref[1 + k]),
                   alpha_ref[0, 1 + k]) + v) * cmask
    vout = conv3x3(v, wconvo_ref[...], bconv_ref[N_TXPCNN - 1]) * cmask  # [8,128]

    # ---------------- GMM2D epilogue, single lane-dense store -----------------
    # conv channel 1/2 = mus, 3/4 = log_sigmas, 5 = corr; mode() == mus.
    mus_x = vout[1:2, :]
    mus_y = vout[2:3, :]
    sig = jnp.exp(vout[3:5, :])          # one EUP push for both sigmas
    sx = sig[0:1, :]
    sy = sig[1:2, :]
    rho = vout[5:6, :]                   # raw corr, as passed to GMM2D here
    xl = xlast_ref[...]
    rows = [
        DT * mus_x + xl[0:1, :],                  # cumsum(dim=1)*dt + x_last.x
        DT * (mus_x + mus_y) + xl[1:2, :],        # cumsum(dim=1)*dt + x_last.y
        mus_x, mus_y,                             # a_sample (= GMM mode)
        sx * sx, rho * sx * sy, sy * sy,          # covariance entries
        jnp.zeros((1, LANES), f32),
    ]
    out_ref[...] = jnp.concatenate(rows, axis=0)             # one (8,128) store


# =============================================================================
# Parameter init (deterministic, PyTorch-default-like uniform scales), packed
# into the layouts the kernel consumes (matmul weights stored as bf16).
# =============================================================================
def _uniform(key, shape, scale):
    return jax.random.uniform(key, shape, jnp.float32, -scale, scale)


def init_params(key):
    ks = iter(jax.random.split(key, 64))
    p = {}
    H = HIDDEN
    bound = 1.0 / float(H) ** 0.5
    wih12, whh, bs = [], [], []
    for l in range(NUM_LAYERS):
        in_l = INPUT_SIZE if l == 0 else H
        w_ih = _uniform(next(ks), (4 * H, in_l), bound)
        w_hh = _uniform(next(ks), (4 * H, H), bound)
        b_ih = _uniform(next(ks), (4 * H,), bound)
        b_hh = _uniform(next(ks), (4 * H,), bound)
        if l == 0:
            w_ih_pad = jnp.zeros((4 * H, INPUT_PAD), jnp.float32).at[:, :in_l].set(w_ih)
            p['wih0T'] = w_ih_pad.T.astype(jnp.bfloat16)     # [8, 128]
        else:
            wih12.append(w_ih.T.astype(jnp.bfloat16))        # [32, 128]
        whh.append(w_hh.T.astype(jnp.bfloat16))              # [32, 128]
        bs.append((b_ih + b_hh)[None, :])                    # [1, 128]
    p['wih12T'] = jnp.stack(wih12)                           # [2, 32, 128] bf16
    p['whhT'] = jnp.stack(whh)                               # [3, 32, 128] bf16
    p['b_lstm'] = jnp.stack(bs)                              # [3, 1, 128] f32

    p['wlin'] = _uniform(next(ks), (OUTPUT_SIZE, H), bound)  # folded in wrapper
    p['blin'] = _uniform(next(ks), (OUTPUT_SIZE,), bound)

    def to_mat(w):
        # [Co, Ci, 3, 3] -> [8, 72] im2col weight; Co/Ci zero-padded to 8 so
        # column index = (ky*3+kx)*8 + ci matches the patch row layout and the
        # conv output is always an [8, 128] value (rows 6,7 identically zero).
        co, ci = w.shape[0], w.shape[1]
        w8 = jnp.zeros((8, 8, 3, 3), jnp.float32).at[:co, :ci].set(w)
        return jnp.transpose(w8, (0, 2, 3, 1)).reshape(8, 72).astype(jnp.bfloat16)

    def pad_bias(b):                                         # [6] -> [8, 1]
        return jnp.zeros((8, 1), jnp.float32).at[:PRED_SEQ_LEN, 0].set(b)

    def conv_scale(ci):
        return 1.0 / float(ci * 9) ** 0.5

    w0 = _uniform(next(ks), (PRED_SEQ_LEN, SEQ_LEN, 3, 3), conv_scale(SEQ_LEN))
    b0 = _uniform(next(ks), (PRED_SEQ_LEN,), conv_scale(SEQ_LEN))
    wm, bm = [], []
    for _ in range(N_TXPCNN - 2):                            # tpcnns[1..3]
        wm.append(to_mat(_uniform(next(ks), (PRED_SEQ_LEN, PRED_SEQ_LEN, 3, 3),
                                  conv_scale(PRED_SEQ_LEN))))
        bm.append(pad_bias(_uniform(next(ks), (PRED_SEQ_LEN,),
                                    conv_scale(PRED_SEQ_LEN))))
    wout = _uniform(next(ks), (PRED_SEQ_LEN, PRED_SEQ_LEN, 3, 3),
                    conv_scale(PRED_SEQ_LEN))
    bout = _uniform(next(ks), (PRED_SEQ_LEN,), conv_scale(PRED_SEQ_LEN))
    p['w0mat'] = to_mat(w0)                                  # [8, 72] bf16
    p['wmidmat'] = jnp.stack(wm)                             # [3, 8, 72] bf16
    p['woutmat'] = to_mat(wout)                              # [8, 72] bf16
    p['b_conv'] = jnp.stack([pad_bias(b0)] + bm + [pad_bias(bout)])  # [5, 8, 1]
    p['alphas'] = jnp.full((1, N_TXPCNN - 1), 0.25, jnp.float32)     # PReLU
    return p


# =============================================================================
# Forward wrapper (tiny XLA glue: constant scatter matrices + output unflatten)
# =============================================================================
@jax.jit
def lstm_rnn_forward(params, v_raw, a, V_trgt):
    # v_raw: [1, SEQ_LEN, A, 2]; V_trgt: [1, PRED_SEQ_LEN, A, 2]; `a` unused
    # (as in the PyTorch forward).
    del a
    S = v_raw.shape[1]
    A = v_raw.shape[2]
    PW = A + 2
    assert (OUTPUT_SIZE + 2) * PW <= LANES, "padded conv grid must fit 128 lanes"

    def col(h, ai):
        return (h + 1) * PW + 1 + ai

    x = v_raw[0].reshape(S * A, INPUT_SIZE)                          # [S*A, 2]
    x2d = jnp.zeros((S * A, INPUT_PAD), jnp.float32).at[:, :INPUT_SIZE].set(x)

    # ---- compile-time constants for the (h,s)->lane scatter & center mask ----
    cmask_np = np.zeros((8, LANES), np.float32)
    mlane_np = np.zeros((S * A, LANES), np.float32)
    for h in range(OUTPUT_SIZE):
        for ai in range(A):
            p_ = col(h, ai)
            cmask_np[:, p_] = 1.0
            mlane_np[np.arange(S) * A + ai, p_] = 1.0
    ssel_np = np.zeros((S, S * A), np.float32)
    for s in range(S):
        ssel_np[s, s * A:(s + 1) * A] = 1.0
    cmask = jnp.asarray(cmask_np)
    mlane = jnp.asarray(mlane_np)
    ssel = jnp.asarray(ssel_np)

    # ---- fold the Linear weight/bias into the grid-lane layout --------------
    wfold = jnp.zeros((HIDDEN, LANES), jnp.float32)
    bias_fm = jnp.zeros((8, LANES), jnp.float32)
    for h in range(OUTPUT_SIZE):
        lo = col(h, 0)
        wfold = wfold.at[:, lo:lo + A].set(jnp.tile(params['wlin'][h][:, None], (1, A)))
        bias_fm = bias_fm.at[:, lo:lo + A].set(params['blin'][h])
    wfold = wfold.astype(jnp.bfloat16)

    # ---- last observed position per agent, replicated per prediction row ----
    xlT = jnp.transpose(v_raw[0, S - 1], (1, 0))                     # [2, A]
    xlast = jnp.zeros((2, LANES), jnp.float32)
    for h in range(OUTPUT_SIZE):
        lo = col(h, 0)
        xlast = xlast.at[:, lo:lo + A].set(xlT)

    vmem = pl.BlockSpec(memory_space=pltpu.MemorySpace.VMEM)
    smem = pl.BlockSpec(memory_space=pltpu.MemorySpace.SMEM)
    out = pl.pallas_call(
        functools.partial(fused_kernel, A=A),
        out_shape=jax.ShapeDtypeStruct((8, LANES), jnp.float32),
        in_specs=[vmem] * 15 + [smem],
        out_specs=vmem,
    )(x2d, params['wih0T'], params['wih12T'], params['whhT'], params['b_lstm'],
      wfold, mlane, ssel, bias_fm, cmask,
      params['w0mat'], params['wmidmat'], params['woutmat'], params['b_conv'],
      xlast, params['alphas'])

    # un-flatten lanes: p = padded_row*PW + padded_col -> [row, pred_step, agent]
    out_grid = (out[:, :(OUTPUT_SIZE + 2) * PW]
                .reshape(8, OUTPUT_SIZE + 2, PW)[:, 1:1 + OUTPUT_SIZE, 1:1 + A])

    # Tra_pred = V_trgt.clone(); every [:, :, i, :] slice is overwritten, so it
    # equals the computed trajectory (V_trgt kept only for dtype parity).
    Tra_pred = jnp.transpose(out_grid[0:2], (1, 2, 0))[None].astype(V_trgt.dtype)
    # a_sample / a_cov of the last loop iteration == last agent (reference semantics)
    a_sample = jnp.transpose(out_grid[2:4, :, A - 1], (1, 0))        # [6, 2]
    cxx, cxy, cyy = out_grid[4, :, A - 1], out_grid[5, :, A - 1], out_grid[6, :, A - 1]
    a_cov = jnp.stack([jnp.stack([cxx, cxy], axis=-1),
                       jnp.stack([cxy, cyy], axis=-1)], axis=-2)[:, None]  # [6,1,2,2]
    return Tra_pred, a_sample, a_cov


if __name__ == "__main__":
    A = 8  # number of agents (LSTM "batch" / conv width)
    key = jax.random.PRNGKey(0)
    k_v, k_a, k_t = jax.random.split(key, 3)
    v_raw = jax.random.normal(k_v, (1, SEQ_LEN, A, INPUT_SIZE), jnp.float32)
    a_in = jax.random.normal(k_a, (1, SEQ_LEN, A, INPUT_SIZE), jnp.float32)
    V_trgt = jax.random.normal(k_t, (1, PRED_SEQ_LEN, A, INPUT_SIZE), jnp.float32)

    params = init_params(jax.random.PRNGKey(1))
    Tra_pred, a_sample, a_cov = lstm_rnn_forward(params, v_raw, a_in, V_trgt)
    jax.block_until_ready((Tra_pred, a_sample, a_cov))
    assert Tra_pred.shape == (1, PRED_SEQ_LEN, A, 2)
    assert a_sample.shape == (PRED_SEQ_LEN, 2)
    assert a_cov.shape == (PRED_SEQ_LEN, 1, 2, 2)
    assert bool(jnp.all(jnp.isfinite(Tra_pred)))
    assert bool(jnp.all(jnp.isfinite(a_cov)))
    print("KERNEL_OK")
</pallas_src>

<mosaic_0001>
module attributes {stable_mosaic.version = 11 : i64} {
  func.func @fused_kernel(%arg0: memref<64x8xf32, #tpu.memory_space<vmem>>, %arg1: memref<8x128xbf16, #tpu.memory_space<vmem>>, %arg2: memref<2x32x128xbf16, #tpu.memory_space<vmem>>, %arg3: memref<3x32x128xbf16, #tpu.memory_space<vmem>>, %arg4: memref<3x1x128xf32, #tpu.memory_space<vmem>>, %arg5: memref<32x128xbf16, #tpu.memory_space<vmem>>, %arg6: memref<64x128xf32, #tpu.memory_space<vmem>>, %arg7: memref<8x64xf32, #tpu.memory_space<vmem>>, %arg8: memref<8x128xf32, #tpu.memory_space<vmem>>, %arg9: memref<8x128xf32, #tpu.memory_space<vmem>>, %arg10: memref<8x72xbf16, #tpu.memory_space<vmem>>, %arg11: memref<3x8x72xbf16, #tpu.memory_space<vmem>>, %arg12: memref<8x72xbf16, #tpu.memory_space<vmem>>, %arg13: memref<5x8x1xf32, #tpu.memory_space<vmem>>, %arg14: memref<2x128xf32, #tpu.memory_space<vmem>>, %arg15: memref<1x4xf32, #tpu.memory_space<smem>>, %arg16: memref<8x128xf32, #tpu.memory_space<vmem>>) attributes {dimension_semantics = [], scalar_prefetch = 0 : i64, scratch_operands = 0 : i64, tpu.core_type = #tpu.core_type<tc>} {
    %c0 = arith.constant 0 : index
    %c0_0 = arith.constant 0 : index
    %0 = vector.load %arg0[%c0, %c0_0] : memref<64x8xf32, #tpu.memory_space<vmem>>, vector<64x8xf32>
    %1 = arith.truncf %0 : vector<64x8xf32> to vector<64x8xbf16>
    %c0_1 = arith.constant 0 : index
    %c0_2 = arith.constant 0 : index
    %2 = vector.load %arg1[%c0_1, %c0_2] : memref<8x128xbf16, #tpu.memory_space<vmem>>, vector<8x128xbf16>
    %cst = arith.constant dense<0.000000e+00> : vector<64x128xf32>
    %3 = tpu.matmul %1, %2, %cst {dimension_numbers = #tpu.dot_dimension_numbers<[1], [0], [0], [1], [0, 0, 1, 1], [], []>} : vector<64x8xbf16>, vector<8x128xbf16>, vector<64x128xf32> -> vector<64x128xf32>
    %c0_3 = arith.constant 0 : index
    %c0_4 = arith.constant 0 : index
    %c0_5 = arith.constant 0 : index
    %4 = vector.load %arg3[%c0_3, %c0_4, %c0_5] : memref<3x32x128xbf16, #tpu.memory_space<vmem>>, vector<1x32x128xbf16>
    %5 = vector.shape_cast %4 : vector<1x32x128xbf16> to vector<32x128xbf16>
    %c0_6 = arith.constant 0 : index
    %c0_7 = arith.constant 0 : index
    %c0_8 = arith.constant 0 : index
    %6 = vector.load %arg4[%c0_6, %c0_7, %c0_8] : memref<3x1x128xf32, #tpu.memory_space<vmem>>, vector<1x1x128xf32>
    %7 = vector.shape_cast %6 : vector<1x1x128xf32> to vector<1x128xf32>
    %cst_9 = arith.constant 0.000000e+00 : f32
    %8 = vector.broadcast %cst_9 : f32 to vector<8x32xf32>
    %cst_10 = arith.constant 0.000000e+00 : f32
    %9 = vector.broadcast %cst_10 : f32 to vector<8x32xf32>
    %10 = vector.extract_strided_slice %3 {offsets = [0, 0], sizes = [8, 128], strides = [1, 1]} : vector<64x128xf32> to vector<8x128xf32>
    %11 = arith.truncf %8 : vector<8x32xf32> to vector<8x32xbf16>
    %cst_11 = arith.constant dense<0.000000e+00> : vector<8x128xf32>
    %12 = tpu.matmul %11, %5, %cst_11 {dimension_numbers = #tpu.dot_dimension_numbers<[1], [0], [0], [1], [0, 0, 1, 1], [], []>} : vector<8x32xbf16>, vector<32x128xbf16>, vector<8x128xf32> -> vector<8x128xf32>
    %13 = arith.addf %10, %12 : vector<8x128xf32>
    %14 = vector.broadcast %7 : vector<1x128xf32> to vector<8x128xf32>
    %15 = arith.addf %13, %14 : vector<8x128xf32>
    %16 = arith.negf %15 : vector<8x128xf32>
    %17 = math.exp %16 : vector<8x128xf32>
    %cst_12 = arith.constant 1.000000e+00 : f32
    %18 = vector.broadcast %cst_12 : f32 to vector<8x128xf32>
    %19 = arith.addf %18, %17 : vector<8x128xf32>
    %20 = arith.divf %18, %19 : vector<8x128xf32>
    %21 = math.tanh %15 : vector<8x128xf32>
    %22 = vector.extract_strided_slice %20 {offsets = [0, 32], sizes = [8, 32], strides = [1, 1]} : vector<8x128xf32> to vector<8x32xf32>
    %23 = arith.mulf %22, %9 : vector<8x32xf32>
    %24 = vector.extract_strided_slice %20 {offsets = [0, 0], sizes = [8, 32], strides = [1, 1]} : vector<8x128xf32> to vector<8x32xf32>
    %25 = vector.extract_strided_slice %21 {offsets = [0, 64], sizes = [8, 32], strides = [1, 1]} : vector<8x128xf32> to vector<8x32xf32>
    %26 = arith.mulf %24, %25 : vector<8x32xf32>
    %27 = arith.addf %23, %26 : vector<8x32xf32>
    %28 = vector.extract_strided_slice %20 {offsets = [0, 96], sizes = [8, 32], strides = [1, 1]} : vector<8x128xf32> to vector<8x32xf32>
    %29 = math.tanh %27 : vector<8x32xf32>
    %30 = arith.mulf %28, %29 : vector<8x32xf32>
    %31 = vector.extract_strided_slice %3 {offsets = [8, 0], sizes = [8, 128], strides = [1, 1]} : vector<64x128xf32> to vector<8x128xf32>
    %32 = arith.truncf %30 : vector<8x32xf32> to vector<8x32xbf16>
    %cst_13 = arith.constant dense<0.000000e+00> : vector<8x128xf32>
    %33 = tpu.matmul %32, %5, %cst_13 {dimension_numbers = #tpu.dot_dimension_numbers<[1], [0], [0], [1], [0, 0, 1, 1], [], []>} : vector<8x32xbf16>, vector<32x128xbf16>, vector<8x128xf32> -> vector<8x128xf32>
    %34 = arith.addf %31, %33 : vector<8x128xf32>
    %35 = vector.broadcast %7 : vector<1x128xf32> to vector<8x128xf32>
    %36 = arith.addf %34, %35 : vector<8x128xf32>
    %37 = arith.negf %36 : vector<8x128xf32>
    %38 = math.exp %37 : vector<8x128xf32>
    %cst_14 = arith.constant 1.000000e+00 : f32
    %39 = vector.broadcast %cst_14 : f32 to vector<8x128xf32>
    %40 = arith.addf %39, %38 : vector<8x128xf32>
    %41 = arith.divf %39, %40 : vector<8x128xf32>
    %42 = math.tanh %36 : vector<8x128xf32>
    %43 = vector.extract_strided_slice %41 {offsets = [0, 32], sizes = [8, 32], strides = [1, 1]} : vector<8x128xf32> to vector<8x32xf32>
    %44 = arith.mulf %43, %27 : vector<8x32xf32>
    %45 = vector.extract_strided_slice %41 {offsets = [0, 0], sizes = [8, 32], strides = [1, 1]} : vector<8x128xf32> to vector<8x32xf32>
    %46 = vector.extract_strided_slice %42 {offsets = [0, 64], sizes = [8, 32], strides = [1, 1]} : vector<8x128xf32> to vector<8x32xf32>
    %47 = arith.mulf %45, %46 : vector<8x32xf32>
    %48 = arith.addf %44, %47 : vector<8x32xf32>
    %49 = vector.extract_strided_slice %41 {offsets = [0, 96], sizes = [8, 32], strides = [1, 1]} : vector<8x128xf32> to vector<8x32xf32>
    %50 = math.tanh %48 : vector<8x32xf32>
    %51 = arith.mulf %49, %50 : vector<8x32xf32>
    %52 = vector.extract_strided_slice %3 {offsets = [16, 0], sizes = [8, 128], strides = [1, 1]} : vector<64x128xf32> to vector<8x128xf32>
    %53 = arith.truncf %51 : vector<8x32xf32> to vector<8x32xbf16>
    %cst_15 = arith.constant dense<0.000000e+00> : vector<8x128xf32>
    %54 = tpu.matmul %53, %5, %cst_15 {dimension_numbers = #tpu.dot_dimension_numbers<[1], [0], [0], [1], [0, 0, 1, 1], [], []>} : vector<8x32xbf16>, vector<32x128xbf16>, vector<8x128xf32> -> vector<8x128xf32>
    %55 = arith.addf %52, %54 : vector<8x128xf32>
    %56 = vector.broadcast %7 : vector<1x128xf32> to vector<8x128xf32>
    %57 = arith.addf %55, %56 : vector<8x128xf32>
    %58 = arith.negf %57 : vector<8x128xf32>
    %59 = math.exp %58 : vector<8x128xf32>
    %cst_16 = arith.constant 1.000000e+00 : f32
    %60 = vector.broadcast %cst_16 : f32 to vector<8x128xf32>
    %61 = arith.addf %60, %59 : vector<8x128xf32>
    %62 = arith.divf %60, %61 : vector<8x128xf32>
    %63 = math.tanh %57 : vector<8x128xf32>
    %64 = vector.extract_strided_slice %62 {offsets = [0, 32], sizes = [8, 32], strides = [1, 1]} : vector<8x128xf32> to vector<8x32xf32>
    %65 = arith.mulf %64, %48 : vector<8x32xf32>
    %66 = vector.extract_strided_slice %62 {offsets = [0, 0], sizes = [8, 32], strides = [1, 1]} : vector<8x128xf32> to vector<8x32xf32>
    %67 = vector.extract_strided_slice %63 {offsets = [0, 64], sizes = [8, 32], strides = [1, 1]} : vector<8x128xf32> to vector<8x32xf32>
    %68 = arith.mulf %66, %67 : vector<8x32xf32>
    %69 = arith.addf %65, %68 : vector<8x32xf32>
    %70 = vector.extract_strided_slice %62 {offsets = [0, 96], sizes = [8, 32], strides = [1, 1]} : vector<8x128xf32> to vector<8x32xf32>
    %71 = math.tanh %69 : vector<8x32xf32>
    %72 = arith.mulf %70, %71 : vector<8x32xf32>
    %73 = vector.extract_strided_slice %3 {offsets = [24, 0], sizes = [8, 128], strides = [1, 1]} : vector<64x128xf32> to vector<8x128xf32>
    %74 = arith.truncf %72 : vector<8x32xf32> to vector<8x32xbf16>
    %cst_17 = arith.constant dense<0.000000e+00> : vector<8x128xf32>
    %75 = tpu.matmul %74, %5, %cst_17 {dimension_numbers = #tpu.dot_dimension_numbers<[1], [0], [0], [1], [0, 0, 1, 1], [], []>} : vector<8x32xbf16>, vector<32x128xbf16>, vector<8x128xf32> -> vector<8x128xf32>
    %76 = arith.addf %73, %75 : vector<8x128xf32>
    %77 = vector.broadcast %7 : vector<1x128xf32> to vector<8x128xf32>
    %78 = arith.addf %76, %77 : vector<8x128xf32>
    %79 = arith.negf %78 : vector<8x128xf32>
    %80 = math.exp %79 : vector<8x128xf32>
    %cst_18 = arith.constant 1.000000e+00 : f32
    %81 = vector.broadcast %cst_18 : f32 to vector<8x128xf32>
    %82 = arith.addf %81, %80 : vector<8x128xf32>
    %83 = arith.divf %81, %82 : vector<8x128xf32>
    %84 = math.tanh %78 : vector<8x128xf32>
    %85 = vector.extract_strided_slice %83 {offsets = [0, 32], sizes = [8, 32], strides = [1, 1]} : vector<8x128xf32> to vector<8x32xf32>
    %86 = arith.mulf %85, %69 : vector<8x32xf32>
    %87 = vector.extract_strided_slice %83 {offsets = [0, 0], sizes = [8, 32], strides = [1, 1]} : vector<8x128xf32> to vector<8x32xf32>
    %88 = vector.extract_strided_slice %84 {offsets = [0, 64], sizes = [8, 32], strides = [1, 1]} : vector<8x128xf32> to vector<8x32xf32>
    %89 = arith.mulf %87, %88 : vector<8x32xf32>
    %90 = arith.addf %86, %89 : vector<8x32xf32>
    %91 = vector.extract_strided_slice %83 {offsets = [0, 96], sizes = [8, 32], strides = [1, 1]} : vector<8x128xf32> to vector<8x32xf32>
    %92 = math.tanh %90 : vector<8x32xf32>
    %93 = arith.mulf %91, %92 : vector<8x32xf32>
    %94 = vector.extract_strided_slice %3 {offsets = [32, 0], sizes = [8, 128], strides = [1, 1]} : vector<64x128xf32> to vector<8x128xf32>
    %95 = arith.truncf %93 : vector<8x32xf32> to vector<8x32xbf16>
    %cst_19 = arith.constant dense<0.000000e+00> : vector<8x128xf32>
    %96 = tpu.matmul %95, %5, %cst_19 {dimension_numbers = #tpu.dot_dimension_numbers<[1], [0], [0], [1], [0, 0, 1, 1], [], []>} : vector<8x32xbf16>, vector<32x128xbf16>, vector<8x128xf32> -> vector<8x128xf32>
    %97 = arith.addf %94, %96 : vector<8x128xf32>
    %98 = vector.broadcast %7 : vector<1x128xf32> to vector<8x128xf32>
    %99 = arith.addf %97, %98 : vector<8x128xf32>
    %100 = arith.negf %99 : vector<8x128xf32>
    %101 = math.exp %100 : vector<8x128xf32>
    %cst_20 = arith.constant 1.000000e+00 : f32
    %102 = vector.broadcast %cst_20 : f32 to vector<8x128xf32>
    %103 = arith.addf %102, %101 : vector<8x128xf32>
    %104 = arith.divf %102, %103 : vector<8x128xf32>
    %105 = math.tanh %99 : vector<8x128xf32>
    %106 = vector.extract_strided_slice %104 {offsets = [0, 32], sizes = [8, 32], strides = [1, 1]} : vector<8x128xf32> to vector<8x32xf32>
    %107 = arith.mulf %106, %90 : vector<8x32xf32>
    %108 = vector.extract_strided_slice %104 {offsets = [0, 0], sizes = [8, 32], strides = [1, 1]} : vector<8x128xf32> to vector<8x32xf32>
    %109 = vector.extract_strided_slice %105 {offsets = [0, 64], sizes = [8, 32], strides = [1, 1]} : vector<8x128xf32> to vector<8x32xf32>
    %110 = arith.mulf %108, %109 : vector<8x32xf32>
    %111 = arith.addf %107, %110 : vector<8x32xf32>
    %112 = vector.extract_strided_slice %104 {offsets = [0, 96], sizes = [8, 32], strides = [1, 1]} : vector<8x128xf32> to vector<8x32xf32>
    %113 = math.tanh %111 : vector<8x32xf32>
    %114 = arith.mulf %112, %113 : vector<8x32xf32>
    %115 = vector.extract_strided_slice %3 {offsets = [40, 0], sizes = [8, 128], strides = [1, 1]} : vector<64x128xf32> to vector<8x128xf32>
    %116 = arith.truncf %114 : vector<8x32xf32> to vector<8x32xbf16>
    %cst_21 = arith.constant dense<0.000000e+00> : vector<8x128xf32>
    %117 = tpu.matmul %116, %5, %cst_21 {dimension_numbers = #tpu.dot_dimension_numbers<[1], [0], [0], [1], [0, 0, 1, 1], [], []>} : vector<8x32xbf16>, vector<32x128xbf16>, vector<8x128xf32> -> vector<8x128xf32>
    %118 = arith.addf %115, %117 : vector<8x128xf32>
    %119 = vector.broadcast %7 : vector<1x128xf32> to vector<8x128xf32>
    %120 = arith.addf %118, %119 : vector<8x128xf32>
    %121 = arith.negf %120 : vector<8x128xf32>
    %122 = math.exp %121 : vector<8x128xf32>
    %cst_22 = arith.constant 1.000000e+00 : f32
    %123 = vector.broadcast %cst_22 : f32 to vector<8x128xf32>
    %124 = arith.addf %123, %122 : vector<8x128xf32>
    %125 = arith.divf %123, %124 : vector<8x128xf32>
    %126 = math.tanh %120 : vector<8x128xf32>
    %127 = vector.extract_strided_slice %125 {offsets = [0, 32], sizes = [8, 32], strides = [1, 1]} : vector<8x128xf32> to vector<8x32xf32>
    %128 = arith.mulf %127, %111 : vector<8x32xf32>
    %129 = vector.extract_strided_slice %125 {offsets = [0, 0], sizes = [8, 32], strides = [1, 1]} : vector<8x128xf32> to vector<8x32xf32>
    %130 = vector.extract_strided_slice %126 {offsets = [0, 64], sizes = [8, 32], strides = [1, 1]} : vector<8x128xf32> to vector<8x32xf32>
    %131 = arith.mulf %129, %130 : vector<8x32xf32>
    %132 = arith.addf %128, %131 : vector<8x32xf32>
    %133 = vector.extract_strided_slice %125 {offsets = [0, 96], sizes = [8, 32], strides = [1, 1]} : vector<8x128xf32> to vector<8x32xf32>
    %134 = math.tanh %132 : vector<8x32xf32>
    %135 = arith.mulf %133, %134 : vector<8x32xf32>
    %136 = vector.extract_strided_slice %3 {offsets = [48, 0], sizes = [8, 128], strides = [1, 1]} : vector<64x128xf32> to vector<8x128xf32>
    %137 = arith.truncf %135 : vector<8x32xf32> to vector<8x32xbf16>
    %cst_23 = arith.constant dense<0.000000e+00> : vector<8x128xf32>
    %138 = tpu.matmul %137, %5, %cst_23 {dimension_numbers = #tpu.dot_dimension_numbers<[1], [0], [0], [1], [0, 0, 1, 1], [], []>} : vector<8x32xbf16>, vector<32x128xbf16>, vector<8x128xf32> -> vector<8x128xf32>
    %139 = arith.addf %136, %138 : vector<8x128xf32>
    %140 = vector.broadcast %7 : vector<1x128xf32> to vector<8x128xf32>
    %141 = arith.addf %139, %140 : vector<8x128xf32>
    %142 = arith.negf %141 : vector<8x128xf32>
    %143 = math.exp %142 : vector<8x128xf32>
    %cst_24 = arith.constant 1.000000e+00 : f32
    %144 = vector.broadcast %cst_24 : f32 to vector<8x128xf32>
    %145 = arith.addf %144, %143 : vector<8x128xf32>
    %146 = arith.divf %144, %145 : vector<8x128xf32>
    %147 = math.tanh %141 : vector<8x128xf32>
    %148 = vector.extract_strided_slice %146 {offsets = [0, 32], sizes = [8, 32], strides = [1, 1]} : vector<8x128xf32> to vector<8x32xf32>
    %149 = arith.mulf %148, %132 : vector<8x32xf32>
    %150 = vector.extract_strided_slice %146 {offsets = [0, 0], sizes = [8, 32], strides = [1, 1]} : vector<8x128xf32> to vector<8x32xf32>
    %151 = vector.extract_strided_slice %147 {offsets = [0, 64], sizes = [8, 32], strides = [1, 1]} : vector<8x128xf32> to vector<8x32xf32>
    %152 = arith.mulf %150, %151 : vector<8x32xf32>
    %153 = arith.addf %149, %152 : vector<8x32xf32>
    %154 = vector.extract_strided_slice %146 {offsets = [0, 96], sizes = [8, 32], strides = [1, 1]} : vector<8x128xf32> to vector<8x32xf32>
    %155 = math.tanh %153 : vector<8x32xf32>
    %156 = arith.mulf %154, %155 : vector<8x32xf32>
    %157 = vector.extract_strided_slice %3 {offsets = [56, 0], sizes = [8, 128], strides = [1, 1]} : vector<64x128xf32> to vector<8x128xf32>
    %158 = arith.truncf %156 : vector<8x32xf32> to vector<8x32xbf16>
    %cst_25 = arith.constant dense<0.000000e+00> : vector<8x128xf32>
    %159 = tpu.matmul %158, %5, %cst_25 {dimension_numbers = #tpu.dot_dimension_numbers<[1], [0], [0], [1], [0, 0, 1, 1], [], []>} : vector<8x32xbf16>, vector<32x128xbf16>, vector<8x128xf32> -> vector<8x128xf32>
    %160 = arith.addf %157, %159 : vector<8x128xf32>
    %161 = vector.broadcast %7 : vector<1x128xf32> to vector<8x128xf32>
    %162 = arith.addf %160, %161 : vector<8x128xf32>
    %163 = arith.negf %162 : vector<8x128xf32>
    %164 = math.exp %163 : vector<8x128xf32>
    %cst_26 = arith.constant 1.000000e+00 : f32
    %165 = vector.broadcast %cst_26 : f32 to vector<8x128xf32>
    %166 = arith.addf %165, %164 : vector<8x128xf32>
    %167 = arith.divf %165, %166 : vector<8x128xf32>
    %168 = math.tanh %162 : vector<8x128xf32>
    %169 = vector.extract_strided_slice %167 {offsets = [0, 32], sizes = [8, 32], strides = [1, 1]} : vector<8x128xf32> to vector<8x32xf32>
    %170 = arith.mulf %169, %153 : vector<8x32xf32>
    %171 = vector.extract_strided_slice %167 {offsets = [0, 0], sizes = [8, 32], strides = [1, 1]} : vector<8x128xf32> to vector<8x32xf32>
    %172 = vector.extract_strided_slice %168 {offsets = [0, 64], sizes = [8, 32], strides = [1, 1]} : vector<8x128xf32> to vector<8x32xf32>
    %173 = arith.mulf %171, %172 : vector<8x32xf32>
    %174 = arith.addf %170, %173 : vector<8x32xf32>
    %175 = vector.extract_strided_slice %167 {offsets = [0, 96], sizes = [8, 32], strides = [1, 1]} : vector<8x128xf32> to vector<8x32xf32>
    %176 = math.tanh %174 : vector<8x32xf32>
    %177 = arith.mulf %175, %176 : vector<8x32xf32>
    %178 = tpu.concatenate %30, %51, %72, %93, %114, %135, %156, %177 in 0 : vector<8x32xf32>, vector<8x32xf32>, vector<8x32xf32>, vector<8x32xf32>, vector<8x32xf32>, vector<8x32xf32>, vector<8x32xf32>, vector<8x32xf32> -> vector<64x32xf32>
    %179 = arith.truncf %178 : vector<64x32xf32> to vector<64x32xbf16>
    %c0_27 = arith.constant 0 : index
    %c0_28 = arith.constant 0 : index
    %c0_29 = arith.constant 0 : index
    %180 = vector.load %arg2[%c0_27, %c0_28, %c0_29] : memref<2x32x128xbf16, #tpu.memory_space<vmem>>, vector<1x32x128xbf16>
    %181 = vector.shape_cast %180 : vector<1x32x128xbf16> to vector<32x128xbf16>
    %cst_30 = arith.constant dense<0.000000e+00> : vector<64x128xf32>
    %182 = tpu.matmul %179, %181, %cst_30 {dimension_numbers = #tpu.dot_dimension_numbers<[1], [0], [0], [1], [0, 0, 1, 1], [], []>} : vector<64x32xbf16>, vector<32x128xbf16>, vector<64x128xf32> -> vector<64x128xf32>
    %c1 = arith.constant 1 : index
    %c0_31 = arith.constant 0 : index
    %c0_32 = arith.constant 0 : index
    %183 = vector.load %arg3[%c1, %c0_31, %c0_32] : memref<3x32x128xbf16, #tpu.memory_space<vmem>>, vector<1x32x128xbf16>
    %184 = vector.shape_cast %183 : vector<1x32x128xbf16> to vector<32x128xbf16>
    %c1_33 = arith.constant 1 : index
    %c0_34 = arith.constant 0 : index
    %c0_35 = arith.constant 0 : index
    %185 = vector.load %arg4[%c1_33, %c0_34, %c0_35] : memref<3x1x128xf32, #tpu.memory_space<vmem>>, vector<1x1x128xf32>
    %186 = vector.shape_cast %185 : vector<1x1x128xf32> to vector<1x128xf32>
    %cst_36 = arith.constant 0.000000e+00 : f32
    %187 = vector.broadcast %cst_36 : f32 to vector<8x32xf32>
    %cst_37 = arith.constant 0.000000e+00 : f32
    %188 = vector.broadcast %cst_37 : f32 to vector<8x32xf32>
    %189 = vector.extract_strided_slice %182 {offsets = [0, 0], sizes = [8, 128], strides = [1, 1]} : vector<64x128xf32> to vector<8x128xf32>
    %190 = arith.truncf %187 : vector<8x32xf32> to vector<8x32xbf16>
    %cst_38 = arith.constant dense<0.000000e+00> : vector<8x128xf32>
    %191 = tpu.matmul %190, %184, %cst_38 {dimension_numbers = #tpu.dot_dimension_numbers<[1], [0], [0], [1], [0, 0, 1, 1], [], []>} : vector<8x32xbf16>, vector<32x128xbf16>, vector<8x128xf32> -> vector<8x128xf32>
    %192 = arith.addf %189, %191 : vector<8x128xf32>
    %193 = vector.broadcast %186 : vector<1x128xf32> to vector<8x128xf32>
    %194 = arith.addf %192, %193 : vector<8x128xf32>
    %195 = arith.negf %194 : vector<8x128xf32>
    %196 = math.exp %195 : vector<8x128xf32>
    %cst_39 = arith.constant 1.000000e+00 : f32
    %197 = vector.broadcast %cst_39 : f32 to vector<8x128xf32>
    %198 = arith.addf %197, %196 : vector<8x128xf32>
    %199 = arith.divf %197, %198 : vector<8x128xf32>
    %200 = math.tanh %194 : vector<8x128xf32>
    %201 = vector.extract_strided_slice %199 {offsets = [0, 32], sizes = [8, 32], strides = [1, 1]} : vector<8x128xf32> to vector<8x32xf32>
    %202 = arith.mulf %201, %188 : vector<8x32xf32>
    %203 = vector.extract_strided_slice %199 {offsets = [0, 0], sizes = [8, 32], strides = [1, 1]} : vector<8x128xf32> to vector<8x32xf32>
    %204 = vector.extract_strided_slice %200 {offsets = [0, 64], sizes = [8, 32], strides = [1, 1]} : vector<8x128xf32> to vector<8x32xf32>
    %205 = arith.mulf %203, %204 : vector<8x32xf32>
    %206 = arith.addf %202, %205 : vector<8x32xf32>
    %207 = vector.extract_strided_slice %199 {offsets = [0, 96], sizes = [8, 32], strides = [1, 1]} : vector<8x128xf32> to vector<8x32xf32>
    %208 = math.tanh %206 : vector<8x32xf32>
    %209 = arith.mulf %207, %208 : vector<8x32xf32>
    %210 = vector.extract_strided_slice %182 {offsets = [8, 0], sizes = [8, 128], strides = [1, 1]} : vector<64x128xf32> to vector<8x128xf32>
    %211 = arith.truncf %209 : vector<8x32xf32> to vector<8x32xbf16>
    %cst_40 = arith.constant dense<0.000000e+00> : vector<8x128xf32>
    %212 = tpu.matmul %211, %184, %cst_40 {dimension_numbers = #tpu.dot_dimension_numbers<[1], [0], [0], [1], [0, 0, 1, 1], [], []>} : vector<8x32xbf16>, vector<32x128xbf16>, vector<8x128xf32> -> vector<8x128xf32>
    %213 = arith.addf %210, %212 : vector<8x128xf32>
    %214 = vector.broadcast %186 : vector<1x128xf32> to vector<8x128xf32>
    %215 = arith.addf %213, %214 : vector<8x128xf32>
    %216 = arith.negf %215 : vector<8x128xf32>
    %217 = math.exp %216 : vector<8x128xf32>
    %cst_41 = arith.constant 1.000000e+00 : f32
    %218 = vector.broadcast %cst_41 : f32 to vector<8x128xf32>
    %219 = arith.addf %218, %217 : vector<8x128xf32>
    %220 = arith.divf %218, %219 : vector<8x128xf32>
    %221 = math.tanh %215 : vector<8x128xf32>
    %222 = vector.extract_strided_slice %220 {offsets = [0, 32], sizes = [8, 32], strides = [1, 1]} : vector<8x128xf32> to vector<8x32xf32>
    %223 = arith.mulf %222, %206 : vector<8x32xf32>
    %224 = vector.extract_strided_slice %220 {offsets = [0, 0], sizes = [8, 32], strides = [1, 1]} : vector<8x128xf32> to vector<8x32xf32>
    %225 = vector.extract_strided_slice %221 {offsets = [0, 64], sizes = [8, 32], strides = [1, 1]} : vector<8x128xf32> to vector<8x32xf32>
    %226 = arith.mulf %224, %225 : vector<8x32xf32>
    %227 = arith.addf %223, %226 : vector<8x32xf32>
    %228 = vector.extract_strided_slice %220 {offsets = [0, 96], sizes = [8, 32], strides = [1, 1]} : vector<8x128xf32> to vector<8x32xf32>
    %229 = math.tanh %227 : vector<8x32xf32>
    %230 = arith.mulf %228, %229 : vector<8x32xf32>
    %231 = vector.extract_strided_slice %182 {offsets = [16, 0], sizes = [8, 128], strides = [1, 1]} : vector<64x128xf32> to vector<8x128xf32>
    %232 = arith.truncf %230 : vector<8x32xf32> to vector<8x32xbf16>
    %cst_42 = arith.constant dense<0.000000e+00> : vector<8x128xf32>
    %233 = tpu.matmul %232, %184, %cst_42 {dimension_numbers = #tpu.dot_dimension_numbers<[1], [0], [0], [1], [0, 0, 1, 1], [], []>} : vector<8x32xbf16>, vector<32x128xbf16>, vector<8x128xf32> -> vector<8x128xf32>
    %234 = arith.addf %231, %233 : vector<8x128xf32>
    %235 = vector.broadcast %186 : vector<1x128xf32> to vector<8x128xf32>
    %236 = arith.addf %234, %235 : vector<8x128xf32>
    %237 = arith.negf %236 : vector<8x128xf32>
    %238 = math.exp %237 : vector<8x128xf32>
    %cst_43 = arith.constant 1.000000e+00 : f32
    %239 = vector.broadcast %cst_43 : f32 to vector<8x128xf32>
    %240 = arith.addf %239, %238 : vector<8x128xf32>
    %241 = arith.divf %239, %240 : vector<8x128xf32>
    %242 = math.tanh %236 : vector<8x128xf32>
    %243 = vector.extract_strided_slice %241 {offsets = [0, 32], sizes = [8, 32], strides = [1, 1]} : vector<8x128xf32> to vector<8x32xf32>
    %244 = arith.mulf %243, %227 : vector<8x32xf32>
    %245 = vector.extract_strided_slice %241 {offsets = [0, 0], sizes = [8, 32], strides = [1, 1]} : vector<8x128xf32> to vector<8x32xf32>
    %246 = vector.extract_strided_slice %242 {offsets = [0, 64], sizes = [8, 32], strides = [1, 1]} : vector<8x128xf32> to vector<8x32xf32>
    %247 = arith.mulf %245, %246 : vector<8x32xf32>
    %248 = arith.addf %244, %247 : vector<8x32xf32>
    %249 = vector.extract_strided_slice %241 {offsets = [0, 96], sizes = [8, 32], strides = [1, 1]} : vector<8x128xf32> to vector<8x32xf32>
    %250 = math.tanh %248 : vector<8x32xf32>
    %251 = arith.mulf %249, %250 : vector<8x32xf32>
    %252 = vector.extract_strided_slice %182 {offsets = [24, 0], sizes = [8, 128], strides = [1, 1]} : vector<64x128xf32> to vector<8x128xf32>
    %253 = arith.truncf %251 : vector<8x32xf32> to vector<8x32xbf16>
    %cst_44 = arith.constant dense<0.000000e+00> : vector<8x128xf32>
    %254 = tpu.matmul %253, %184, %cst_44 {dimension_numbers = #tpu.dot_dimension_numbers<[1], [0], [0], [1], [0, 0, 1, 1], [], []>} : vector<8x32xbf16>, vector<32x128xbf16>, vector<8x128xf32> -> vector<8x128xf32>
    %255 = arith.addf %252, %254 : vector<8x128xf32>
    %256 = vector.broadcast %186 : vector<1x128xf32> to vector<8x128xf32>
    %257 = arith.addf %255, %256 : vector<8x128xf32>
    %258 = arith.negf %257 : vector<8x128xf32>
    %259 = math.exp %258 : vector<8x128xf32>
    %cst_45 = arith.constant 1.000000e+00 : f32
    %260 = vector.broadcast %cst_45 : f32 to vector<8x128xf32>
    %261 = arith.addf %260, %259 : vector<8x128xf32>
    %262 = arith.divf %260, %261 : vector<8x128xf32>
    %263 = math.tanh %257 : vector<8x128xf32>
    %264 = vector.extract_strided_slice %262 {offsets = [0, 32], sizes = [8, 32], strides = [1, 1]} : vector<8x128xf32> to vector<8x32xf32>
    %265 = arith.mulf %264, %248 : vector<8x32xf32>
    %266 = vector.extract_strided_slice %262 {offsets = [0, 0], sizes = [8, 32], strides = [1, 1]} : vector<8x128xf32> to vector<8x32xf32>
    %267 = vector.extract_strided_slice %263 {offsets = [0, 64], sizes = [8, 32], strides = [1, 1]} : vector<8x128xf32> to vector<8x32xf32>
    %268 = arith.mulf %266, %267 : vector<8x32xf32>
    %269 = arith.addf %265, %268 : vector<8x32xf32>
    %270 = vector.extract_strided_slice %262 {offsets = [0, 96], sizes = [8, 32], strides = [1, 1]} : vector<8x128xf32> to vector<8x32xf32>
    %271 = math.tanh %269 : vector<8x32xf32>
    %272 = arith.mulf %270, %271 : vector<8x32xf32>
    %273 = vector.extract_strided_slice %182 {offsets = [32, 0], sizes = [8, 128], strides = [1, 1]} : vector<64x128xf32> to vector<8x128xf32>
    %274 = arith.truncf %272 : vector<8x32xf32> to vector<8x32xbf16>
    %cst_46 = arith.constant dense<0.000000e+00> : vector<8x128xf32>
    %275 = tpu.matmul %274, %184, %cst_46 {dimension_numbers = #tpu.dot_dimension_numbers<[1], [0], [0], [1], [0, 0, 1, 1], [], []>} : vector<8x32xbf16>, vector<32x128xbf16>, vector<8x128xf32> -> vector<8x128xf32>
    %276 = arith.addf %273, %275 : vector<8x128xf32>
    %277 = vector.broadcast %186 : vector<1x128xf32> to vector<8x128xf32>
    %278 = arith.addf %276, %277 : vector<8x128xf32>
    %279 = arith.negf %278 : vector<8x128xf32>
    %280 = math.exp %279 : vector<8x128xf32>
    %cst_47 = arith.constant 1.000000e+00 : f32
    %281 = vector.broadcast %cst_47 : f32 to vector<8x128xf32>
    %282 = arith.addf %281, %280 : vector<8x128xf32>
    %283 = arith.divf %281, %282 : vector<8x128xf32>
    %284 = math.tanh %278 : vector<8x128xf32>
    %285 = vector.extract_strided_slice %283 {offsets = [0, 32], sizes = [8, 32], strides = [1, 1]} : vector<8x128xf32> to vector<8x32xf32>
    %286 = arith.mulf %285, %269 : vector<8x32xf32>
    %287 = vector.extract_strided_slice %283 {offsets = [0, 0], sizes = [8, 32], strides = [1, 1]} : vector<8x128xf32> to vector<8x32xf32>
    %288 = vector.extract_strided_slice %284 {offsets = [0, 64], sizes = [8, 32], strides = [1, 1]} : vector<8x128xf32> to vector<8x32xf32>
    %289 = arith.mulf %287, %288 : vector<8x32xf32>
    %290 = arith.addf %286, %289 : vector<8x32xf32>
    %291 = vector.extract_strided_slice %283 {offsets = [0, 96], sizes = [8, 32], strides = [1, 1]} : vector<8x128xf32> to vector<8x32xf32>
    %292 = math.tanh %290 : vector<8x32xf32>
    %293 = arith.mulf %291, %292 : vector<8x32xf32>
    %294 = vector.extract_strided_slice %182 {offsets = [40, 0], sizes = [8, 128], strides = [1, 1]} : vector<64x128xf32> to vector<8x128xf32>
    %295 = arith.truncf %293 : vector<8x32xf32> to vector<8x32xbf16>
    %cst_48 = arith.constant dense<0.000000e+00> : vector<8x128xf32>
    %296 = tpu.matmul %295, %184, %cst_48 {dimension_numbers = #tpu.dot_dimension_numbers<[1], [0], [0], [1], [0, 0, 1, 1], [], []>} : vector<8x32xbf16>, vector<32x128xbf16>, vector<8x128xf32> -> vector<8x128xf32>
    %297 = arith.addf %294, %296 : vector<8x128xf32>
    %298 = vector.broadcast %186 : vector<1x128xf32> to vector<8x128xf32>
    %299 = arith.addf %297, %298 : vector<8x128xf32>
    %300 = arith.negf %299 : vector<8x128xf32>
    %301 = math.exp %300 : vector<8x128xf32>
    %cst_49 = arith.constant 1.000000e+00 : f32
    %302 = vector.broadcast %cst_49 : f32 to vector<8x128xf32>
    %303 = arith.addf %302, %301 : vector<8x128xf32>
    %304 = arith.divf %302, %303 : vector<8x128xf32>
    %305 = math.tanh %299 : vector<8x128xf32>
    %306 = vector.extract_strided_slice %304 {offsets = [0, 32], sizes = [8, 32], strides = [1, 1]} : vector<8x128xf32> to vector<8x32xf32>
    %307 = arith.mulf %306, %290 : vector<8x32xf32>
    %308 = vector.extract_strided_slice %304 {offsets = [0, 0], sizes = [8, 32], strides = [1, 1]} : vector<8x128xf32> to vector<8x32xf32>
    %309 = vector.extract_strided_slice %305 {offsets = [0, 64], sizes = [8, 32], strides = [1, 1]} : vector<8x128xf32> to vector<8x32xf32>
    %310 = arith.mulf %308, %309 : vector<8x32xf32>
    %311 = arith.addf %307, %310 : vector<8x32xf32>
    %312 = vector.extract_strided_slice %304 {offsets = [0, 96], sizes = [8, 32], strides = [1, 1]} : vector<8x128xf32> to vector<8x32xf32>
    %313 = math.tanh %311 : vector<8x32xf32>
    %314 = arith.mulf %312, %313 : vector<8x32xf32>
    %315 = vector.extract_strided_slice %182 {offsets = [48, 0], sizes = [8, 128], strides = [1, 1]} : vector<64x128xf32> to vector<8x128xf32>
    %316 = arith.truncf %314 : vector<8x32xf32> to vector<8x32xbf16>
    %cst_50 = arith.constant dense<0.000000e+00> : vector<8x128xf32>
    %317 = tpu.matmul %316, %184, %cst_50 {dimension_numbers = #tpu.dot_dimension_numbers<[1], [0], [0], [1], [0, 0, 1, 1], [], []>} : vector<8x32xbf16>, vector<32x128xbf16>, vector<8x128xf32> -> vector<8x128xf32>
    %318 = arith.addf %315, %317 : vector<8x128xf32>
    %319 = vector.broadcast %186 : vector<1x128xf32> to vector<8x128xf32>
    %320 = arith.addf %318, %319 : vector<8x128xf32>
    %321 = arith.negf %320 : vector<8x128xf32>
    %322 = math.exp %321 : vector<8x128xf32>
    %cst_51 = arith.constant 1.000000e+00 : f32
    %323 = vector.broadcast %cst_51 : f32 to vector<8x128xf32>
    %324 = arith.addf %323, %322 : vector<8x128xf32>
    %325 = arith.divf %323, %324 : vector<8x128xf32>
    %326 = math.tanh %320 : vector<8x128xf32>
    %327 = vector.extract_strided_slice %325 {offsets = [0, 32], sizes = [8, 32], strides = [1, 1]} : vector<8x128xf32> to vector<8x32xf32>
    %328 = arith.mulf %327, %311 : vector<8x32xf32>
    %329 = vector.extract_strided_slice %325 {offsets = [0, 0], sizes = [8, 32], strides = [1, 1]} : vector<8x128xf32> to vector<8x32xf32>
    %330 = vector.extract_strided_slice %326 {offsets = [0, 64], sizes = [8, 32], strides = [1, 1]} : vector<8x128xf32> to vector<8x32xf32>
    %331 = arith.mulf %329, %330 : vector<8x32xf32>
    %332 = arith.addf %328, %331 : vector<8x32xf32>
    %333 = vector.extract_strided_slice %325 {offsets = [0, 96], sizes = [8, 32], strides = [1, 1]} : vector<8x128xf32> to vector<8x32xf32>
    %334 = math.tanh %332 : vector<8x32xf32>
    %335 = arith.mulf %333, %334 : vector<8x32xf32>
    %336 = vector.extract_strided_slice %182 {offsets = [56, 0], sizes = [8, 128], strides = [1, 1]} : vector<64x128xf32> to vector<8x128xf32>
    %337 = arith.truncf %335 : vector<8x32xf32> to vector<8x32xbf16>
    %cst_52 = arith.constant dense<0.000000e+00> : vector<8x128xf32>
    %338 = tpu.matmul %337, %184, %cst_52 {dimension_numbers = #tpu.dot_dimension_numbers<[1], [0], [0], [1], [0, 0, 1, 1], [], []>} : vector<8x32xbf16>, vector<32x128xbf16>, vector<8x128xf32> -> vector<8x128xf32>
    %339 = arith.addf %336, %338 : vector<8x128xf32>
    %340 = vector.broadcast %186 : vector<1x128xf32> to vector<8x128xf32>
    %341 = arith.addf %339, %340 : vector<8x128xf32>
    %342 = arith.negf %341 : vector<8x128xf32>
    %343 = math.exp %342 : vector<8x128xf32>
    %cst_53 = arith.constant 1.000000e+00 : f32
    %344 = vector.broadcast %cst_53 : f32 to vector<8x128xf32>
    %345 = arith.addf %344, %343 : vector<8x128xf32>
    %346 = arith.divf %344, %345 : vector<8x128xf32>
    %347 = math.tanh %341 : vector<8x128xf32>
    %348 = vector.extract_strided_slice %346 {offsets = [0, 32], sizes = [8, 32], strides = [1, 1]} : vector<8x128xf32> to vector<8x32xf32>
    %349 = arith.mulf %348, %332 : vector<8x32xf32>
    %350 = vector.extract_strided_slice %346 {offsets = [0, 0], sizes = [8, 32], strides = [1, 1]} : vector<8x128xf32> to vector<8x32xf32>
    %351 = vector.extract_strided_slice %347 {offsets = [0, 64], sizes = [8, 32], strides = [1, 1]} : vector<8x128xf32> to vector<8x32xf32>
    %352 = arith.mulf %350, %351 : vector<8x32xf32>
    %353 = arith.addf %349, %352 : vector<8x32xf32>
    %354 = vector.extract_strided_slice %346 {offsets = [0, 96], sizes = [8, 32], strides = [1, 1]} : vector<8x128xf32> to vector<8x32xf32>
    %355 = math.tanh %353 : vector<8x32xf32>
    %356 = arith.mulf %354, %355 : vector<8x32xf32>
    %357 = tpu.concatenate %209, %230, %251, %272, %293, %314, %335, %356 in 0 : vector<8x32xf32>, vector<8x32xf32>, vector<8x32xf32>, vector<8x32xf32>, vector<8x32xf32>, vector<8x32xf32>, vector<8x32xf32>, vector<8x32xf32> -> vector<64x32xf32>
    %358 = arith.truncf %357 : vector<64x32xf32> to vector<64x32xbf16>
    %c1_54 = arith.constant 1 : index
    %c0_55 = arith.constant 0 : index
    %c0_56 = arith.constant 0 : index
    %359 = vector.load %arg2[%c1_54, %c0_55, %c0_56] : memref<2x32x128xbf16, #tpu.memory_space<vmem>>, vector<1x32x128xbf16>
    %360 = vector.shape_cast %359 : vector<1x32x128xbf16> to vector<32x128xbf16>
    %cst_57 = arith.constant dense<0.000000e+00> : vector<64x128xf32>
    %361 = tpu.matmul %358, %360, %cst_57 {dimension_numbers = #tpu.dot_dimension_numbers<[1], [0], [0], [1], [0, 0, 1, 1], [], []>} : vector<64x32xbf16>, vector<32x128xbf16>, vector<64x128xf32> -> vector<64x128xf32>
    %c2 = arith.constant 2 : index
    %c0_58 = arith.constant 0 : index
    %c0_59 = arith.constant 0 : index
    %362 = vector.load %arg3[%c2, %c0_58, %c0_59] : memref<3x32x128xbf16, #tpu.memory_space<vmem>>, vector<1x32x128xbf16>
    %363 = vector.shape_cast %362 : vector<1x32x128xbf16> to vector<32x128xbf16>
    %c2_60 = arith.constant 2 : index
    %c0_61 = arith.constant 0 : index
    %c0_62 = arith.constant 0 : index
    %364 = vector.load %arg4[%c2_60, %c0_61, %c0_62] : memref<3x1x128xf32, #tpu.memory_space<vmem>>, vector<1x1x128xf32>
    %365 = vector.shape_cast %364 : vector<1x1x128xf32> to vector<1x128xf32>
    %cst_63 = arith.constant 0.000000e+00 : f32
    %366 = vector.broadcast %cst_63 : f32 to vector<8x32xf32>
    %cst_64 = arith.constant 0.000000e+00 : f32
    %367 = vector.broadcast %cst_64 : f32 to vector<8x32xf32>
    %368 = vector.extract_strided_slice %361 {offsets = [0, 0], sizes = [8, 128], strides = [1, 1]} : vector<64x128xf32> to vector<8x128xf32>
    %369 = arith.truncf %366 : vector<8x32xf32> to vector<8x32xbf16>
    %cst_65 = arith.constant dense<0.000000e+00> : vector<8x128xf32>
    %370 = tpu.matmul %369, %363, %cst_65 {dimension_numbers = #tpu.dot_dimension_numbers<[1], [0], [0], [1], [0, 0, 1, 1], [], []>} : vector<8x32xbf16>, vector<32x128xbf16>, vector<8x128xf32> -> vector<8x128xf32>
    %371 = arith.addf %368, %370 : vector<8x128xf32>
    %372 = vector.broadcast %365 : vector<1x128xf32> to vector<8x128xf32>
    %373 = arith.addf %371, %372 : vector<8x128xf32>
    %374 = arith.negf %373 : vector<8x128xf32>
    %375 = math.exp %374 : vector<8x128xf32>
    %cst_66 = arith.constant 1.000000e+00 : f32
    %376 = vector.broadcast %cst_66 : f32 to vector<8x128xf32>
    %377 = arith.addf %376, %375 : vector<8x128xf32>
    %378 = arith.divf %376, %377 : vector<8x128xf32>
    %379 = math.tanh %373 : vector<8x128xf32>
    %380 = vector.extract_strided_slice %378 {offsets = [0, 32], sizes = [8, 32], strides = [1, 1]} : vector<8x128xf32> to vector<8x32xf32>
    %381 = arith.mulf %380, %367 : vector<8x32xf32>
    %382 = vector.extract_strided_slice %378 {offsets = [0, 0], sizes = [8, 32], strides = [1, 1]} : vector<8x128xf32> to vector<8x32xf32>
    %383 = vector.extract_strided_slice %379 {offsets = [0, 64], sizes = [8, 32], strides = [1, 1]} : vector<8x128xf32> to vector<8x32xf32>
    %384 = arith.mulf %382, %383 : vector<8x32xf32>
    %385 = arith.addf %381, %384 : vector<8x32xf32>
    %386 = vector.extract_strided_slice %378 {offsets = [0, 96], sizes = [8, 32], strides = [1, 1]} : vector<8x128xf32> to vector<8x32xf32>
    %387 = math.tanh %385 : vector<8x32xf32>
    %388 = arith.mulf %386, %387 : vector<8x32xf32>
    %389 = vector.extract_strided_slice %361 {offsets = [8, 0], sizes = [8, 128], strides = [1, 1]} : vector<64x128xf32> to vector<8x128xf32>
    %390 = arith.truncf %388 : vector<8x32xf32> to vector<8x32xbf16>
    %cst_67 = arith.constant dense<0.000000e+00> : vector<8x128xf32>
    %391 = tpu.matmul %390, %363, %cst_67 {dimension_numbers = #tpu.dot_dimension_numbers<[1], [0], [0], [1], [0, 0, 1, 1], [], []>} : vector<8x32xbf16>, vector<32x128xbf16>, vector<8x128xf32> -> vector<8x128xf32>
    %392 = arith.addf %389, %391 : vector<8x128xf32>
    %393 = vector.broadcast %365 : vector<1x128xf32> to vector<8x128xf32>
    %394 = arith.addf %392, %393 : vector<8x128xf32>
    %395 = arith.negf %394 : vector<8x128xf32>
    %396 = math.exp %395 : vector<8x128xf32>
    %cst_68 = arith.constant 1.000000e+00 : f32
    %397 = vector.broadcast %cst_68 : f32 to vector<8x128xf32>
    %398 = arith.addf %397, %396 : vector<8x128xf32>
    %399 = arith.divf %397, %398 : vector<8x128xf32>
    %400 = math.tanh %394 : vector<8x128xf32>
    %401 = vector.extract_strided_slice %399 {offsets = [0, 32], sizes = [8, 32], strides = [1, 1]} : vector<8x128xf32> to vector<8x32xf32>
    %402 = arith.mulf %401, %385 : vector<8x32xf32>
    %403 = vector.extract_strided_slice %399 {offsets = [0, 0], sizes = [8, 32], strides = [1, 1]} : vector<8x128xf32> to vector<8x32xf32>
    %404 = vector.extract_strided_slice %400 {offsets = [0, 64], sizes = [8, 32], strides = [1, 1]} : vector<8x128xf32> to vector<8x32xf32>
    %405 = arith.mulf %403, %404 : vector<8x32xf32>
    %406 = arith.addf %402, %405 : vector<8x32xf32>
    %407 = vector.extract_strided_slice %399 {offsets = [0, 96], sizes = [8, 32], strides = [1, 1]} : vector<8x128xf32> to vector<8x32xf32>
    %408 = math.tanh %406 : vector<8x32xf32>
    %409 = arith.mulf %407, %408 : vector<8x32xf32>
    %410 = vector.extract_strided_slice %361 {offsets = [16, 0], sizes = [8, 128], strides = [1, 1]} : vector<64x128xf32> to vector<8x128xf32>
    %411 = arith.truncf %409 : vector<8x32xf32> to vector<8x32xbf16>
    %cst_69 = arith.constant dense<0.000000e+00> : vector<8x128xf32>
    %412 = tpu.matmul %411, %363, %cst_69 {dimension_numbers = #tpu.dot_dimension_numbers<[1], [0], [0], [1], [0, 0, 1, 1], [], []>} : vector<8x32xbf16>, vector<32x128xbf16>, vector<8x128xf32> -> vector<8x128xf32>
    %413 = arith.addf %410, %412 : vector<8x128xf32>
    %414 = vector.broadcast %365 : vector<1x128xf32> to vector<8x128xf32>
    %415 = arith.addf %413, %414 : vector<8x128xf32>
    %416 = arith.negf %415 : vector<8x128xf32>
    %417 = math.exp %416 : vector<8x128xf32>
    %cst_70 = arith.constant 1.000000e+00 : f32
    %418 = vector.broadcast %cst_70 : f32 to vector<8x128xf32>
    %419 = arith.addf %418, %417 : vector<8x128xf32>
    %420 = arith.divf %418, %419 : vector<8x128xf32>
    %421 = math.tanh %415 : vector<8x128xf32>
    %422 = vector.extract_strided_slice %420 {offsets = [0, 32], sizes = [8, 32], strides = [1, 1]} : vector<8x128xf32> to vector<8x32xf32>
    %423 = arith.mulf %422, %406 : vector<8x32xf32>
    %424 = vector.extract_strided_slice %420 {offsets = [0, 0], sizes = [8, 32], strides = [1, 1]} : vector<8x128xf32> to vector<8x32xf32>
    %425 = vector.extract_strided_slice %421 {offsets = [0, 64], sizes = [8, 32], strides = [1, 1]} : vector<8x128xf32> to vector<8x32xf32>
    %426 = arith.mulf %424, %425 : vector<8x32xf32>
    %427 = arith.addf %423, %426 : vector<8x32xf32>
    %428 = vector.extract_strided_slice %420 {offsets = [0, 96], sizes = [8, 32], strides = [1, 1]} : vector<8x128xf32> to vector<8x32xf32>
    %429 = math.tanh %427 : vector<8x32xf32>
    %430 = arith.mulf %428, %429 : vector<8x32xf32>
    %431 = vector.extract_strided_slice %361 {offsets = [24, 0], sizes = [8, 128], strides = [1, 1]} : vector<64x128xf32> to vector<8x128xf32>
    %432 = arith.truncf %430 : vector<8x32xf32> to vector<8x32xbf16>
    %cst_71 = arith.constant dense<0.000000e+00> : vector<8x128xf32>
    %433 = tpu.matmul %432, %363, %cst_71 {dimension_numbers = #tpu.dot_dimension_numbers<[1], [0], [0], [1], [0, 0, 1, 1], [], []>} : vector<8x32xbf16>, vector<32x128xbf16>, vector<8x128xf32> -> vector<8x128xf32>
    %434 = arith.addf %431, %433 : vector<8x128xf32>
    %435 = vector.broadcast %365 : vector<1x128xf32> to vector<8x128xf32>
    %436 = arith.addf %434, %435 : vector<8x128xf32>
    %437 = arith.negf %436 : vector<8x128xf32>
    %438 = math.exp %437 : vector<8x128xf32>
    %cst_72 = arith.constant 1.000000e+00 : f32
    %439 = vector.broadcast %cst_72 : f32 to vector<8x128xf32>
    %440 = arith.addf %439, %438 : vector<8x128xf32>
    %441 = arith.divf %439, %440 : vector<8x128xf32>
    %442 = math.tanh %436 : vector<8x128xf32>
    %443 = vector.extract_strided_slice %441 {offsets = [0, 32], sizes = [8, 32], strides = [1, 1]} : vector<8x128xf32> to vector<8x32xf32>
    %444 = arith.mulf %443, %427 : vector<8x32xf32>
    %445 = vector.extract_strided_slice %441 {offsets = [0, 0], sizes = [8, 32], strides = [1, 1]} : vector<8x128xf32> to vector<8x32xf32>
    %446 = vector.extract_strided_slice %442 {offsets = [0, 64], sizes = [8, 32], strides = [1, 1]} : vector<8x128xf32> to vector<8x32xf32>
    %447 = arith.mulf %445, %446 : vector<8x32xf32>
    %448 = arith.addf %444, %447 : vector<8x32xf32>
    %449 = vector.extract_strided_slice %441 {offsets = [0, 96], sizes = [8, 32], strides = [1, 1]} : vector<8x128xf32> to vector<8x32xf32>
    %450 = math.tanh %448 : vector<8x32xf32>
    %451 = arith.mulf %449, %450 : vector<8x32xf32>
    %452 = vector.extract_strided_slice %361 {offsets = [32, 0], sizes = [8, 128], strides = [1, 1]} : vector<64x128xf32> to vector<8x128xf32>
    %453 = arith.truncf %451 : vector<8x32xf32> to vector<8x32xbf16>
    %cst_73 = arith.constant dense<0.000000e+00> : vector<8x128xf32>
    %454 = tpu.matmul %453, %363, %cst_73 {dimension_numbers = #tpu.dot_dimension_numbers<[1], [0], [0], [1], [0, 0, 1, 1], [], []>} : vector<8x32xbf16>, vector<32x128xbf16>, vector<8x128xf32> -> vector<8x128xf32>
    %455 = arith.addf %452, %454 : vector<8x128xf32>
    %456 = vector.broadcast %365 : vector<1x128xf32> to vector<8x128xf32>
    %457 = arith.addf %455, %456 : vector<8x128xf32>
    %458 = arith.negf %457 : vector<8x128xf32>
    %459 = math.exp %458 : vector<8x128xf32>
    %cst_74 = arith.constant 1.000000e+00 : f32
    %460 = vector.broadcast %cst_74 : f32 to vector<8x128xf32>
    %461 = arith.addf %460, %459 : vector<8x128xf32>
    %462 = arith.divf %460, %461 : vector<8x128xf32>
    %463 = math.tanh %457 : vector<8x128xf32>
    %464 = vector.extract_strided_slice %462 {offsets = [0, 32], sizes = [8, 32], strides = [1, 1]} : vector<8x128xf32> to vector<8x32xf32>
    %465 = arith.mulf %464, %448 : vector<8x32xf32>
    %466 = vector.extract_strided_slice %462 {offsets = [0, 0], sizes = [8, 32], strides = [1, 1]} : vector<8x128xf32> to vector<8x32xf32>
    %467 = vector.extract_strided_slice %463 {offsets = [0, 64], sizes = [8, 32], strides = [1, 1]} : vector<8x128xf32> to vector<8x32xf32>
    %468 = arith.mulf %466, %467 : vector<8x32xf32>
    %469 = arith.addf %465, %468 : vector<8x32xf32>
    %470 = vector.extract_strided_slice %462 {offsets = [0, 96], sizes = [8, 32], strides = [1, 1]} : vector<8x128xf32> to vector<8x32xf32>
    %471 = math.tanh %469 : vector<8x32xf32>
    %472 = arith.mulf %470, %471 : vector<8x32xf32>
    %473 = vector.extract_strided_slice %361 {offsets = [40, 0], sizes = [8, 128], strides = [1, 1]} : vector<64x128xf32> to vector<8x128xf32>
    %474 = arith.truncf %472 : vector<8x32xf32> to vector<8x32xbf16>
    %cst_75 = arith.constant dense<0.000000e+00> : vector<8x128xf32>
    %475 = tpu.matmul %474, %363, %cst_75 {dimension_numbers = #tpu.dot_dimension_numbers<[1], [0], [0], [1], [0, 0, 1, 1], [], []>} : vector<8x32xbf16>, vector<32x128xbf16>, vector<8x128xf32> -> vector<8x128xf32>
    %476 = arith.addf %473, %475 : vector<8x128xf32>
    %477 = vector.broadcast %365 : vector<1x128xf32> to vector<8x128xf32>
    %478 = arith.addf %476, %477 : vector<8x128xf32>
    %479 = arith.negf %478 : vector<8x128xf32>
    %480 = math.exp %479 : vector<8x128xf32>
    %cst_76 = arith.constant 1.000000e+00 : f32
    %481 = vector.broadcast %cst_76 : f32 to vector<8x128xf32>
    %482 = arith.addf %481, %480 : vector<8x128xf32>
    %483 = arith.divf %481, %482 : vector<8x128xf32>
    %484 = math.tanh %478 : vector<8x128xf32>
    %485 = vector.extract_strided_slice %483 {offsets = [0, 32], sizes = [8, 32], strides = [1, 1]} : vector<8x128xf32> to vector<8x32xf32>
    %486 = arith.mulf %485, %469 : vector<8x32xf32>
    %487 = vector.extract_strided_slice %483 {offsets = [0, 0], sizes = [8, 32], strides = [1, 1]} : vector<8x128xf32> to vector<8x32xf32>
    %488 = vector.extract_strided_slice %484 {offsets = [0, 64], sizes = [8, 32], strides = [1, 1]} : vector<8x128xf32> to vector<8x32xf32>
    %489 = arith.mulf %487, %488 : vector<8x32xf32>
    %490 = arith.addf %486, %489 : vector<8x32xf32>
    %491 = vector.extract_strided_slice %483 {offsets = [0, 96], sizes = [8, 32], strides = [1, 1]} : vector<8x128xf32> to vector<8x32xf32>
    %492 = math.tanh %490 : vector<8x32xf32>
    %493 = arith.mulf %491, %492 : vector<8x32xf32>
    %494 = vector.extract_strided_slice %361 {offsets = [48, 0], sizes = [8, 128], strides = [1, 1]} : vector<64x128xf32> to vector<8x128xf32>
    %495 = arith.truncf %493 : vector<8x32xf32> to vector<8x32xbf16>
    %cst_77 = arith.constant dense<0.000000e+00> : vector<8x128xf32>
    %496 = tpu.matmul %495, %363, %cst_77 {dimension_numbers = #tpu.dot_dimension_numbers<[1], [0], [0], [1], [0, 0, 1, 1], [], []>} : vector<8x32xbf16>, vector<32x128xbf16>, vector<8x128xf32> -> vector<8x128xf32>
    %497 = arith.addf %494, %496 : vector<8x128xf32>
    %498 = vector.broadcast %365 : vector<1x128xf32> to vector<8x128xf32>
    %499 = arith.addf %497, %498 : vector<8x128xf32>
    %500 = arith.negf %499 : vector<8x128xf32>
    %501 = math.exp %500 : vector<8x128xf32>
    %cst_78 = arith.constant 1.000000e+00 : f32
    %502 = vector.broadcast %cst_78 : f32 to vector<8x128xf32>
    %503 = arith.addf %502, %501 : vector<8x128xf32>
    %504 = arith.divf %502, %503 : vector<8x128xf32>
    %505 = math.tanh %499 : vector<8x128xf32>
    %506 = vector.extract_strided_slice %504 {offsets = [0, 32], sizes = [8, 32], strides = [1, 1]} : vector<8x128xf32> to vector<8x32xf32>
    %507 = arith.mulf %506, %490 : vector<8x32xf32>
    %508 = vector.extract_strided_slice %504 {offsets = [0, 0], sizes = [8, 32], strides = [1, 1]} : vector<8x128xf32> to vector<8x32xf32>
    %509 = vector.extract_strided_slice %505 {offsets = [0, 64], sizes = [8, 32], strides = [1, 1]} : vector<8x128xf32> to vector<8x32xf32>
    %510 = arith.mulf %508, %509 : vector<8x32xf32>
    %511 = arith.addf %507, %510 : vector<8x32xf32>
    %512 = vector.extract_strided_slice %504 {offsets = [0, 96], sizes = [8, 32], strides = [1, 1]} : vector<8x128xf32> to vector<8x32xf32>
    %513 = math.tanh %511 : vector<8x32xf32>
    %514 = arith.mulf %512, %513 : vector<8x32xf32>
    %515 = vector.extract_strided_slice %361 {offsets = [56, 0], sizes = [8, 128], strides = [1, 1]} : vector<64x128xf32> to vector<8x128xf32>
    %516 = arith.truncf %514 : vector<8x32xf32> to vector<8x32xbf16>
    %cst_79 = arith.constant dense<0.000000e+00> : vector<8x128xf32>
    %517 = tpu.matmul %516, %363, %cst_79 {dimension_numbers = #tpu.dot_dimension_numbers<[1], [0], [0], [1], [0, 0, 1, 1], [], []>} : vector<8x32xbf16>, vector<32x128xbf16>, vector<8x128xf32> -> vector<8x128xf32>
    %518 = arith.addf %515, %517 : vector<8x128xf32>
    %519 = vector.broadcast %365 : vector<1x128xf32> to vector<8x128xf32>
    %520 = arith.addf %518, %519 : vector<8x128xf32>
    %521 = arith.negf %520 : vector<8x128xf32>
    %522 = math.exp %521 : vector<8x128xf32>
    %cst_80 = arith.constant 1.000000e+00 : f32
    %523 = vector.broadcast %cst_80 : f32 to vector<8x128xf32>
    %524 = arith.addf %523, %522 : vector<8x128xf32>
    %525 = arith.divf %523, %524 : vector<8x128xf32>
    %526 = math.tanh %520 : vector<8x128xf32>
    %527 = vector.extract_strided_slice %525 {offsets = [0, 32], sizes = [8, 32], strides = [1, 1]} : vector<8x128xf32> to vector<8x32xf32>
    %528 = arith.mulf %527, %511 : vector<8x32xf32>
    %529 = vector.extract_strided_slice %525 {offsets = [0, 0], sizes = [8, 32], strides = [1, 1]} : vector<8x128xf32> to vector<8x32xf32>
    %530 = vector.extract_strided_slice %526 {offsets = [0, 64], sizes = [8, 32], strides = [1, 1]} : vector<8x128xf32> to vector<8x32xf32>
    %531 = arith.mulf %529, %530 : vector<8x32xf32>
    %532 = arith.addf %528, %531 : vector<8x32xf32>
    %533 = vector.extract_strided_slice %525 {offsets = [0, 96], sizes = [8, 32], strides = [1, 1]} : vector<8x128xf32> to vector<8x32xf32>
    %534 = math.tanh %532 : vector<8x32xf32>
    %535 = arith.mulf %533, %534 : vector<8x32xf32>
    %536 = tpu.concatenate %388, %409, %430, %451, %472, %493, %514, %535 in 0 : vector<8x32xf32>, vector<8x32xf32>, vector<8x32xf32>, vector<8x32xf32>, vector<8x32xf32>, vector<8x32xf32>, vector<8x32xf32>, vector<8x32xf32> -> vector<64x32xf32>
    %537 = arith.truncf %536 : vector<64x32xf32> to vector<64x32xbf16>
    %c0_81 = arith.constant 0 : index
    %c0_82 = arith.constant 0 : index
    %538 = vector.load %arg5[%c0_81, %c0_82] : memref<32x128xbf16, #tpu.memory_space<vmem>>, vector<32x128xbf16>
    %cst_83 = arith.constant dense<0.000000e+00> : vector<64x128xf32>
    %539 = tpu.matmul %537, %538, %cst_83 {dimension_numbers = #tpu.dot_dimension_numbers<[1], [0], [0], [1], [0, 0, 1, 1], [], []>} : vector<64x32xbf16>, vector<32x128xbf16>, vector<64x128xf32> -> vector<64x128xf32>
    %c0_84 = arith.constant 0 : index
    %c0_85 = arith.constant 0 : index
    %540 = vector.load %arg7[%c0_84, %c0_85] : memref<8x64xf32, #tpu.memory_space<vmem>>, vector<8x64xf32>
    %c0_86 = arith.constant 0 : index
    %c0_87 = arith.constant 0 : index
    %541 = vector.load %arg6[%c0_86, %c0_87] : memref<64x128xf32, #tpu.memory_space<vmem>>, vector<64x128xf32>
    %542 = arith.mulf %539, %541 : vector<64x128xf32>
    %cst_88 = arith.constant dense<0.000000e+00> : vector<8x128xf32>
    %543 = tpu.matmul %540, %542, %cst_88 {dimension_numbers = #tpu.dot_dimension_numbers<[1], [0], [0], [1], [0, 0, 1, 1], [], []>} : vector<8x64xf32>, vector<64x128xf32>, vector<8x128xf32> -> vector<8x128xf32>
    %c0_89 = arith.constant 0 : index
    %c0_90 = arith.constant 0 : index
    %544 = vector.load %arg8[%c0_89, %c0_90] : memref<8x128xf32, #tpu.memory_space<vmem>>, vector<8x128xf32>
    %545 = arith.addf %543, %544 : vector<8x128xf32>
    %c0_91 = arith.constant 0 : index
    %c0_92 = arith.constant 0 : index
    %546 = vector.load %arg9[%c0_91, %c0_92] : memref<8x128xf32, #tpu.memory_space<vmem>>, vector<8x128xf32>
    %c0_93 = arith.constant 0 : index
    %c0_94 = arith.constant 0 : index
    %547 = vector.load %arg10[%c0_93, %c0_94] : memref<8x72xbf16, #tpu.memory_space<vmem>>, vector<8x72xbf16>
    %c0_95 = arith.constant 0 : index
    %c0_96 = arith.constant 0 : index
    %c0_97 = arith.constant 0 : index
    %548 = vector.load %arg13[%c0_95, %c0_96, %c0_97] : memref<5x8x1xf32, #tpu.memory_space<vmem>>, vector<1x8x1xf32>
    %549 = vector.shape_cast %548 : vector<1x8x1xf32> to vector<8x1xf32>
    %c11_i32 = arith.constant 11 : i32
    %550 = tpu.dynamic_rotate %545 by %c11_i32 dim 1 : vector<8x128xf32>, i32 -> vector<8x128xf32>
    %c10_i32 = arith.constant 10 : i32
    %551 = tpu.dynamic_rotate %545 by %c10_i32 dim 1 : vector<8x128xf32>, i32 -> vector<8x128xf32>
    %c9_i32 = arith.constant 9 : i32
    %552 = tpu.dynamic_rotate %545 by %c9_i32 dim 1 : vector<8x128xf32>, i32 -> vector<8x128xf32>
    %c1_i32 = arith.constant 1 : i32
    %553 = tpu.dynamic_rotate %545 by %c1_i32 dim 1 : vector<8x128xf32>, i32 -> vector<8x128xf32>
    %c127_i32 = arith.constant 127 : i32
    %554 = tpu.dynamic_rotate %545 by %c127_i32 dim 1 : vector<8x128xf32>, i32 -> vector<8x128xf32>
    %c119_i32 = arith.constant 119 : i32
    %555 = tpu.dynamic_rotate %545 by %c119_i32 dim 1 : vector<8x128xf32>, i32 -> vector<8x128xf32>
    %c118_i32 = arith.constant 118 : i32
    %556 = tpu.dynamic_rotate %545 by %c118_i32 dim 1 : vector<8x128xf32>, i32 -> vector<8x128xf32>
    %c117_i32 = arith.constant 117 : i32
    %557 = tpu.dynamic_rotate %545 by %c117_i32 dim 1 : vector<8x128xf32>, i32 -> vector<8x128xf32>
    %558 = tpu.concatenate %550, %551, %552, %553, %545, %554, %555, %556, %557 in 0 : vector<8x128xf32>, vector<8x128xf32>, vector<8x128xf32>, vector<8x128xf32>, vector<8x128xf32>, vector<8x128xf32>, vector<8x128xf32>, vector<8x128xf32>, vector<8x128xf32> -> vector<72x128xf32>
    %559 = arith.truncf %558 : vector<72x128xf32> to vector<72x128xbf16>
    %cst_98 = arith.constant dense<0.000000e+00> : vector<8x128xf32>
    %560 = tpu.matmul %547, %559, %cst_98 {dimension_numbers = #tpu.dot_dimension_numbers<[1], [0], [0], [1], [0, 0, 1, 1], [], []>} : vector<8x72xbf16>, vector<72x128xbf16>, vector<8x128xf32> -> vector<8x128xf32>
    %561 = vector.broadcast %549 : vector<8x1xf32> to vector<8x128xf32>
    %562 = arith.addf %560, %561 : vector<8x128xf32>
    %c0_99 = arith.constant 0 : index
    %c0_100 = arith.constant 0 : index
    %563 = memref.load %arg15[%c0_99, %c0_100] : memref<1x4xf32, #tpu.memory_space<smem>>
    %cst_101 = arith.constant 0.000000e+00 : f32
    %564 = vector.broadcast %cst_101 : f32 to vector<8x128xf32>
    %565 = arith.cmpf ogt, %562, %564 : vector<8x128xf32>
    %566 = vector.broadcast %563 : f32 to vector<8x128xf32>
    %567 = arith.mulf %566, %562 : vector<8x128xf32>
    %568 = arith.select %565, %562, %567 : vector<8x128xi1>, vector<8x128xf32>
    %569 = arith.mulf %568, %546 : vector<8x128xf32>
    %c0_102 = arith.constant 0 : index
    %c0_103 = arith.constant 0 : index
    %c0_104 = arith.constant 0 : index
    %570 = vector.load %arg11[%c0_102, %c0_103, %c0_104] : memref<3x8x72xbf16, #tpu.memory_space<vmem>>, vector<1x8x72xbf16>
    %571 = vector.shape_cast %570 : vector<1x8x72xbf16> to vector<8x72xbf16>
    %c1_105 = arith.constant 1 : index
    %c0_106 = arith.constant 0 : index
    %c0_107 = arith.constant 0 : index
    %572 = vector.load %arg13[%c1_105, %c0_106, %c0_107] : memref<5x8x1xf32, #tpu.memory_space<vmem>>, vector<1x8x1xf32>
    %573 = vector.shape_cast %572 : vector<1x8x1xf32> to vector<8x1xf32>
    %c11_i32_108 = arith.constant 11 : i32
    %574 = tpu.dynamic_rotate %569 by %c11_i32_108 dim 1 : vector<8x128xf32>, i32 -> vector<8x128xf32>
    %c10_i32_109 = arith.constant 10 : i32
    %575 = tpu.dynamic_rotate %569 by %c10_i32_109 dim 1 : vector<8x128xf32>, i32 -> vector<8x128xf32>
    %c9_i32_110 = arith.constant 9 : i32
    %576 = tpu.dynamic_rotate %569 by %c9_i32_110 dim 1 : vector<8x128xf32>, i32 -> vector<8x128xf32>
    %c1_i32_111 = arith.constant 1 : i32
    %577 = tpu.dynamic_rotate %569 by %c1_i32_111 dim 1 : vector<8x128xf32>, i32 -> vector<8x128xf32>
    %c127_i32_112 = arith.constant 127 : i32
    %578 = tpu.dynamic_rotate %569 by %c127_i32_112 dim 1 : vector<8x128xf32>, i32 -> vector<8x128xf32>
    %c119_i32_113 = arith.constant 119 : i32
    %579 = tpu.dynamic_rotate %569 by %c119_i32_113 dim 1 : vector<8x128xf32>, i32 -> vector<8x128xf32>
    %c118_i32_114 = arith.constant 118 : i32
    %580 = tpu.dynamic_rotate %569 by %c118_i32_114 dim 1 : vector<8x128xf32>, i32 -> vector<8x128xf32>
    %c117_i32_115 = arith.constant 117 : i32
    %581 = tpu.dynamic_rotate %569 by %c117_i32_115 dim 1 : vector<8x128xf32>, i32 -> vector<8x128xf32>
    %582 = tpu.concatenate %574, %575, %576, %577, %569, %578, %579, %580, %581 in 0 : vector<8x128xf32>, vector<8x128xf32>, vector<8x128xf32>, vector<8x128xf32>, vector<8x128xf32>, vector<8x128xf32>, vector<8x128xf32>, vector<8x128xf32>, vector<8x128xf32> -> vector<72x128xf32>
    %583 = arith.truncf %582 : vector<72x128xf32> to vector<72x128xbf16>
    %cst_116 = arith.constant dense<0.000000e+00> : vector<8x128xf32>
    %584 = tpu.matmul %571, %583, %cst_116 {dimension_numbers = #tpu.dot_dimension_numbers<[1], [0], [0], [1], [0, 0, 1, 1], [], []>} : vector<8x72xbf16>, vector<72x128xbf16>, vector<8x128xf32> -> vector<8x128xf32>
    %585 = vector.broadcast %573 : vector<8x1xf32> to vector<8x128xf32>
    %586 = arith.addf %584, %585 : vector<8x128xf32>
    %c0_117 = arith.constant 0 : index
    %c1_118 = arith.constant 1 : index
    %587 = memref.load %arg15[%c0_117, %c1_118] : memref<1x4xf32, #tpu.memory_space<smem>>
    %cst_119 = arith.constant 0.000000e+00 : f32
    %588 = vector.broadcast %cst_119 : f32 to vector<8x128xf32>
    %589 = arith.cmpf ogt, %586, %588 : vector<8x128xf32>
    %590 = vector.broadcast %587 : f32 to vector<8x128xf32>
    %591 = arith.mulf %590, %586 : vector<8x128xf32>
    %592 = arith.select %589, %586, %591 : vector<8x128xi1>, vector<8x128xf32>
    %593 = arith.addf %592, %569 : vector<8x128xf32>
    %594 = arith.mulf %593, %546 : vector<8x128xf32>
    %c1_120 = arith.constant 1 : index
    %c0_121 = arith.constant 0 : index
    %c0_122 = arith.constant 0 : index
    %595 = vector.load %arg11[%c1_120, %c0_121, %c0_122] : memref<3x8x72xbf16, #tpu.memory_space<vmem>>, vector<1x8x72xbf16>
    %596 = vector.shape_cast %595 : vector<1x8x72xbf16> to vector<8x72xbf16>
    %c2_123 = arith.constant 2 : index
    %c0_124 = arith.constant 0 : index
    %c0_125 = arith.constant 0 : index
    %597 = vector.load %arg13[%c2_123, %c0_124, %c0_125] : memref<5x8x1xf32, #tpu.memory_space<vmem>>, vector<1x8x1xf32>
    %598 = vector.shape_cast %597 : vector<1x8x1xf32> to vector<8x1xf32>
    %c11_i32_126 = arith.constant 11 : i32
    %599 = tpu.dynamic_rotate %594 by %c11_i32_126 dim 1 : vector<8x128xf32>, i32 -> vector<8x128xf32>
    %c10_i32_127 = arith.constant 10 : i32
    %600 = tpu.dynamic_rotate %594 by %c10_i32_127 dim 1 : vector<8x128xf32>, i32 -> vector<8x128xf32>
    %c9_i32_128 = arith.constant 9 : i32
    %601 = tpu.dynamic_rotate %594 by %c9_i32_128 dim 1 : vector<8x128xf32>, i32 -> vector<8x128xf32>
    %c1_i32_129 = arith.constant 1 : i32
    %602 = tpu.dynamic_rotate %594 by %c1_i32_129 dim 1 : vector<8x128xf32>, i32 -> vector<8x128xf32>
    %c127_i32_130 = arith.constant 127 : i32
    %603 = tpu.dynamic_rotate %594 by %c127_i32_130 dim 1 : vector<8x128xf32>, i32 -> vector<8x128xf32>
    %c119_i32_131 = arith.constant 119 : i32
    %604 = tpu.dynamic_rotate %594 by %c119_i32_131 dim 1 : vector<8x128xf32>, i32 -> vector<8x128xf32>
    %c118_i32_132 = arith.constant 118 : i32
    %605 = tpu.dynamic_rotate %594 by %c118_i32_132 dim 1 : vector<8x128xf32>, i32 -> vector<8x128xf32>
    %c117_i32_133 = arith.constant 117 : i32
    %606 = tpu.dynamic_rotate %594 by %c117_i32_133 dim 1 : vector<8x128xf32>, i32 -> vector<8x128xf32>
    %607 = tpu.concatenate %599, %600, %601, %602, %594, %603, %604, %605, %606 in 0 : vector<8x128xf32>, vector<8x128xf32>, vector<8x128xf32>, vector<8x128xf32>, vector<8x128xf32>, vector<8x128xf32>, vector<8x128xf32>, vector<8x128xf32>, vector<8x128xf32> -> vector<72x128xf32>
    %608 = arith.truncf %607 : vector<72x128xf32> to vector<72x128xbf16>
    %cst_134 = arith.constant dense<0.000000e+00> : vector<8x128xf32>
    %609 = tpu.matmul %596, %608, %cst_134 {dimension_numbers = #tpu.dot_dimension_numbers<[1], [0], [0], [1], [0, 0, 1, 1], [], []>} : vector<8x72xbf16>, vector<72x128xbf16>, vector<8x128xf32> -> vector<8x128xf32>
    %610 = vector.broadcast %598 : vector<8x1xf32> to vector<8x128xf32>
    %611 = arith.addf %609, %610 : vector<8x128xf32>
    %c0_135 = arith.constant 0 : index
    %c2_136 = arith.constant 2 : index
    %612 = memref.load %arg15[%c0_135, %c2_136] : memref<1x4xf32, #tpu.memory_space<smem>>
    %cst_137 = arith.constant 0.000000e+00 : f32
    %613 = vector.broadcast %cst_137 : f32 to vector<8x128xf32>
    %614 = arith.cmpf ogt, %611, %613 : vector<8x128xf32>
    %615 = vector.broadcast %612 : f32 to vector<8x128xf32>
    %616 = arith.mulf %615, %611 : vector<8x128xf32>
    %617 = arith.select %614, %611, %616 : vector<8x128xi1>, vector<8x128xf32>
    %618 = arith.addf %617, %594 : vector<8x128xf32>
    %619 = arith.mulf %618, %546 : vector<8x128xf32>
    %c2_138 = arith.constant 2 : index
    %c0_139 = arith.constant 0 : index
    %c0_140 = arith.constant 0 : index
    %620 = vector.load %arg11[%c2_138, %c0_139, %c0_140] : memref<3x8x72xbf16, #tpu.memory_space<vmem>>, vector<1x8x72xbf16>
    %621 = vector.shape_cast %620 : vector<1x8x72xbf16> to vector<8x72xbf16>
    %c3 = arith.constant 3 : index
    %c0_141 = arith.constant 0 : index
    %c0_142 = arith.constant 0 : index
    %622 = vector.load %arg13[%c3, %c0_141, %c0_142] : memref<5x8x1xf32, #tpu.memory_space<vmem>>, vector<1x8x1xf32>
    %623 = vector.shape_cast %622 : vector<1x8x1xf32> to vector<8x1xf32>
    %c11_i32_143 = arith.constant 11 : i32
    %624 = tpu.dynamic_rotate %619 by %c11_i32_143 dim 1 : vector<8x128xf32>, i32 -> vector<8x128xf32>
    %c10_i32_144 = arith.constant 10 : i32
    %625 = tpu.dynamic_rotate %619 by %c10_i32_144 dim 1 : vector<8x128xf32>, i32 -> vector<8x128xf32>
    %c9_i32_145 = arith.constant 9 : i32
    %626 = tpu.dynamic_rotate %619 by %c9_i32_145 dim 1 : vector<8x128xf32>, i32 -> vector<8x128xf32>
    %c1_i32_146 = arith.constant 1 : i32
    %627 = tpu.dynamic_rotate %619 by %c1_i32_146 dim 1 : vector<8x128xf32>, i32 -> vector<8x128xf32>
    %c127_i32_147 = arith.constant 127 : i32
    %628 = tpu.dynamic_rotate %619 by %c127_i32_147 dim 1 : vector<8x128xf32>, i32 -> vector<8x128xf32>
    %c119_i32_148 = arith.constant 119 : i32
    %629 = tpu.dynamic_rotate %619 by %c119_i32_148 dim 1 : vector<8x128xf32>, i32 -> vector<8x128xf32>
    %c118_i32_149 = arith.constant 118 : i32
    %630 = tpu.dynamic_rotate %619 by %c118_i32_149 dim 1 : vector<8x128xf32>, i32 -> vector<8x128xf32>
    %c117_i32_150 = arith.constant 117 : i32
    %631 = tpu.dynamic_rotate %619 by %c117_i32_150 dim 1 : vector<8x128xf32>, i32 -> vector<8x128xf32>
    %632 = tpu.concatenate %624, %625, %626, %627, %619, %628, %629, %630, %631 in 0 : vector<8x128xf32>, vector<8x128xf32>, vector<8x128xf32>, vector<8x128xf32>, vector<8x128xf32>, vector<8x128xf32>, vector<8x128xf32>, vector<8x128xf32>, vector<8x128xf32> -> vector<72x128xf32>
    %633 = arith.truncf %632 : vector<72x128xf32> to vector<72x128xbf16>
    %cst_151 = arith.constant dense<0.000000e+00> : vector<8x128xf32>
    %634 = tpu.matmul %621, %633, %cst_151 {dimension_numbers = #tpu.dot_dimension_numbers<[1], [0], [0], [1], [0, 0, 1, 1], [], []>} : vector<8x72xbf16>, vector<72x128xbf16>, vector<8x128xf32> -> vector<8x128xf32>
    %635 = vector.broadcast %623 : vector<8x1xf32> to vector<8x128xf32>
    %636 = arith.addf %634, %635 : vector<8x128xf32>
    %c0_152 = arith.constant 0 : index
    %c3_153 = arith.constant 3 : index
    %637 = memref.load %arg15[%c0_152, %c3_153] : memref<1x4xf32, #tpu.memory_space<smem>>
    %cst_154 = arith.constant 0.000000e+00 : f32
    %638 = vector.broadcast %cst_154 : f32 to vector<8x128xf32>
    %639 = arith.cmpf ogt, %636, %638 : vector<8x128xf32>
    %640 = vector.broadcast %637 : f32 to vector<8x128xf32>
    %641 = arith.mulf %640, %636 : vector<8x128xf32>
    %642 = arith.select %639, %636, %641 : vector<8x128xi1>, vector<8x128xf32>
    %643 = arith.addf %642, %619 : vector<8x128xf32>
    %644 = arith.mulf %643, %546 : vector<8x128xf32>
    %c0_155 = arith.constant 0 : index
    %c0_156 = arith.constant 0 : index
    %645 = vector.load %arg12[%c0_155, %c0_156] : memref<8x72xbf16, #tpu.memory_space<vmem>>, vector<8x72xbf16>
    %c4 = arith.constant 4 : index
    %c0_157 = arith.constant 0 : index
    %c0_158 = arith.constant 0 : index
    %646 = vector.load %arg13[%c4, %c0_157, %c0_158] : memref<5x8x1xf32, #tpu.memory_space<vmem>>, vector<1x8x1xf32>
    %647 = vector.shape_cast %646 : vector<1x8x1xf32> to vector<8x1xf32>
    %c11_i32_159 = arith.constant 11 : i32
    %648 = tpu.dynamic_rotate %644 by %c11_i32_159 dim 1 : vector<8x128xf32>, i32 -> vector<8x128xf32>
    %c10_i32_160 = arith.constant 10 : i32
    %649 = tpu.dynamic_rotate %644 by %c10_i32_160 dim 1 : vector<8x128xf32>, i32 -> vector<8x128xf32>
    %c9_i32_161 = arith.constant 9 : i32
    %650 = tpu.dynamic_rotate %644 by %c9_i32_161 dim 1 : vector<8x128xf32>, i32 -> vector<8x128xf32>
    %c1_i32_162 = arith.constant 1 : i32
    %651 = tpu.dynamic_rotate %644 by %c1_i32_162 dim 1 : vector<8x128xf32>, i32 -> vector<8x128xf32>
    %c127_i32_163 = arith.constant 127 : i32
    %652 = tpu.dynamic_rotate %644 by %c127_i32_163 dim 1 : vector<8x128xf32>, i32 -> vector<8x128xf32>
    %c119_i32_164 = arith.constant 119 : i32
    %653 = tpu.dynamic_rotate %644 by %c119_i32_164 dim 1 : vector<8x128xf32>, i32 -> vector<8x128xf32>
    %c118_i32_165 = arith.constant 118 : i32
    %654 = tpu.dynamic_rotate %644 by %c118_i32_165 dim 1 : vector<8x128xf32>, i32 -> vector<8x128xf32>
    %c117_i32_166 = arith.constant 117 : i32
    %655 = tpu.dynamic_rotate %644 by %c117_i32_166 dim 1 : vector<8x128xf32>, i32 -> vector<8x128xf32>
    %656 = tpu.concatenate %648, %649, %650, %651, %644, %652, %653, %654, %655 in 0 : vector<8x128xf32>, vector<8x128xf32>, vector<8x128xf32>, vector<8x128xf32>, vector<8x128xf32>, vector<8x128xf32>, vector<8x128xf32>, vector<8x128xf32>, vector<8x128xf32> -> vector<72x128xf32>
    %657 = arith.truncf %656 : vector<72x128xf32> to vector<72x128xbf16>
    %cst_167 = arith.constant dense<0.000000e+00> : vector<8x128xf32>
    %658 = tpu.matmul %645, %657, %cst_167 {dimension_numbers = #tpu.dot_dimension_numbers<[1], [0], [0], [1], [0, 0, 1, 1], [], []>} : vector<8x72xbf16>, vector<72x128xbf16>, vector<8x128xf32> -> vector<8x128xf32>
    %659 = vector.broadcast %647 : vector<8x1xf32> to vector<8x128xf32>
    %660 = arith.addf %658, %659 : vector<8x128xf32>
    %661 = arith.mulf %660, %546 : vector<8x128xf32>
    %662 = vector.extract_strided_slice %661 {offsets = [1, 0], sizes = [1, 128], strides = [1, 1]} : vector<8x128xf32> to vector<1x128xf32>
    %663 = vector.extract_strided_slice %661 {offsets = [2, 0], sizes = [1, 128], strides = [1, 1]} : vector<8x128xf32> to vector<1x128xf32>
    %664 = vector.extract_strided_slice %661 {offsets = [3, 0], sizes = [2, 128], strides = [1, 1]} : vector<8x128xf32> to vector<2x128xf32>
    %665 = math.exp %664 : vector<2x128xf32>
    %666 = vector.extract_strided_slice %665 {offsets = [0, 0], sizes = [1, 128], strides = [1, 1]} : vector<2x128xf32> to vector<1x128xf32>
    %667 = vector.extract_strided_slice %665 {offsets = [1, 0], sizes = [1, 128], strides = [1, 1]} : vector<2x128xf32> to vector<1x128xf32>
    %668 = vector.extract_strided_slice %661 {offsets = [5, 0], sizes = [1, 128], strides = [1, 1]} : vector<8x128xf32> to vector<1x128xf32>
    %c0_168 = arith.constant 0 : index
    %c0_169 = arith.constant 0 : index
    %669 = vector.load %arg14[%c0_168, %c0_169] : memref<2x128xf32, #tpu.memory_space<vmem>>, vector<2x128xf32>
    %cst_170 = arith.constant 5.000000e-01 : f32
    %670 = vector.broadcast %cst_170 : f32 to vector<1x128xf32>
    %671 = arith.mulf %670, %662 : vector<1x128xf32>
    %672 = vector.extract_strided_slice %669 {offsets = [0, 0], sizes = [1, 128], strides = [1, 1]} : vector<2x128xf32> to vector<1x128xf32>
    %673 = arith.addf %671, %672 : vector<1x128xf32>
    %674 = arith.addf %662, %663 : vector<1x128xf32>
    %cst_171 = arith.constant 5.000000e-01 : f32
    %675 = vector.broadcast %cst_171 : f32 to vector<1x128xf32>
    %676 = arith.mulf %675, %674 : vector<1x128xf32>
    %677 = vector.extract_strided_slice %669 {offsets = [1, 0], sizes = [1, 128], strides = [1, 1]} : vector<2x128xf32> to vector<1x128xf32>
    %678 = arith.addf %676, %677 : vector<1x128xf32>
    %679 = arith.mulf %666, %666 : vector<1x128xf32>
    %680 = arith.mulf %668, %666 : vector<1x128xf32>
    %681 = arith.mulf %680, %667 : vector<1x128xf32>
    %682 = arith.mulf %667, %667 : vector<1x128xf32>
    %cst_172 = arith.constant 0.000000e+00 : f32
    %683 = vector.broadcast %cst_172 : f32 to vector<1x128xf32>
    %684 = tpu.concatenate %673, %678, %662, %663, %679, %681, %682, %683 in 0 : vector<1x128xf32>, vector<1x128xf32>, vector<1x128xf32>, vector<1x128xf32>, vector<1x128xf32>, vector<1x128xf32>, vector<1x128xf32>, vector<1x128xf32> -> vector<8x128xf32>
    %c0_173 = arith.constant 0 : index
    %c0_174 = arith.constant 0 : index
    %685 = vector.load %arg16[%c0_173, %c0_174] : memref<8x128xf32, #tpu.memory_space<vmem>>, vector<8x128xf32>
    tpu.vector_store %arg16[%c0_173, %c0_174], %684 {strides = array<i32>} : memref<8x128xf32, #tpu.memory_space<vmem>>, vector<8x128xf32>,
    return
  }
}

</mosaic_0001>

<bundles_post_ra>
// kernel: lstm_rnn_forward.1
= control target key start
LH: loop header
LB: loop body
LE: loop exit
PB: predicated region body
PF: predicated region fallthrough
CT: control target
= control target key end

     0   :  { %s4498_s0 = inlined_call_operand.vmem [shape: f32[64,8], index: 0, kind: input, shape index: {}]   ;;  %s4499_s1 = inlined_call_operand.vmem [shape: bf16[8,128], index: 1, kind: input, shape index: {}]   ;;  %s4500_s2 = inlined_call_operand.vmem [shape: bf16[2,32,128], index: 2, kind: input, shape index: {}]   ;;  %s4501_s3 = inlined_call_operand.vmem [shape: bf16[3,32,128], index: 3, kind: input, shape index: {}]   ;;  %s4502_s4 = inlined_call_operand.vmem [shape: f32[3,1,128], index: 4, kind: input, shape index: {}]   ;;  %s4503_s5 = inlined_call_operand.vmem [shape: bf16[32,128], index: 5, kind: input, shape index: {}]   ;;  %s4504_s6 = inlined_call_operand.vmem [shape: f32[64,128], index: 6, kind: input, shape index: {}]   ;;  %s4505_s7 = inlined_call_operand.vmem [shape: f32[8,64], index: 7, kind: input, shape index: {}]   ;;  %s4506_s8 = inlined_call_operand.vmem [shape: f32[8,128], index: 8, kind: input, shape index: {}]   ;;  %s4507_s9 = inlined_call_operand.vmem [shape: f32[8,128], index: 9, kind: input, shape index: {}]   ;;  %s4508_s10 = inlined_call_operand.vmem [shape: bf16[8,72], index: 10, kind: input, shape index: {}]   ;;  %s4509_s11 = inlined_call_operand.vmem [shape: bf16[3,8,72], index: 11, kind: input, shape index: {}]   ;;  %s4510_s12 = inlined_call_operand.vmem [shape: bf16[8,72], index: 12, kind: input, shape index: {}]   ;;  %s4511_s13 = inlined_call_operand.vmem [shape: f32[5,8,1], index: 13, kind: input, shape index: {}]   ;;  %s4512_s14 = inlined_call_operand.vmem [shape: f32[2,128], index: 14, kind: input, shape index: {}]   ;;  %s4513_s15 = inlined_call_operand.vmem [shape: f32[1,4], index: 15, kind: input, shape index: {}]   ;;  %s4514_s16 = inlined_call_operand.vmem [shape: f32[8,128], index: 16, kind: output, shape index: {}]  }
   0x1   :  { %4516 = sst [smem:[#allocation5_spill]] %s4498_s0 }
   0x2   :  { %21 = vsyncpa [#allocation3], 0  ;;  %s58_s23 = sshll.u32 %s4513_s15, 4  ;;  %s59_s23 = int_to_ptr.vmem [resolvable:$true] %s58_s23 }
   0x3   :  { %s3652_s24 = scalar_lea.vmem %s59_s23, 16  ;;  %p3657_p1 = scmp.lt.s32.totalorder %s59_s23, %s59_s23 }
   0x4   :  { %p3653_p0 = scmp.ne.s32.totalorder %s59_s23, %s3652_s24  ;;  %p3658_p2 = scmp.lt.s32.totalorder %s3652_s24, %s3652_s24 }
   0x6   :  { %p3659_p3 = por %p3658_p2, %p3657_p1 }
   0x8   :  { %p3660_p4 = pnand %p3659_p3, %p3653_p0 }
   0xa   :  { %3663 = shalt.err (!%p3660_p4)
}
   0xb   :  { %s3666_s25 = smov [#allocation2]  }
   0xc   :  { %61 = dma.vmem_to_smem %s59_s23, 16, %s3666_s25, [#allocation3]  }
   0xd   :  { %3664 = dma.done.wait [#allocation3], 16  }
   0xe   :  { %3665 = vsyncadd [#allocation3], 4294967280 }
   0xf   :  { %65 = sfence }
  0x10   :  { %v79_v0 = vld [vmem:[%s4499_s1] sm:$0xf]  ;;  %vm93_vm0 = vcmask 1043456   ;;  %s4517_s29 = sld [smem:[#allocation5_spill]]  ;;  %vm80_vm1 = vcmask 64512   ;;  %v3667_v10 = vmov 0.0  }
  0x11   :  { %3428 = vmatprep.subr.msk.bf16.mxu1 %vm93_vm0, %v79_v0  ;;  %v95_v3 = vsel %vm93_vm0, %v79_v0, 0  ;;  %3427 = vmatprep.subr.msk.bf16.mxu0 %vm93_vm0, %v79_v0  ;;  %v3790_v8 = vld [vmem:[%s4501_s3] sm:$0xff]   ;;  %v3809_v16 = vld [vmem:[%s4501_s3 + $0x8] sm:$0xff]   ;;  %v3668_v17 = vmov 0   ;;  %vm3669_vm2 = vmmov 0   ;;  %s3670_s18 = smov 64  }
  0x12   :  { %3426 = vmatpush3.bf16.msra.mxu1 %v95_v3  ;;  %3087 = vmatpush3.bf16.msra.mxu0 %v95_v3  ;;  %v3851_v26 = vld [vmem:[%s4502_s4] ss:$0 sm:$0xff]  ;;  %s3671_s1 = smov 32   ;;  %vm179_vm3 = vcmask 261120   ;;  %vm2316_vm4 = vcmask 523264   ;;  %s3673_s23 = smov 10  }
  0x13   :  { %3096 = vmatprep.subr.bf16.mxu1 %v3667_v10  ;;  %3112 = vmatprep.subr.bf16.mxu0 %v3667_v10  ;;  %s3674_s24 = smov 11   ;;  %s3678_s25 = smov 127   ;;  %vm2419_vm5 = vcmask 588800   ;;  %vm2828_vm10 = vcmask 1040384   ;;  %vm2830_vm11 = vcmask 1041408   ;;  %vm2832_vm12 = vcmask 1042432  }
  0x14   :  { %3444 = vset.pattern.permute.xlu1 %v3668_v17  ;;  %3445 = vset.pattern.permute.xlu0 %v3668_v17  ;;  %s3680_s26 = smov 118   ;;  %s2466_s30 = sld [smem:[#allocation2]]  ;;  %vm2835_vm13 = vcmask 1044480   ;;  %vm2837_vm14 = vcmask 1045504   ;;  %vm2839_vm15 = vcmask 1046528  }
  0x15   :  { %s2941_s19 = sld [smem:[#allocation2 + $0x1]]  ;;  %s2949_s15 = sld [smem:[#allocation2 + $0x3]] }
  0x16   :  { %v71_v1 = vld [vmem:[%s4517_s29 + $0x20] sm:$0xff]  ;;  %v72_v2 = vld [vmem:[%s4517_s29 + $0x28] sm:$0xff]  ;;  %v73_v5 = vld [vmem:[%s4517_s29 + $0x30] sm:$0xff] }
  0x17   :  { %v77_v4 = vpack.c.bf16 %v72_v2, %v71_v1  ;;  %v74_v6 = vld [vmem:[%s4517_s29 + $0x38] sm:$0xff]  ;;  %v67_v9 = vld [vmem:[%s4517_s29] sm:$0xff]  ;;  %v68_v11 = vld [vmem:[%s4517_s29 + $0x8] sm:$0xff] }
  0x18   :  { %v78_v7 = vpack.c.bf16 %v74_v6, %v73_v5  ;;  %v69_v12 = vld [vmem:[%s4517_s29 + $0x10] sm:$0xff]  ;;  %v70_v13 = vld [vmem:[%s4517_s29 + $0x18] sm:$0xff]  ;;  %v75_v14 = vpack.c.bf16 %v68_v11, %v67_v9 }
  0x19   :  { %3092 = vmatprep.mubr.msk.bf16.mxu1 %vm80_vm1, %v77_v4  ;;  %v76_v15 = vpack.c.bf16 %v70_v13, %v69_v12 }
  0x1a   :  { %3093 = vmatmul.mubr.msk.bf16.vlgmr.msra.gmra.mrb[0].mxu1 %vm80_vm1, %v78_v7  ;;  %3088 = vmatprep.mubr.msk.bf16.mxu0 %vm80_vm1, %v75_v14 }
  0x1b   :  { %3097 = vmatpush3.bf16.msra.mxu1 %v3790_v8  ;;  %3089 = vmatmul.mubr.msk.bf16.vlgmr.msra.gmra.mrb[0].mxu0 %vm80_vm1, %v76_v15 }
  0x1c   :  { %3098 = vmatprep.subr.bf16.mxu1 %v3667_v10  ;;  %3100 = vmatprep.mubr.msk.bf16.mxu1 %vm3669_vm2, %v3667_v10 }
  0x1d   :  { %3113 = vmatpush3.bf16.msra.mxu0 %v3790_v8  ;;  %3116 = vmatprep.mubr.msk.bf16.mxu0 %vm3669_vm2, %v3667_v10 }
  0x1e   :  { %3114 = vmatprep.subr.bf16.mxu0 %v3667_v10 }
  0x1f   :  { %3099 = vmatpush3.bf16.msra.mxu1 %v3809_v16 }
  0x20   :  { %3104 = vmatprep.subr.bf16.mxu1 %v3667_v10 }
  0x21   :  { %3115 = vmatpush3.bf16.msra.mxu0 %v3809_v16 }
  0x22   :  { %3101 = vmatmul.mubr.bf16.vlgmr.msra.gmra.mrb[4].mxu1 %v3668_v17  ;;  %3128 = vmatprep.subr.bf16.mxu0 %v3667_v10 }
  0x23   :  { %3105 = vmatpush3.bf16.msra.mxu1 %v3790_v8  ;;  %3108 = vmatprep.mubr.msk.bf16.mxu1 %vm3669_vm2, %v3667_v10 }
  0x24   :  { %3106 = vmatprep.subr.bf16.mxu1 %v3667_v10 }
  0x27   :  { %3107 = vmatpush3.bf16.msra.mxu1 %v3809_v16 }
  0x28   :  { %3120 = vmatprep.subr.bf16.mxu1 %v3667_v10 }
  0xed   :  { %v3836_v18 = vpop.f32.mrb[0].mxu1 }
  0xee   :  { %v3838_v19 = vpop.f32.mrb[1].mxu1  ;;  %v3842_v21 = vpop.f32.mrb[0].mxu0 }
  0xef   :  { %v3840_v20 = vpop.f32.mrb[2].mxu1  ;;  %v131_v23 = vpop.f32.mrb[1].mxu0 }
  0xf0   :  { %v3844_v22 = vpop.f32.mrb[3].mxu1  ;;  %v3846_v24 = vpop.f32.mrb[2].mxu0 }
  0xf1   :  { %v134_v25 = vpop.f32.mrb[3].mxu0 }
  0xf5   :  { %v217_v27 = vpop.f32.mrb[4].mxu1 }
  0xf6   :  { %v223_v28 = vadd.f32 %v217_v27, %v131_v23  ;;  %v3102_v29 = vpop.f32.mrb[5].mxu1 }
  0xf7   :  { %v220_v30 = vpop.f32.mrb[6].mxu1 }
  0xf8   :  { %v230_v31 = vadd.f32 %v3851_v26, %v223_v28  ;;  %v3103_v32 = vpop.f32.mrb[7].mxu1 }
  0xfa   :  { %3458 = vtanh.f32 %v230_v31  ;;  %v2854_v34 = vmul.f32 -1.442695, %v230_v31 }
  0xfc   :  { %3460 = vpow2.f32 %v2854_v34 }
 0x104   :  { %v3459_v33 = vpop.eup %3458 }
 0x105   :  { %240 = vrot.lane.b32.xlu0 %v3459_v33, %s3670_s18 }
 0x106   :  { %v3461_v35 = vpop.eup %3460 }
 0x107   :  { %v234_v36 = vadd.f32 1.0, %v3461_v35 }
 0x109   :  { %3462 = vrcp.f32 %v234_v36 }
 0x113   :  { %v3463_v37 = vpop.eup %3462 }
 0x114   :  { %v238_v40 = vmul.f32 0.0, %v3463_v37 }
 0x177   :  { %v241_v38 = vpop.permute.xlu0 %240 }
 0x178   :  { %v243_v39 = vmul.f32 %v3463_v37, %v241_v38 }
 0x17a   :  { %245 = vrot.lane.b32.xlu0 %v243_v39, %s3671_s1 }
 0x1ec   :  { %v246_v41 = vpop.permute.xlu0 %245 }
 0x1ed   :  { %v248_v42 = vadd.f32 %v246_v41, %v238_v40 }
 0x1ef   :  { %3464 = vtanh.f32 %v248_v42 }
 0x1f9   :  { %v3465_v43 = vpop.eup %3464 }
 0x1fa   :  { %251 = vrot.lane.b32.xlu1 %v3465_v43, %s3670_s18 }
 0x26c   :  { %v252_v44 = vpop.permute.xlu1 %251 }
 0x26d   :  { %v3857_v45 = vmul.f32 %v3463_v37, %v252_v44 }
 0x26f   :  { %v255_v46 = vpack.c.bf16 %v3857_v45, %v3857_v45 }
 0x271   :  { %257 = vrot.lane.b32.xlu1 %v255_v46, %s3671_s1 }
 0x2e3   :  { %v258_v47 = vpop.permute.xlu1 %257 }
 0x2e4   :  { %3109 = vmatmul.mubr.msk.bf16.vlgmr.msra.gmra.mrb[8].mxu1 %vm179_vm3, %v258_v47 }
 0x2e5   :  { %3121 = vmatpush3.bf16.msra.mxu1 %v3790_v8  ;;  %3124 = vmatprep.mubr.msk.bf16.mxu1 %vm3669_vm2, %v3667_v10 }
 0x2e6   :  { %3122 = vmatprep.subr.bf16.mxu1 %v3667_v10 }
 0x2e9   :  { %3123 = vmatpush3.bf16.msra.mxu1 %v3809_v16 }
 0x2ea   :  { %3136 = vmatprep.subr.bf16.mxu1 %v3667_v10 }
 0x3b7   :  { %v296_v48 = vpop.f32.mrb[8].mxu1 }
 0x3b8   :  { %v302_v49 = vadd.f32 %v296_v48, %v134_v25  ;;  %v3110_v50 = vpop.f32.mrb[9].mxu1 }
 0x3b9   :  { %v299_v51 = vpop.f32.mrb[10].mxu1 }
 0x3ba   :  { %v303_v52 = vadd.f32 %v3851_v26, %v302_v49  ;;  %v3111_v53 = vpop.f32.mrb[11].mxu1 }
 0x3bc   :  { %3466 = vtanh.f32 %v303_v52  ;;  %v2856_v55 = vmul.f32 -1.442695, %v303_v52 }
 0x3be   :  { %3468 = vpow2.f32 %v2856_v55 }
 0x3c6   :  { %v3467_v54 = vpop.eup %3466 }
 0x3c7   :  { %313 = vrot.lane.b32.xlu0 %v3467_v54, %s3670_s18 }
 0x3c8   :  { %v3469_v56 = vpop.eup %3468 }
 0x3c9   :  { %v307_v57 = vadd.f32 1.0, %v3469_v56 }
 0x3cb   :  { %3470 = vrcp.f32 %v307_v57 }
 0x3d5   :  { %v3471_v58 = vpop.eup %3470 }
 0x3d6   :  { %v311_v61 = vmul.f32 %v3471_v58, %v248_v42 }
 0x439   :  { %v314_v59 = vpop.permute.xlu0 %313 }
 0x43a   :  { %v316_v60 = vmul.f32 %v3471_v58, %v314_v59 }
 0x43c   :  { %318 = vrot.lane.b32.xlu1 %v316_v60, %s3671_s1 }
 0x4ae   :  { %v319_v62 = vpop.permute.xlu1 %318 }
 0x4af   :  { %v321_v63 = vadd.f32 %v319_v62, %v311_v61 }
 0x4b1   :  { %3472 = vtanh.f32 %v321_v63 }
 0x4bb   :  { %v3473_v0 = vpop.eup %3472 }
 0x4bc   :  { %324 = vrot.lane.b32.xlu0 %v3473_v0, %s3670_s18 }
 0x52e   :  { %v325_v1 = vpop.permute.xlu0 %324 }
 0x52f   :  { %v3873_v2 = vmul.f32 %v3471_v58, %v325_v1 }
 0x531   :  { %v328_v3 = vpack.c.bf16 %v3873_v2, %v3873_v2 }
 0x533   :  { %330 = vrot.lane.b32.xlu1 %v328_v3, %s3671_s1 }
 0x5a5   :  { %v331_v4 = vpop.permute.xlu1 %330 }
 0x5a6   :  { %3117 = vmatmul.mubr.msk.bf16.vlgmr.msra.gmra.mrb[4].mxu0 %vm179_vm3, %v331_v4 }
 0x5a7   :  { %3129 = vmatpush3.bf16.msra.mxu0 %v3790_v8  ;;  %3132 = vmatprep.mubr.msk.bf16.mxu0 %vm3669_vm2, %v3667_v10 }
 0x5a8   :  { %3130 = vmatprep.subr.bf16.mxu0 %v3667_v10 }
 0x5ab   :  { %3131 = vmatpush3.bf16.msra.mxu0 %v3809_v16 }
 0x5ac   :  { %3144 = vmatprep.subr.bf16.mxu0 %v3667_v10 }
 0x679   :  { %v369_v5 = vpop.f32.mrb[4].mxu0 }
 0x67a   :  { %v375_v6 = vadd.f32 %v3842_v21, %v369_v5  ;;  %v3118_v7 = vpop.f32.mrb[5].mxu0 }
 0x67b   :  { %v372_v9 = vpop.f32.mrb[6].mxu0 }
 0x67c   :  { %v376_v11 = vadd.f32 %v3851_v26, %v375_v6  ;;  %v3119_v12 = vpop.f32.mrb[7].mxu0 }
 0x67e   :  { %3474 = vtanh.f32 %v376_v11  ;;  %v2858_v14 = vmul.f32 -1.442695, %v376_v11 }
 0x680   :  { %3476 = vpow2.f32 %v2858_v14 }
 0x688   :  { %v3475_v13 = vpop.eup %3474 }
 0x689   :  { %386 = vrot.lane.b32.xlu0 %v3475_v13, %s3670_s18 }
 0x68a   :  { %v3477_v15 = vpop.eup %3476 }
 0x68b   :  { %v380_v23 = vadd.f32 1.0, %v3477_v15 }
 0x68d   :  { %3478 = vrcp.f32 %v380_v23 }
 0x697   :  { %v3479_v25 = vpop.eup %3478 }
 0x698   :  { %v384_v21 = vmul.f32 %v3479_v25, %v321_v63 }
 0x6fb   :  { %v387_v27 = vpop.permute.xlu0 %386 }
 0x6fc   :  { %v389_v28 = vmul.f32 %v3479_v25, %v387_v27 }
 0x6fe   :  { %391 = vrot.lane.b32.xlu1 %v389_v28, %s3671_s1 }
 0x770   :  { %v392_v29 = vpop.permute.xlu1 %391 }
 0x771   :  { %v394_v30 = vadd.f32 %v392_v29, %v384_v21 }
 0x773   :  { %3480 = vtanh.f32 %v394_v30 }
 0x77d   :  { %v3481_v31 = vpop.eup %3480 }
 0x77e   :  { %397 = vrot.lane.b32.xlu0 %v3481_v31, %s3670_s18 }
 0x7f0   :  { %v398_v32 = vpop.permute.xlu0 %397 }
 0x7f1   :  { %v3890_v33 = vmul.f32 %v3479_v25, %v398_v32 }
 0x7f3   :  { %v401_v34 = vpack.c.bf16 %v3890_v33, %v3890_v33 }
 0x7f5   :  { %403 = vrot.lane.b32.xlu1 %v401_v34, %s3671_s1 }
 0x867   :  { %v404_v35 = vpop.permute.xlu1 %403 }
 0x868   :  { %3125 = vmatmul.mubr.msk.bf16.vlgmr.msra.gmra.mrb[12].mxu1 %vm179_vm3, %v404_v35 }
 0x869   :  { %3137 = vmatpush3.bf16.msra.mxu1 %v3790_v8  ;;  %3140 = vmatprep.mubr.msk.bf16.mxu1 %vm3669_vm2, %v3667_v10 }
 0x86a   :  { %3138 = vmatprep.subr.bf16.mxu1 %v3667_v10 }
 0x86d   :  { %3139 = vmatpush3.bf16.msra.mxu1 %v3809_v16 }
 0x86e   :  { %3152 = vmatprep.subr.bf16.mxu1 %v3667_v10 }
 0x93b   :  { %v442_v36 = vpop.f32.mrb[12].mxu1 }
 0x93c   :  { %v448_v37 = vadd.f32 %v3846_v24, %v442_v36  ;;  %v3126_v38 = vpop.f32.mrb[13].mxu1 }
 0x93d   :  { %v445_v39 = vpop.f32.mrb[14].mxu1 }
 0x93e   :  { %v449_v40 = vadd.f32 %v3851_v26, %v448_v37  ;;  %v3127_v41 = vpop.f32.mrb[15].mxu1 }
 0x940   :  { %3482 = vtanh.f32 %v449_v40  ;;  %v2860_v43 = vmul.f32 -1.442695, %v449_v40 }
 0x942   :  { %3484 = vpow2.f32 %v2860_v43 }
 0x94a   :  { %v3483_v42 = vpop.eup %3482 }
 0x94b   :  { %459 = vrot.lane.b32.xlu0 %v3483_v42, %s3670_s18 }
 0x94c   :  { %v3485_v44 = vpop.eup %3484 }
 0x94d   :  { %v453_v46 = vadd.f32 1.0, %v3485_v44 }
 0x94f   :  { %3486 = vrcp.f32 %v453_v46 }
 0x959   :  { %v3487_v47 = vpop.eup %3486 }
 0x95a   :  { %v457_v24 = vmul.f32 %v3487_v47, %v394_v30 }
 0x9bd   :  { %v460_v48 = vpop.permute.xlu0 %459 }
 0x9be   :  { %v462_v49 = vmul.f32 %v3487_v47, %v460_v48 }
 0x9c0   :  { %464 = vrot.lane.b32.xlu1 %v462_v49, %s3671_s1 }
 0xa32   :  { %v465_v50 = vpop.permute.xlu1 %464 }
 0xa33   :  { %v467_v51 = vadd.f32 %v465_v50, %v457_v24 }
 0xa35   :  { %3488 = vtanh.f32 %v467_v51 }
 0xa3f   :  { %v3489_v52 = vpop.eup %3488 }
 0xa40   :  { %470 = vrot.lane.b32.xlu0 %v3489_v52, %s3670_s18 }
 0xab2   :  { %v471_v53 = vpop.permute.xlu0 %470 }
 0xab3   :  { %v3907_v54 = vmul.f32 %v3487_v47, %v471_v53 }
 0xab5   :  { %v474_v55 = vpack.c.bf16 %v3907_v54, %v3907_v54 }
 0xab7   :  { %476 = vrot.lane.b32.xlu1 %v474_v55, %s3671_s1 }
 0xb29   :  { %v477_v56 = vpop.permute.xlu1 %476 }
 0xb2a   :  { %3133 = vmatmul.mubr.msk.bf16.vlgmr.msra.gmra.mrb[8].mxu0 %vm179_vm3, %v477_v56 }
 0xb2b   :  { %3145 = vmatpush3.bf16.msra.mxu0 %v3790_v8  ;;  %3148 = vmatprep.mubr.msk.bf16.mxu0 %vm3669_vm2, %v3667_v10 }
 0xb2c   :  { %3146 = vmatprep.subr.bf16.mxu0 %v3667_v10 }
 0xb2f   :  { %3147 = vmatpush3.bf16.msra.mxu0 %v3809_v16 }
 0xbfd   :  { %v515_v57 = vpop.f32.mrb[8].mxu0 }
 0xbfe   :  { %v521_v58 = vadd.f32 %v515_v57, %v3838_v19  ;;  %v3134_v59 = vpop.f32.mrb[9].mxu0 }
 0xbff   :  { %v518_v60 = vpop.f32.mrb[10].mxu0  ;;  %v3448_v59 = vld [vmem:[%s4500_s2] sm:$0xff]  }
 0xc00   :  { %v522_v61 = vadd.f32 %v3851_v26, %v521_v58  ;;  %v3135_v62 = vpop.f32.mrb[11].mxu0  ;;  %3160 = vmatprep.subr.bf16.mxu0 %v3448_v59 }
 0xc01   :  { %v3449_v62 = vld [vmem:[%s4500_s2 + $0x8] sm:$0xff]  }
 0xc02   :  { %3490 = vtanh.f32 %v522_v61  ;;  %v2862_v0 = vmul.f32 -1.442695, %v522_v61  ;;  %v766_v61 = vpack.c.bf16 %v3873_v2, %v3857_v45  ;;  %v767_v45 = vpack.c.bf16 %v3907_v54, %v3890_v33  ;;  %v3976_v2 = vld [vmem:[%s4501_s3 + $0x10] sm:$0xff]  }
 0xc04   :  { %3492 = vpow2.f32 %v2862_v0 }
 0xc0c   :  { %v3491_v63 = vpop.eup %3490 }
 0xc0d   :  { %532 = vrot.lane.b32.xlu0 %v3491_v63, %s3670_s18 }
 0xc0e   :  { %v3493_v1 = vpop.eup %3492 }
 0xc0f   :  { %v526_v3 = vadd.f32 1.0, %v3493_v1 }
 0xc11   :  { %3494 = vrcp.f32 %v526_v3 }
 0xc1b   :  { %v3495_v4 = vpop.eup %3494 }
 0xc1c   :  { %v530_v19 = vmul.f32 %v3495_v4, %v467_v51 }
 0xc7f   :  { %v533_v5 = vpop.permute.xlu0 %532 }
 0xc80   :  { %v535_v6 = vmul.f32 %v3495_v4, %v533_v5  ;;  %v3983_v5 = vld [vmem:[%s4501_s3 + $0x18] sm:$0xff]  }
 0xc82   :  { %537 = vrot.lane.b32.xlu1 %v535_v6, %s3671_s1 }
 0xcf4   :  { %v538_v7 = vpop.permute.xlu1 %537 }
 0xcf5   :  { %v540_v9 = vadd.f32 %v538_v7, %v530_v19 }
 0xcf7   :  { %3496 = vtanh.f32 %v540_v9 }
 0xd01   :  { %v3497_v11 = vpop.eup %3496 }
 0xd02   :  { %543 = vrot.lane.b32.xlu0 %v3497_v11, %s3670_s18 }
 0xd74   :  { %v544_v12 = vpop.permute.xlu0 %543 }
 0xd75   :  { %v3923_v13 = vmul.f32 %v3495_v4, %v544_v12 }
 0xd77   :  { %v547_v14 = vpack.c.bf16 %v3923_v13, %v3923_v13 }
 0xd79   :  { %549 = vrot.lane.b32.xlu1 %v547_v14, %s3671_s1 }
 0xdeb   :  { %v550_v15 = vpop.permute.xlu1 %549 }
 0xdec   :  { %3141 = vmatmul.mubr.msk.bf16.vlgmr.msra.gmra.mrb[16].mxu1 %vm179_vm3, %v550_v15 }
 0xded   :  { %3153 = vmatpush3.bf16.msra.mxu1 %v3790_v8  ;;  %3156 = vmatprep.mubr.msk.bf16.mxu1 %vm3669_vm2, %v3667_v10 }
 0xdee   :  { %3154 = vmatprep.subr.bf16.mxu1 %v3667_v10 }
 0xdf1   :  { %3155 = vmatpush3.bf16.msra.mxu1 %v3809_v16 }
 0xdf2   :  { %3172 = vmatprep.subr.bf16.mxu1 %v3667_v10 }
 0xebf   :  { %v588_v23 = vpop.f32.mrb[16].mxu1 }
 0xec0   :  { %v594_v25 = vadd.f32 %v588_v23, %v3844_v22  ;;  %v3142_v27 = vpop.f32.mrb[17].mxu1  ;;  %v4010_v23 = vld [vmem:[%s4502_s4 + $0x1] ss:$0 sm:$0xff] }
 0xec1   :  { %v591_v28 = vpop.f32.mrb[18].mxu1 }
 0xec2   :  { %v595_v21 = vadd.f32 %v3851_v26, %v594_v25  ;;  %v3143_v29 = vpop.f32.mrb[19].mxu1 }
 0xec4   :  { %3498 = vtanh.f32 %v595_v21  ;;  %v2864_v8 = vmul.f32 -1.442695, %v595_v21 }
 0xec6   :  { %3500 = vpow2.f32 %v2864_v8 }
 0xece   :  { %v3499_v30 = vpop.eup %3498 }
 0xecf   :  { %605 = vrot.lane.b32.xlu0 %v3499_v30, %s3670_s18 }
 0xed0   :  { %v3501_v31 = vpop.eup %3500 }
 0xed1   :  { %v599_v32 = vadd.f32 1.0, %v3501_v31 }
 0xed3   :  { %3502 = vrcp.f32 %v599_v32 }
 0xedd   :  { %v3503_v16 = vpop.eup %3502 }
 0xede   :  { %v603_v22 = vmul.f32 %v3503_v16, %v540_v9 }
 0xf41   :  { %v606_v34 = vpop.permute.xlu0 %605 }
 0xf42   :  { %v608_v35 = vmul.f32 %v3503_v16, %v606_v34 }
 0xf44   :  { %610 = vrot.lane.b32.xlu1 %v608_v35, %s3671_s1 }
 0xfb6   :  { %v611_v36 = vpop.permute.xlu1 %610 }
 0xfb7   :  { %v613_v37 = vadd.f32 %v611_v36, %v603_v22 }
 0xfb9   :  { %3504 = vtanh.f32 %v613_v37 }
 0xfc3   :  { %v3505_v38 = vpop.eup %3504 }
 0xfc4   :  { %616 = vrot.lane.b32.xlu0 %v3505_v38, %s3670_s18 }
0x1036   :  { %v617_v39 = vpop.permute.xlu0 %616 }
0x1037   :  { %v3940_v40 = vmul.f32 %v3503_v16, %v617_v39 }
0x1039   :  { %v620_v41 = vpack.c.bf16 %v3940_v40, %v3940_v40 }
0x103b   :  { %622 = vrot.lane.b32.xlu1 %v620_v41, %s3671_s1 }
0x10ad   :  { %v623_v42 = vpop.permute.xlu1 %622 }
0x10ae   :  { %3149 = vmatmul.mubr.msk.bf16.vlgmr.msra.gmra.mrb[12].mxu0 %vm179_vm3, %v623_v42 }
0x10af   :  { %3161 = vmatpush3.bf16.msra.mxu0 %v3448_v59 }
0x10b0   :  { %3162 = vmatprep.subr.bf16.mxu0 %v3449_v62 }
0x10b3   :  { %3163 = vmatpush3.bf16.msra.mxu0 %v3449_v62 }
0x10b4   :  { %3188 = vmatprep.subr.bf16.mxu0 %v3667_v10 }
0x1181   :  { %v661_v43 = vpop.f32.mrb[12].mxu0 }
0x1182   :  { %v667_v44 = vadd.f32 %v3836_v18, %v661_v43  ;;  %v3150_v46 = vpop.f32.mrb[13].mxu0 }
0x1183   :  { %v664_v47 = vpop.f32.mrb[14].mxu0 }
0x1184   :  { %v668_v48 = vadd.f32 %v3851_v26, %v667_v44  ;;  %v3151_v49 = vpop.f32.mrb[15].mxu0 }
0x1186   :  { %3506 = vtanh.f32 %v668_v48  ;;  %v2866_v50 = vmul.f32 -1.442695, %v668_v48 }
0x1188   :  { %3508 = vpow2.f32 %v2866_v50 }
0x1190   :  { %v3507_v24 = vpop.eup %3506 }
0x1191   :  { %678 = vrot.lane.b32.xlu0 %v3507_v24, %s3670_s18 }
0x1192   :  { %v3509_v51 = vpop.eup %3508 }
0x1193   :  { %v672_v52 = vadd.f32 1.0, %v3509_v51 }
0x1195   :  { %3510 = vrcp.f32 %v672_v52 }
0x119f   :  { %v3511_v53 = vpop.eup %3510 }
0x11a0   :  { %v676_v18 = vmul.f32 %v3511_v53, %v613_v37 }
0x1203   :  { %v679_v55 = vpop.permute.xlu0 %678 }
0x1204   :  { %v681_v56 = vmul.f32 %v3511_v53, %v679_v55 }
0x1206   :  { %683 = vrot.lane.b32.xlu1 %v681_v56, %s3671_s1  ;;  %v768_v56 = vpack.c.bf16 %v3940_v40, %v3923_v13 }
0x1278   :  { %v684_v57 = vpop.permute.xlu1 %683 }
0x1279   :  { %v3950_v58 = vadd.f32 %v684_v57, %v676_v18 }
0x127b   :  { %3512 = vtanh.f32 %v3950_v58 }
0x1285   :  { %v3513_v60 = vpop.eup %3512 }
0x1286   :  { %689 = vrot.lane.b32.xlu0 %v3513_v60, %s3670_s18 }
0x128a   :  { %778 = vrot.lane.b32.xlu0 %v766_v61, %s3671_s1 }
0x12f8   :  { %v690_v63 = vpop.permute.xlu0 %689 }
0x12f9   :  { %v3964_v0 = vmul.f32 %v3511_v53, %v690_v63 }
0x12fb   :  { %v693_v1 = vpack.c.bf16 %v3964_v0, %v3964_v0 }
0x12fc   :  { %v779_v3 = vpop.permute.xlu0 %778 }
0x12fd   :  { %695 = vrot.lane.b32.xlu1 %v693_v1, %s3671_s1  ;;  %3164 = vmatprep.mubr.msk.bf16.mxu0 %vm179_vm3, %v779_v3 }
0x1301   :  { %780 = vrot.lane.b32.xlu1 %v767_v45, %s3671_s1 }
0x136f   :  { %v696_v4 = vpop.permute.xlu1 %695 }
0x1370   :  { %3157 = vmatmul.mubr.msk.bf16.vlgmr.msra.gmra.mrb[20].mxu1 %vm179_vm3, %v696_v4 }
0x1371   :  { %3173 = vmatpush3.bf16.msra.mxu1 %v3976_v2  ;;  %3176 = vmatprep.mubr.msk.bf16.mxu1 %vm3669_vm2, %v3667_v10 }
0x1372   :  { %3174 = vmatprep.subr.bf16.mxu1 %v3667_v10 }
0x1373   :  { %v781_v33 = vpop.permute.xlu1 %780 }
0x1374   :  { %3165 = vmatmul.mubr.msk.bf16.vlgmr.msra.gmra.mrb[16].mxu0 %vm179_vm3, %v781_v33 }
0x1375   :  { %3175 = vmatpush3.bf16.msra.mxu1 %v3983_v5  ;;  %3189 = vmatpush3.bf16.msra.mxu0 %v3976_v2 }
0x1376   :  { %3180 = vmatprep.subr.bf16.mxu1 %v3667_v10  ;;  %3190 = vmatprep.subr.bf16.mxu0 %v3667_v10 }
0x1378   :  { %3177 = vmatmul.mubr.bf16.vlgmr.msra.gmra.mrb[24].mxu1 %v3668_v17 }
0x1379   :  { %3181 = vmatpush3.bf16.msra.mxu1 %v3976_v2  ;;  %3184 = vmatprep.mubr.msk.bf16.mxu1 %vm3669_vm2, %v3667_v10 }
0x137a   :  { %3182 = vmatprep.subr.bf16.mxu1 %v3667_v10  ;;  %3191 = vmatpush3.bf16.msra.mxu0 %v3983_v5 }
0x137b   :  { %3204 = vmatprep.subr.bf16.mxu0 %v3667_v10 }
0x137d   :  { %3183 = vmatpush3.bf16.msra.mxu1 %v3983_v5 }
0x137e   :  { %3196 = vmatprep.subr.bf16.mxu1 %v3667_v10 }
0x1443   :  { %v734_v54 = vpop.f32.mrb[20].mxu1 }
0x1444   :  { %v740_v6 = vadd.f32 %v3840_v20, %v734_v54  ;;  %v3158_v19 = vpop.f32.mrb[21].mxu1 }
0x1445   :  { %v737_v7 = vpop.f32.mrb[22].mxu1 }
0x1446   :  { %v3159_v9 = vpop.f32.mrb[23].mxu1  ;;  %v741_v38 = vadd.f32 %v3851_v26, %v740_v6 }
0x1447   :  { %v4003_v11 = vpop.f32.mrb[16].mxu0 }
0x1448   :  { %v844_v12 = vpop.f32.mrb[17].mxu0  ;;  %v2868_v42 = vmul.f32 -1.442695, %v741_v38 }
0x1449   :  { %v4005_v14 = vpop.f32.mrb[18].mxu0 }
0x144a   :  { %v847_v15 = vpop.f32.mrb[19].mxu0 }
0x144b   :  { %v928_v25 = vpop.f32.mrb[24].mxu1 }
0x144c   :  { %v934_v27 = vadd.f32 %v928_v25, %v844_v12  ;;  %v3178_v28 = vpop.f32.mrb[25].mxu1 }
0x144d   :  { %v931_v21 = vpop.f32.mrb[26].mxu1 }
0x144e   :  { %v941_v20 = vadd.f32 %v4010_v23, %v934_v27  ;;  %v3179_v29 = vpop.f32.mrb[27].mxu1 }
0x1450   :  { %3514 = vtanh.f32 %v941_v20  ;;  %v2883_v8 = vmul.f32 -1.442695, %v941_v20 }
0x1452   :  { %3516 = vpow2.f32 %v2883_v8 }
0x145a   :  { %v3515_v30 = vpop.eup %3514 }
0x145b   :  { %951 = vrot.lane.b32.xlu0 %v3515_v30, %s3670_s18 }
0x145c   :  { %v3517_v31 = vpop.eup %3516 }
0x145d   :  { %v945_v32 = vadd.f32 1.0, %v3517_v31 }
0x145f   :  { %3518 = vrcp.f32 %v945_v32 }
0x1469   :  { %v3519_v16 = vpop.eup %3518 }
0x146a   :  { %v949_v22 = vmul.f32 0.0, %v3519_v16 }
0x14cd   :  { %v952_v34 = vpop.permute.xlu0 %951 }
0x14ce   :  { %v954_v35 = vmul.f32 %v3519_v16, %v952_v34 }
0x14d0   :  { %956 = vrot.lane.b32.xlu1 %v954_v35, %s3671_s1 }
0x1542   :  { %v957_v36 = vpop.permute.xlu1 %956 }
0x1543   :  { %v959_v37 = vadd.f32 %v957_v36, %v949_v22 }
0x1545   :  { %3520 = vtanh.f32 %v959_v37 }
0x1546   :  { %3522 = vtanh.f32 %v741_v38 }
0x1547   :  { %3524 = vpow2.f32 %v2868_v42 }
0x154f   :  { %v3521_v39 = vpop.eup %3520 }
0x1550   :  { %962 = vrot.lane.b32.xlu0 %v3521_v39, %s3670_s18  ;;  %v3523_v41 = vpop.eup %3522 }
0x1551   :  { %v3525_v43 = vpop.eup %3524 }
0x1552   :  { %v745_v44 = vadd.f32 1.0, %v3525_v43 }
0x1554   :  { %751 = vrot.lane.b32.xlu0 %v3523_v41, %s3670_s18  ;;  %3526 = vrcp.f32 %v745_v44 }
0x155e   :  { %v3527_v26 = vpop.eup %3526 }
0x155f   :  { %v749_v51 = vmul.f32 %v3527_v26, %v3950_v58 }
0x15c2   :  { %v963_v46 = vpop.permute.xlu0 %962 }
0x15c3   :  { %v4018_v47 = vmul.f32 %v3519_v16, %v963_v46 }
0x15c5   :  { %v966_v48 = vpack.c.bf16 %v4018_v47, %v4018_v47 }
0x15c6   :  { %v752_v49 = vpop.permute.xlu0 %751 }
0x15c7   :  { %v754_v24 = vmul.f32 %v3527_v26, %v752_v49  ;;  %968 = vrot.lane.b32.xlu1 %v966_v48, %s3671_s1 }
0x15c9   :  { %756 = vrot.lane.b32.xlu0 %v754_v24, %s3671_s1 }
0x1639   :  { %v969_v50 = vpop.permute.xlu1 %968 }
0x163a   :  { %3185 = vmatmul.mubr.msk.bf16.vlgmr.msra.gmra.mrb[28].mxu1 %vm179_vm3, %v969_v50 }
0x163b   :  { %v757_v52 = vpop.permute.xlu0 %756  ;;  %3197 = vmatpush3.bf16.msra.mxu1 %v3976_v2  ;;  %3200 = vmatprep.mubr.msk.bf16.mxu1 %vm3669_vm2, %v3667_v10 }
0x163c   :  { %v759_v53 = vadd.f32 %v757_v52, %v749_v51  ;;  %3198 = vmatprep.subr.bf16.mxu1 %v3667_v10 }
0x163e   :  { %3528 = vtanh.f32 %v759_v53 }
0x163f   :  { %3199 = vmatpush3.bf16.msra.mxu1 %v3983_v5 }
0x1640   :  { %3212 = vmatprep.subr.bf16.mxu1 %v3667_v10 }
0x1648   :  { %v3529_v55 = vpop.eup %3528 }
0x1649   :  { %762 = vrot.lane.b32.xlu0 %v3529_v55, %s3670_s18 }
0x164d   :  { %782 = vrot.lane.b32.xlu0 %v768_v56, %s3671_s1 }
0x16bb   :  { %v763_v18 = vpop.permute.xlu0 %762 }
0x16bc   :  { %v765_v7 = vmul.f32 %v3527_v26, %v763_v18 }
0x16be   :  { %v769_v12 = vpack.c.bf16 %v765_v7, %v3964_v0 }
0x16bf   :  { %v783_v57 = vpop.permute.xlu0 %782 }
0x16c0   :  { %3168 = vmatprep.mubr.msk.bf16.mxu0 %vm179_vm3, %v783_v57 }
0x170d   :  { %v1007_v58 = vpop.f32.mrb[28].mxu1 }
0x170e   :  { %v1013_v59 = vadd.f32 %v1007_v58, %v847_v15  ;;  %v3186_v60 = vpop.f32.mrb[29].mxu1 }
0x170f   :  { %v1010_v61 = vpop.f32.mrb[30].mxu1 }
0x1710   :  { %v1014_v62 = vadd.f32 %v4010_v23, %v1013_v59  ;;  %v3187_v63 = vpop.f32.mrb[31].mxu1 }
0x1712   :  { %3530 = vtanh.f32 %v1014_v62  ;;  %v2885_v3 = vmul.f32 -1.442695, %v1014_v62 }
0x1714   :  { %3532 = vpow2.f32 %v2885_v3 }
0x171c   :  { %v3531_v1 = vpop.eup %3530 }
0x171d   :  { %1024 = vrot.lane.b32.xlu1 %v3531_v1, %s3670_s18 }
0x171e   :  { %v3533_v13 = vpop.eup %3532 }
0x171f   :  { %v1018_v40 = vadd.f32 1.0, %v3533_v13 }
0x1721   :  { %3534 = vrcp.f32 %v1018_v40 }
0x172b   :  { %v3535_v45 = vpop.eup %3534 }
0x172c   :  { %v1022_v54 = vmul.f32 %v3535_v45, %v959_v37 }
0x178f   :  { %v1025_v4 = vpop.permute.xlu1 %1024 }
0x1790   :  { %v1027_v33 = vmul.f32 %v3535_v45, %v1025_v4 }
0x1792   :  { %1029 = vrot.lane.b32.xlu1 %v1027_v33, %s3671_s1 }
0x1804   :  { %v1030_v6 = vpop.permute.xlu1 %1029 }
0x1805   :  { %v1032_v19 = vadd.f32 %v1030_v6, %v1022_v54 }
0x1807   :  { %3536 = vtanh.f32 %v1032_v19 }
0x1811   :  { %v3537_v9 = vpop.eup %3536 }
0x1812   :  { %1035 = vrot.lane.b32.xlu1 %v3537_v9, %s3670_s18 }
0x1816   :  { %784 = vrot.lane.b32.xlu1 %v769_v12, %s3671_s1 }
0x1884   :  { %v1036_v15 = vpop.permute.xlu1 %1035 }
0x1885   :  { %v4043_v25 = vmul.f32 %v3535_v45, %v1036_v15 }
0x1887   :  { %v1039_v27 = vpack.c.bf16 %v4043_v25, %v4043_v25 }
0x1888   :  { %v785_v28 = vpop.permute.xlu1 %784 }
0x1889   :  { %1041 = vrot.lane.b32.xlu0 %v1039_v27, %s3671_s1  ;;  %3169 = vmatmul.mubr.msk.bf16.gmra.mrb[20].mxu0 %vm179_vm3, %v785_v28 }
0x188a   :  { %3192 = vmatprep.mubr.msk.bf16.mxu0 %vm3669_vm2, %v3667_v10 }
0x18fb   :  { %v1042_v21 = vpop.permute.xlu0 %1041 }
0x18fc   :  { %3193 = vmatmul.mubr.msk.bf16.vlgmr.msra.gmra.mrb[24].mxu0 %vm179_vm3, %v1042_v21 }
0x18fd   :  { %3205 = vmatpush3.bf16.msra.mxu0 %v3976_v2  ;;  %3208 = vmatprep.mubr.msk.bf16.mxu0 %vm3669_vm2, %v3667_v10 }
0x18fe   :  { %3206 = vmatprep.subr.bf16.mxu0 %v3667_v10 }
0x1901   :  { %3207 = vmatpush3.bf16.msra.mxu0 %v3983_v5 }
0x1902   :  { %3220 = vmatprep.subr.bf16.mxu0 %v3667_v10 }
0x195c   :  { %v4058_v0 = vpop.f32.mrb[20].mxu0 }
0x195d   :  { %v4060_v20 = vpop.f32.mrb[21].mxu0 }
0x195e   :  { %v4062_v29 = vpop.f32.mrb[22].mxu0 }
0x195f   :  { %v4064_v30 = vpop.f32.mrb[23].mxu0 }
0x19cf   :  { %v1080_v8 = vpop.f32.mrb[24].mxu0 }
0x19d0   :  { %v1086_v31 = vadd.f32 %v4003_v11, %v1080_v8  ;;  %v3194_v32 = vpop.f32.mrb[25].mxu0 }
0x19d1   :  { %v1083_v16 = vpop.f32.mrb[26].mxu0 }
0x19d2   :  { %v1087_v34 = vadd.f32 %v4010_v23, %v1086_v31  ;;  %v3195_v35 = vpop.f32.mrb[27].mxu0 }
0x19d4   :  { %3538 = vtanh.f32 %v1087_v34  ;;  %v2887_v36 = vmul.f32 -1.442695, %v1087_v34 }
0x19d6   :  { %3540 = vpow2.f32 %v2887_v36 }
0x19de   :  { %v3539_v22 = vpop.eup %3538 }
0x19df   :  { %1097 = vrot.lane.b32.xlu1 %v3539_v22, %s3670_s18 }
0x19e0   :  { %v3541_v37 = vpop.eup %3540 }
0x19e1   :  { %v1091_v38 = vadd.f32 1.0, %v3541_v37 }
0x19e3   :  { %3542 = vrcp.f32 %v1091_v38 }
0x19ed   :  { %v3543_v39 = vpop.eup %3542 }
0x19ee   :  { %v1095_v11 = vmul.f32 %v3543_v39, %v1032_v19 }
0x1a51   :  { %v1098_v41 = vpop.permute.xlu1 %1097 }
0x1a52   :  { %v1100_v42 = vmul.f32 %v3543_v39, %v1098_v41 }
0x1a54   :  { %1102 = vrot.lane.b32.xlu0 %v1100_v42, %s3671_s1 }
0x1ac6   :  { %v1103_v43 = vpop.permute.xlu0 %1102 }
0x1ac7   :  { %v1105_v44 = vadd.f32 %v1103_v43, %v1095_v11 }
0x1ac9   :  { %3544 = vtanh.f32 %v1105_v44 }
0x1ad3   :  { %v3545_v46 = vpop.eup %3544 }
0x1ad4   :  { %1108 = vrot.lane.b32.xlu1 %v3545_v46, %s3670_s18 }
0x1b46   :  { %v1109_v48 = vpop.permute.xlu1 %1108 }
0x1b47   :  { %v4071_v26 = vmul.f32 %v3543_v39, %v1109_v48 }
0x1b49   :  { %v1112_v49 = vpack.c.bf16 %v4071_v26, %v4071_v26 }
0x1b4b   :  { %1114 = vrot.lane.b32.xlu0 %v1112_v49, %s3671_s1 }
0x1bbd   :  { %v1115_v24 = vpop.permute.xlu0 %1114 }
0x1bbe   :  { %3201 = vmatmul.mubr.msk.bf16.vlgmr.msra.gmra.mrb[32].mxu1 %vm179_vm3, %v1115_v24 }
0x1bbf   :  { %3213 = vmatpush3.bf16.msra.mxu1 %v3976_v2  ;;  %3216 = vmatprep.mubr.msk.bf16.mxu1 %vm3669_vm2, %v3667_v10 }
0x1bc0   :  { %3214 = vmatprep.subr.bf16.mxu1 %v3667_v10 }
0x1bc3   :  { %3215 = vmatpush3.bf16.msra.mxu1 %v3983_v5 }
0x1bc4   :  { %3228 = vmatprep.subr.bf16.mxu1 %v3667_v10 }
0x1c91   :  { %v1153_v50 = vpop.f32.mrb[32].mxu1 }
0x1c92   :  { %v1159_v51 = vadd.f32 %v4005_v14, %v1153_v50  ;;  %v3202_v52 = vpop.f32.mrb[33].mxu1 }
0x1c93   :  { %v1156_v53 = vpop.f32.mrb[34].mxu1 }
0x1c94   :  { %v1160_v55 = vadd.f32 %v4010_v23, %v1159_v51  ;;  %v3203_v56 = vpop.f32.mrb[35].mxu1 }
0x1c96   :  { %3546 = vtanh.f32 %v1160_v55  ;;  %v2889_v57 = vmul.f32 -1.442695, %v1160_v55 }
0x1c98   :  { %3548 = vpow2.f32 %v2889_v57 }
0x1ca0   :  { %v3547_v18 = vpop.eup %3546 }
0x1ca1   :  { %1170 = vrot.lane.b32.xlu1 %v3547_v18, %s3670_s18 }
0x1ca2   :  { %v3549_v58 = vpop.eup %3548 }
0x1ca3   :  { %v1164_v59 = vadd.f32 1.0, %v3549_v58 }
0x1ca5   :  { %3550 = vrcp.f32 %v1164_v59 }
0x1caf   :  { %v3551_v60 = vpop.eup %3550 }
0x1cb0   :  { %v1168_v14 = vmul.f32 %v3551_v60, %v1105_v44 }
0x1d13   :  { %v1171_v61 = vpop.permute.xlu1 %1170 }
0x1d14   :  { %v1173_v62 = vmul.f32 %v3551_v60, %v1171_v61 }
0x1d16   :  { %1175 = vrot.lane.b32.xlu0 %v1173_v62, %s3671_s1 }
0x1d88   :  { %v1176_v63 = vpop.permute.xlu0 %1175 }
0x1d89   :  { %v1178_v1 = vadd.f32 %v1176_v63, %v1168_v14 }
0x1d8b   :  { %3552 = vtanh.f32 %v1178_v1 }
0x1d95   :  { %v3553_v3 = vpop.eup %3552 }
0x1d96   :  { %1181 = vrot.lane.b32.xlu1 %v3553_v3, %s3670_s18 }
0x1e08   :  { %v1182_v13 = vpop.permute.xlu1 %1181 }
0x1e09   :  { %v4088_v40 = vmul.f32 %v3551_v60, %v1182_v13 }
0x1e0b   :  { %v1185_v45 = vpack.c.bf16 %v4088_v40, %v4088_v40 }
0x1e0d   :  { %1187 = vrot.lane.b32.xlu0 %v1185_v45, %s3671_s1 }
0x1e7f   :  { %v1188_v4 = vpop.permute.xlu0 %1187 }
0x1e80   :  { %3209 = vmatmul.mubr.msk.bf16.vlgmr.msra.gmra.mrb[28].mxu0 %vm179_vm3, %v1188_v4 }
0x1e81   :  { %3221 = vmatpush3.bf16.msra.mxu0 %v3976_v2  ;;  %3224 = vmatprep.mubr.msk.bf16.mxu0 %vm3669_vm2, %v3667_v10 }
0x1e82   :  { %3222 = vmatprep.subr.bf16.mxu0 %v3667_v10 }
0x1e85   :  { %3223 = vmatpush3.bf16.msra.mxu0 %v3983_v5 }
0x1f53   :  { %v1226_v33 = vpop.f32.mrb[28].mxu0 }
0x1f54   :  { %v1232_v54 = vadd.f32 %v1226_v33, %v4060_v20  ;;  %v3210_v6 = vpop.f32.mrb[29].mxu0 }
0x1f55   :  { %v1229_v19 = vpop.f32.mrb[30].mxu0  ;;  %v3452_v6 = vld [vmem:[%s4500_s2 + $0x10] sm:$0xff]  }
0x1f56   :  { %v1233_v7 = vadd.f32 %v4010_v23, %v1232_v54  ;;  %v3211_v9 = vpop.f32.mrb[31].mxu0  ;;  %3236 = vmatprep.subr.bf16.mxu0 %v3452_v6 }
0x1f57   :  { %v3453_v9 = vld [vmem:[%s4500_s2 + $0x18] sm:$0xff]  }
0x1f58   :  { %3554 = vtanh.f32 %v1233_v7  ;;  %v2891_v15 = vmul.f32 -1.442695, %v1233_v7  ;;  %v1477_v7 = vpack.c.bf16 %v4043_v25, %v4018_v47  ;;  %v1478_v47 = vpack.c.bf16 %v4088_v40, %v4071_v26  ;;  %v4157_v25 = vld [vmem:[%s4501_s3 + $0x20] sm:$0xff]  }
0x1f5a   :  { %3556 = vpow2.f32 %v2891_v15 }
0x1f62   :  { %v3555_v12 = vpop.eup %3554 }
0x1f63   :  { %1243 = vrot.lane.b32.xlu1 %v3555_v12, %s3670_s18 }
0x1f64   :  { %v3557_v27 = vpop.eup %3556 }
0x1f65   :  { %v1237_v28 = vadd.f32 1.0, %v3557_v27 }
0x1f67   :  { %3558 = vrcp.f32 %v1237_v28 }
0x1f71   :  { %v3559_v21 = vpop.eup %3558 }
0x1f72   :  { %v1241_v20 = vmul.f32 %v3559_v21, %v1178_v1 }
0x1fd5   :  { %v1244_v8 = vpop.permute.xlu1 %1243 }
0x1fd6   :  { %v1246_v31 = vmul.f32 %v3559_v21, %v1244_v8  ;;  %v4164_v8 = vld [vmem:[%s4501_s3 + $0x28] sm:$0xff]  }
0x1fd8   :  { %1248 = vrot.lane.b32.xlu0 %v1246_v31, %s3671_s1 }
0x204a   :  { %v1249_v32 = vpop.permute.xlu0 %1248 }
0x204b   :  { %v1251_v16 = vadd.f32 %v1249_v32, %v1241_v20 }
0x204d   :  { %3560 = vtanh.f32 %v1251_v16 }
0x2057   :  { %v3561_v34 = vpop.eup %3560 }
0x2058   :  { %1254 = vrot.lane.b32.xlu1 %v3561_v34, %s3670_s18 }
0x20ca   :  { %v1255_v35 = vpop.permute.xlu1 %1254 }
0x20cb   :  { %v4104_v22 = vmul.f32 %v3559_v21, %v1255_v35 }
0x20cd   :  { %v1258_v36 = vpack.c.bf16 %v4104_v22, %v4104_v22 }
0x20cf   :  { %1260 = vrot.lane.b32.xlu0 %v1258_v36, %s3671_s1 }
0x2141   :  { %v1261_v37 = vpop.permute.xlu0 %1260 }
0x2142   :  { %3217 = vmatmul.mubr.msk.bf16.vlgmr.msra.gmra.mrb[36].mxu1 %vm179_vm3, %v1261_v37  ;;  %v4191_v37 = vld [vmem:[%s4502_s4 + $0x2] ss:$0 sm:$0xff] }
0x2143   :  { %3229 = vmatpush3.bf16.msra.mxu1 %v3976_v2  ;;  %3232 = vmatprep.mubr.msk.bf16.mxu1 %vm3669_vm2, %v3667_v10 }
0x2144   :  { %3230 = vmatprep.subr.bf16.mxu1 %v3667_v10 }
0x2147   :  { %3231 = vmatpush3.bf16.msra.mxu1 %v3983_v5 }
0x2148   :  { %3248 = vmatprep.subr.bf16.mxu1 %v3667_v10 }
0x2215   :  { %v1299_v38 = vpop.f32.mrb[36].mxu1 }
0x2216   :  { %v1305_v39 = vadd.f32 %v1299_v38, %v4064_v30  ;;  %v3218_v41 = vpop.f32.mrb[37].mxu1 }
0x2217   :  { %v1302_v42 = vpop.f32.mrb[38].mxu1 }
0x2218   :  { %v1306_v11 = vadd.f32 %v4010_v23, %v1305_v39  ;;  %v3219_v43 = vpop.f32.mrb[39].mxu1 }
0x221a   :  { %3562 = vtanh.f32 %v1306_v11  ;;  %v2893_v2 = vmul.f32 -1.442695, %v1306_v11 }
0x221c   :  { %3564 = vpow2.f32 %v2893_v2 }
0x2224   :  { %v3563_v44 = vpop.eup %3562 }
0x2225   :  { %1316 = vrot.lane.b32.xlu1 %v3563_v44, %s3670_s18 }
0x2226   :  { %v3565_v46 = vpop.eup %3564 }
0x2227   :  { %v1310_v48 = vadd.f32 1.0, %v3565_v46 }
0x2229   :  { %3566 = vrcp.f32 %v1310_v48 }
0x2233   :  { %v3567_v5 = vpop.eup %3566 }
0x2234   :  { %v1314_v30 = vmul.f32 %v3567_v5, %v1251_v16 }
0x2297   :  { %v1317_v49 = vpop.permute.xlu1 %1316 }
0x2298   :  { %v1319_v24 = vmul.f32 %v3567_v5, %v1317_v49 }
0x229a   :  { %1321 = vrot.lane.b32.xlu0 %v1319_v24, %s3671_s1 }
0x230c   :  { %v1322_v50 = vpop.permute.xlu0 %1321 }
0x230d   :  { %v1324_v51 = vadd.f32 %v1322_v50, %v1314_v30 }
0x230f   :  { %3568 = vtanh.f32 %v1324_v51 }
0x2319   :  { %v3569_v52 = vpop.eup %3568 }
0x231a   :  { %1327 = vrot.lane.b32.xlu1 %v3569_v52, %s3670_s18 }
0x238c   :  { %v1328_v53 = vpop.permute.xlu1 %1327 }
0x238d   :  { %v4121_v55 = vmul.f32 %v3567_v5, %v1328_v53 }
0x238f   :  { %v1331_v56 = vpack.c.bf16 %v4121_v55, %v4121_v55 }
0x2391   :  { %1333 = vrot.lane.b32.xlu0 %v1331_v56, %s3671_s1 }
0x2403   :  { %v1334_v18 = vpop.permute.xlu0 %1333 }
0x2404   :  { %3225 = vmatmul.mubr.msk.bf16.vlgmr.msra.gmra.mrb[32].mxu0 %vm179_vm3, %v1334_v18 }
0x2405   :  { %3237 = vmatpush3.bf16.msra.mxu0 %v3452_v6 }
0x2406   :  { %3238 = vmatprep.subr.bf16.mxu0 %v3453_v9 }
0x2409   :  { %3239 = vmatpush3.bf16.msra.mxu0 %v3453_v9 }
0x240a   :  { %3264 = vmatprep.subr.bf16.mxu0 %v3667_v10 }
0x24d7   :  { %v1372_v57 = vpop.f32.mrb[32].mxu0 }
0x24d8   :  { %v1378_v58 = vadd.f32 %v4058_v0, %v1372_v57  ;;  %v3226_v59 = vpop.f32.mrb[33].mxu0 }
0x24d9   :  { %v1375_v60 = vpop.f32.mrb[34].mxu0 }
0x24da   :  { %v1379_v61 = vadd.f32 %v4010_v23, %v1378_v58  ;;  %v3227_v62 = vpop.f32.mrb[35].mxu0 }
0x24dc   :  { %3570 = vtanh.f32 %v1379_v61  ;;  %v2895_v63 = vmul.f32 -1.442695, %v1379_v61 }
0x24de   :  { %3572 = vpow2.f32 %v2895_v63 }
0x24e6   :  { %v3571_v14 = vpop.eup %3570 }
0x24e7   :  { %1389 = vrot.lane.b32.xlu1 %v3571_v14, %s3670_s18 }
0x24e8   :  { %v3573_v1 = vpop.eup %3572 }
0x24e9   :  { %v1383_v3 = vadd.f32 1.0, %v3573_v1 }
0x24eb   :  { %3574 = vrcp.f32 %v1383_v3 }
0x24f5   :  { %v3575_v13 = vpop.eup %3574 }
0x24f6   :  { %v1387_v0 = vmul.f32 %v3575_v13, %v1324_v51 }
0x2559   :  { %v1390_v45 = vpop.permute.xlu1 %1389 }
0x255a   :  { %v1392_v4 = vmul.f32 %v3575_v13, %v1390_v45  ;;  %v1479_v45 = vpack.c.bf16 %v4121_v55, %v4104_v22 }
0x255c   :  { %1394 = vrot.lane.b32.xlu0 %v1392_v4, %s3671_s1 }
0x25ce   :  { %v1395_v33 = vpop.permute.xlu0 %1394 }
0x25cf   :  { %v4131_v54 = vadd.f32 %v1395_v33, %v1387_v0 }
0x25d1   :  { %3576 = vtanh.f32 %v4131_v54 }
0x25db   :  { %v3577_v19 = vpop.eup %3576 }
0x25dc   :  { %1400 = vrot.lane.b32.xlu1 %v3577_v19, %s3670_s18 }
0x25e0   :  { %1490 = vrot.lane.b32.xlu1 %v1477_v7, %s3671_s1 }
0x264e   :  { %v1401_v12 = vpop.permute.xlu1 %1400 }
0x264f   :  { %v4145_v15 = vmul.f32 %v3575_v13, %v1401_v12 }
0x2651   :  { %v1404_v27 = vpack.c.bf16 %v4145_v15, %v4145_v15 }
0x2652   :  { %v1491_v28 = vpop.permute.xlu1 %1490 }
0x2653   :  { %1406 = vrot.lane.b32.xlu0 %v1404_v27, %s3671_s1  ;;  %3240 = vmatprep.mubr.msk.bf16.mxu0 %vm179_vm3, %v1491_v28 }
0x2657   :  { %1492 = vrot.lane.b32.xlu0 %v1478_v47, %s3671_s1 }
0x26c5   :  { %v1407_v21 = vpop.permute.xlu0 %1406 }
0x26c6   :  { %3233 = vmatmul.mubr.msk.bf16.vlgmr.msra.gmra.mrb[40].mxu1 %vm179_vm3, %v1407_v21 }
0x26c7   :  { %3249 = vmatpush3.bf16.msra.mxu1 %v4157_v25  ;;  %3252 = vmatprep.mubr.msk.bf16.mxu1 %vm3669_vm2, %v3667_v10 }
0x26c8   :  { %3250 = vmatprep.subr.bf16.mxu1 %v3667_v10 }
0x26c9   :  { %v1493_v26 = vpop.permute.xlu0 %1492 }
0x26ca   :  { %3241 = vmatmul.mubr.msk.bf16.vlgmr.msra.gmra.mrb[36].mxu0 %vm179_vm3, %v1493_v26 }
0x26cb   :  { %3251 = vmatpush3.bf16.msra.mxu1 %v4164_v8  ;;  %3265 = vmatpush3.bf16.msra.mxu0 %v4157_v25 }
0x26cc   :  { %3256 = vmatprep.subr.bf16.mxu1 %v3667_v10  ;;  %3266 = vmatprep.subr.bf16.mxu0 %v3667_v10 }
0x26ce   :  { %3253 = vmatmul.mubr.bf16.vlgmr.msra.gmra.mrb[44].mxu1 %v3668_v17 }
0x26cf   :  { %3257 = vmatpush3.bf16.msra.mxu1 %v4157_v25  ;;  %3260 = vmatprep.mubr.msk.bf16.mxu1 %vm3669_vm2, %v3667_v10 }
0x26d0   :  { %3258 = vmatprep.subr.bf16.mxu1 %v3667_v10  ;;  %3267 = vmatpush3.bf16.msra.mxu0 %v4164_v8 }
0x26d1   :  { %3280 = vmatprep.subr.bf16.mxu0 %v3667_v10 }
0x26d3   :  { %3259 = vmatpush3.bf16.msra.mxu1 %v4164_v8 }
0x26d4   :  { %3272 = vmatprep.subr.bf16.mxu1 %v3667_v10 }
0x2799   :  { %v1445_v40 = vpop.f32.mrb[40].mxu1 }
0x279a   :  { %v1451_v31 = vadd.f32 %v4062_v29, %v1445_v40  ;;  %v3234_v20 = vpop.f32.mrb[41].mxu1 }
0x279b   :  { %v1448_v17 = vpop.f32.mrb[42].mxu1 }
0x279c   :  { %v3235_v32 = vpop.f32.mrb[43].mxu1  ;;  %v1452_v51 = vadd.f32 %v4010_v23, %v1451_v31 }
0x279d   :  { %v4184_v16 = vpop.f32.mrb[36].mxu0 }
0x279e   :  { %v1556_v34 = vpop.f32.mrb[37].mxu0  ;;  %v2897_v56 = vmul.f32 -1.442695, %v1452_v51 }
0x279f   :  { %v4186_v35 = vpop.f32.mrb[38].mxu0 }
0x27a0   :  { %v1559_v36 = vpop.f32.mrb[39].mxu0 }
0x27a1   :  { %v1640_v38 = vpop.f32.mrb[44].mxu1 }
0x27a2   :  { %v1646_v39 = vadd.f32 %v1640_v38, %v1556_v34  ;;  %v3254_v41 = vpop.f32.mrb[45].mxu1 }
0x27a3   :  { %v1643_v42 = vpop.f32.mrb[46].mxu1 }
0x27a4   :  { %v1653_v29 = vadd.f32 %v4191_v37, %v1646_v39  ;;  %v3255_v11 = vpop.f32.mrb[47].mxu1 }
0x27a6   :  { %3578 = vtanh.f32 %v1653_v29  ;;  %v2916_v44 = vmul.f32 -1.442695, %v1653_v29 }
0x27a8   :  { %3580 = vpow2.f32 %v2916_v44 }
0x27b0   :  { %v3579_v43 = vpop.eup %3578 }
0x27b1   :  { %1663 = vrot.lane.b32.xlu1 %v3579_v43, %s3670_s18 }
0x27b2   :  { %v3581_v2 = vpop.eup %3580 }
0x27b3   :  { %v1657_v46 = vadd.f32 1.0, %v3581_v2 }
0x27b5   :  { %3582 = vrcp.f32 %v1657_v46 }
0x27bf   :  { %v3583_v48 = vpop.eup %3582 }
0x27c0   :  { %v1661_v24 = vmul.f32 0.0, %v3583_v48 }
0x2823   :  { %v1664_v5 = vpop.permute.xlu1 %1663 }
0x2824   :  { %v1666_v49 = vmul.f32 %v3583_v48, %v1664_v5 }
0x2826   :  { %1668 = vrot.lane.b32.xlu0 %v1666_v49, %s3671_s1 }
0x2898   :  { %v1669_v30 = vpop.permute.xlu0 %1668 }
0x2899   :  { %v1671_v50 = vadd.f32 %v1669_v30, %v1661_v24 }
0x289b   :  { %3584 = vtanh.f32 %v1671_v50 }
0x289c   :  { %3586 = vtanh.f32 %v1452_v51 }
0x289d   :  { %3588 = vpow2.f32 %v2897_v56 }
0x28a5   :  { %v3585_v52 = vpop.eup %3584 }
0x28a6   :  { %1674 = vrot.lane.b32.xlu1 %v3585_v52, %s3670_s18  ;;  %v3587_v53 = vpop.eup %3586 }
0x28a7   :  { %v3589_v18 = vpop.eup %3588 }
0x28a8   :  { %v1456_v57 = vadd.f32 1.0, %v3589_v18 }
0x28aa   :  { %1462 = vrot.lane.b32.xlu1 %v3587_v53, %s3670_s18  ;;  %3590 = vrcp.f32 %v1456_v57 }
0x28b4   :  { %v3591_v23 = vpop.eup %3590 }
0x28b5   :  { %v1460_v63 = vmul.f32 %v3591_v23, %v4131_v54 }
0x2918   :  { %v1675_v58 = vpop.permute.xlu1 %1674 }
0x2919   :  { %v4199_v59 = vmul.f32 %v3583_v48, %v1675_v58 }
0x291b   :  { %v1678_v60 = vpack.c.bf16 %v4199_v59, %v4199_v59 }
0x291c   :  { %v1463_v61 = vpop.permute.xlu1 %1462 }
0x291d   :  { %v1465_v62 = vmul.f32 %v3591_v23, %v1463_v61  ;;  %1680 = vrot.lane.b32.xlu0 %v1678_v60, %s3671_s1 }
0x291f   :  { %1467 = vrot.lane.b32.xlu1 %v1465_v62, %s3671_s1 }
0x298f   :  { %v1681_v14 = vpop.permute.xlu0 %1680 }
0x2990   :  { %3261 = vmatmul.mubr.msk.bf16.vlgmr.msra.gmra.mrb[48].mxu1 %vm179_vm3, %v1681_v14 }
0x2991   :  { %v1468_v1 = vpop.permute.xlu1 %1467  ;;  %3273 = vmatpush3.bf16.msra.mxu1 %v4157_v25  ;;  %3276 = vmatprep.mubr.msk.bf16.mxu1 %vm3669_vm2, %v3667_v10 }
0x2992   :  { %v1470_v3 = vadd.f32 %v1468_v1, %v1460_v63  ;;  %3274 = vmatprep.subr.bf16.mxu1 %v3667_v10 }
0x2994   :  { %3592 = vtanh.f32 %v1470_v3 }
0x2995   :  { %3275 = vmatpush3.bf16.msra.mxu1 %v4164_v8 }
0x2996   :  { %3288 = vmatprep.subr.bf16.mxu1 %v3667_v10 }
0x299e   :  { %v3593_v13 = vpop.eup %3592 }
0x299f   :  { %1473 = vrot.lane.b32.xlu1 %v3593_v13, %s3670_s18 }
0x29a3   :  { %1494 = vrot.lane.b32.xlu1 %v1479_v45, %s3671_s1 }
0x2a11   :  { %v1474_v4 = vpop.permute.xlu1 %1473 }
0x2a12   :  { %v1476_v20 = vmul.f32 %v3591_v23, %v1474_v4 }
0x2a14   :  { %v1480_v32 = vpack.c.bf16 %v1476_v20, %v4145_v15 }
0x2a15   :  { %v1495_v0 = vpop.permute.xlu1 %1494 }
0x2a16   :  { %3244 = vmatprep.mubr.msk.bf16.mxu0 %vm179_vm3, %v1495_v0 }
0x2a63   :  { %v1719_v33 = vpop.f32.mrb[48].mxu1 }
0x2a64   :  { %v1725_v54 = vadd.f32 %v1719_v33, %v1559_v36  ;;  %v3262_v6 = vpop.f32.mrb[49].mxu1 }
0x2a65   :  { %v1722_v19 = vpop.f32.mrb[50].mxu1 }
0x2a66   :  { %v1726_v7 = vadd.f32 %v4191_v37, %v1725_v54  ;;  %v3263_v9 = vpop.f32.mrb[51].mxu1 }
0x2a68   :  { %3594 = vtanh.f32 %v1726_v7  ;;  %v2918_v27 = vmul.f32 -1.442695, %v1726_v7 }
0x2a6a   :  { %3596 = vpow2.f32 %v2918_v27 }
0x2a72   :  { %v3595_v12 = vpop.eup %3594 }
0x2a73   :  { %1736 = vrot.lane.b32.xlu0 %v3595_v12, %s3670_s18 }
0x2a74   :  { %v3597_v22 = vpop.eup %3596 }
0x2a75   :  { %v1730_v55 = vadd.f32 1.0, %v3597_v22 }
0x2a77   :  { %3598 = vrcp.f32 %v1730_v55 }
0x2a81   :  { %v3599_v28 = vpop.eup %3598 }
0x2a82   :  { %v1734_v26 = vmul.f32 %v3599_v28, %v1671_v50 }
0x2ae5   :  { %v1737_v47 = vpop.permute.xlu0 %1736 }
0x2ae6   :  { %v1739_v21 = vmul.f32 %v3599_v28, %v1737_v47 }
0x2ae8   :  { %1741 = vrot.lane.b32.xlu0 %v1739_v21, %s3671_s1 }
0x2b5a   :  { %v1742_v40 = vpop.permute.xlu0 %1741 }
0x2b5b   :  { %v1744_v31 = vadd.f32 %v1742_v40, %v1734_v26 }
0x2b5d   :  { %3600 = vtanh.f32 %v1744_v31 }
0x2b67   :  { %v3601_v17 = vpop.eup %3600 }
0x2b68   :  { %1747 = vrot.lane.b32.xlu0 %v3601_v17, %s3670_s18 }
0x2b6c   :  { %1496 = vrot.lane.b32.xlu0 %v1480_v32, %s3671_s1 }
0x2bda   :  { %v1748_v34 = vpop.permute.xlu0 %1747 }
0x2bdb   :  { %v4224_v36 = vmul.f32 %v3599_v28, %v1748_v34 }
0x2bdd   :  { %v1751_v38 = vpack.c.bf16 %v4224_v36, %v4224_v36 }
0x2bde   :  { %v1497_v39 = vpop.permute.xlu0 %1496 }
0x2bdf   :  { %1753 = vrot.lane.b32.xlu1 %v1751_v38, %s3671_s1  ;;  %3245 = vmatmul.mubr.msk.bf16.gmra.mrb[40].mxu0 %vm179_vm3, %v1497_v39 }
0x2be0   :  { %3268 = vmatprep.mubr.msk.bf16.mxu0 %vm3669_vm2, %v3667_v10 }
0x2c51   :  { %v1754_v41 = vpop.permute.xlu1 %1753 }
0x2c52   :  { %3269 = vmatmul.mubr.msk.bf16.vlgmr.msra.gmra.mrb[44].mxu0 %vm179_vm3, %v1754_v41 }
0x2c53   :  { %3281 = vmatpush3.bf16.msra.mxu0 %v4157_v25  ;;  %3284 = vmatprep.mubr.msk.bf16.mxu0 %vm3669_vm2, %v3667_v10 }
0x2c54   :  { %3282 = vmatprep.subr.bf16.mxu0 %v3667_v10 }
0x2c57   :  { %3283 = vmatpush3.bf16.msra.mxu0 %v4164_v8 }
0x2c58   :  { %3296 = vmatprep.subr.bf16.mxu0 %v3667_v10 }
0x2cb2   :  { %v4239_v15 = vpop.f32.mrb[40].mxu0 }
0x2cb3   :  { %v4241_v42 = vpop.f32.mrb[41].mxu0 }
0x2cb4   :  { %v4243_v29 = vpop.f32.mrb[42].mxu0 }
0x2cb5   :  { %v4245_v11 = vpop.f32.mrb[43].mxu0 }
0x2d25   :  { %v1792_v43 = vpop.f32.mrb[44].mxu0 }
0x2d26   :  { %v1798_v44 = vadd.f32 %v4184_v16, %v1792_v43  ;;  %v3270_v2 = vpop.f32.mrb[45].mxu0 }
0x2d27   :  { %v1795_v46 = vpop.f32.mrb[46].mxu0 }
0x2d28   :  { %v1799_v48 = vadd.f32 %v4191_v37, %v1798_v44  ;;  %v3271_v5 = vpop.f32.mrb[47].mxu0 }
0x2d2a   :  { %3602 = vtanh.f32 %v1799_v48  ;;  %v2920_v24 = vmul.f32 -1.442695, %v1799_v48 }
0x2d2c   :  { %3604 = vpow2.f32 %v2920_v24 }
0x2d34   :  { %v3603_v49 = vpop.eup %3602 }
0x2d35   :  { %1809 = vrot.lane.b32.xlu0 %v3603_v49, %s3670_s18 }
0x2d36   :  { %v3605_v30 = vpop.eup %3604 }
0x2d37   :  { %v1803_v50 = vadd.f32 1.0, %v3605_v30 }
0x2d39   :  { %3606 = vrcp.f32 %v1803_v50 }
0x2d43   :  { %v3607_v51 = vpop.eup %3606 }
0x2d44   :  { %v1807_v16 = vmul.f32 %v3607_v51, %v1744_v31 }
0x2da7   :  { %v1810_v52 = vpop.permute.xlu0 %1809 }
0x2da8   :  { %v1812_v53 = vmul.f32 %v3607_v51, %v1810_v52 }
0x2daa   :  { %1814 = vrot.lane.b32.xlu1 %v1812_v53, %s3671_s1 }
0x2e1c   :  { %v1815_v56 = vpop.permute.xlu1 %1814 }
0x2e1d   :  { %v1817_v18 = vadd.f32 %v1815_v56, %v1807_v16 }
0x2e1f   :  { %3608 = vtanh.f32 %v1817_v18 }
0x2e29   :  { %v3609_v57 = vpop.eup %3608 }
0x2e2a   :  { %1820 = vrot.lane.b32.xlu0 %v3609_v57, %s3670_s18 }
0x2e9c   :  { %v1821_v58 = vpop.permute.xlu0 %1820 }
0x2e9d   :  { %v4252_v60 = vmul.f32 %v3607_v51, %v1821_v58 }
0x2e9f   :  { %v1824_v23 = vpack.c.bf16 %v4252_v60, %v4252_v60 }
0x2ea1   :  { %1826 = vrot.lane.b32.xlu1 %v1824_v23, %s3671_s1 }
0x2f13   :  { %v1827_v61 = vpop.permute.xlu1 %1826 }
0x2f14   :  { %3277 = vmatmul.mubr.msk.bf16.vlgmr.msra.gmra.mrb[52].mxu1 %vm179_vm3, %v1827_v61 }
0x2f15   :  { %3289 = vmatpush3.bf16.msra.mxu1 %v4157_v25  ;;  %3292 = vmatprep.mubr.msk.bf16.mxu1 %vm3669_vm2, %v3667_v10 }
0x2f16   :  { %3290 = vmatprep.subr.bf16.mxu1 %v3667_v10 }
0x2f19   :  { %3291 = vmatpush3.bf16.msra.mxu1 %v4164_v8 }
0x2f1a   :  { %3304 = vmatprep.subr.bf16.mxu1 %v3667_v10 }
0x2fe7   :  { %v1865_v62 = vpop.f32.mrb[52].mxu1 }
0x2fe8   :  { %v1871_v14 = vadd.f32 %v4186_v35, %v1865_v62  ;;  %v3278_v63 = vpop.f32.mrb[53].mxu1 }
0x2fe9   :  { %v1868_v1 = vpop.f32.mrb[54].mxu1 }
0x2fea   :  { %v1872_v3 = vadd.f32 %v4191_v37, %v1871_v14  ;;  %v3279_v13 = vpop.f32.mrb[55].mxu1 }
0x2fec   :  { %3610 = vtanh.f32 %v1872_v3  ;;  %v2922_v4 = vmul.f32 -1.442695, %v1872_v3 }
0x2fee   :  { %3612 = vpow2.f32 %v2922_v4 }
0x2ff6   :  { %v3611_v45 = vpop.eup %3610 }
0x2ff7   :  { %1882 = vrot.lane.b32.xlu0 %v3611_v45, %s3670_s18 }
0x2ff8   :  { %v3613_v0 = vpop.eup %3612 }
0x2ff9   :  { %v1876_v33 = vadd.f32 1.0, %v3613_v0 }
0x2ffb   :  { %3614 = vrcp.f32 %v1876_v33 }
0x3005   :  { %v3615_v54 = vpop.eup %3614 }
0x3006   :  { %v1880_v35 = vmul.f32 %v3615_v54, %v1817_v18 }
0x3069   :  { %v1883_v6 = vpop.permute.xlu0 %1882 }
0x306a   :  { %v1885_v19 = vmul.f32 %v3615_v54, %v1883_v6 }
0x306c   :  { %1887 = vrot.lane.b32.xlu1 %v1885_v19, %s3671_s1 }
0x30de   :  { %v1888_v7 = vpop.permute.xlu1 %1887 }
0x30df   :  { %v1890_v9 = vadd.f32 %v1888_v7, %v1880_v35 }
0x30e1   :  { %3616 = vtanh.f32 %v1890_v9 }
0x30eb   :  { %v3617_v12 = vpop.eup %3616 }
0x30ec   :  { %1893 = vrot.lane.b32.xlu0 %v3617_v12, %s3670_s18 }
0x315e   :  { %v1894_v27 = vpop.permute.xlu0 %1893 }
0x315f   :  { %v4269_v22 = vmul.f32 %v3615_v54, %v1894_v27 }
0x3161   :  { %v1897_v55 = vpack.c.bf16 %v4269_v22, %v4269_v22 }
0x3163   :  { %1899 = vrot.lane.b32.xlu1 %v1897_v55, %s3671_s1 }
0x31d5   :  { %v1900_v28 = vpop.permute.xlu1 %1899 }
0x31d6   :  { %3285 = vmatmul.mubr.msk.bf16.vlgmr.msra.gmra.mrb[48].mxu0 %vm179_vm3, %v1900_v28 }
0x31d7   :  { %3297 = vmatpush3.bf16.msra.mxu0 %v4157_v25  ;;  %3300 = vmatprep.mubr.msk.bf16.mxu0 %vm3669_vm2, %v3667_v10 }
0x31d8   :  { %3298 = vmatprep.subr.bf16.mxu0 %v3667_v10 }
0x31db   :  { %3299 = vmatpush3.bf16.msra.mxu0 %v4164_v8 }
0x32a9   :  { %v1938_v47 = vpop.f32.mrb[48].mxu0 }
0x32aa   :  { %v1944_v21 = vadd.f32 %v1938_v47, %v4241_v42  ;;  %v3286_v26 = vpop.f32.mrb[49].mxu0 }
0x32ab   :  { %v1941_v40 = vpop.f32.mrb[50].mxu0 }
0x32ac   :  { %v1945_v31 = vadd.f32 %v4191_v37, %v1944_v21  ;;  %v3287_v20 = vpop.f32.mrb[51].mxu0 }
0x32ae   :  { %3618 = vtanh.f32 %v1945_v31  ;;  %v2924_v32 = vmul.f32 -1.442695, %v1945_v31 }
0x32b0   :  { %3620 = vpow2.f32 %v2924_v32 }
0x32b8   :  { %v3619_v17 = vpop.eup %3618 }
0x32b9   :  { %1955 = vrot.lane.b32.xlu0 %v3619_v17, %s3670_s18 }
0x32ba   :  { %v3621_v34 = vpop.eup %3620 }
0x32bb   :  { %v1949_v38 = vadd.f32 1.0, %v3621_v34 }
0x32bd   :  { %3622 = vrcp.f32 %v1949_v38 }
0x32c7   :  { %v3623_v39 = vpop.eup %3622 }
0x32c8   :  { %v1953_v42 = vmul.f32 %v3623_v39, %v1890_v9 }
0x332b   :  { %v1956_v41 = vpop.permute.xlu0 %1955 }
0x332c   :  { %v1958_v43 = vmul.f32 %v3623_v39, %v1956_v41 }
0x332e   :  { %1960 = vrot.lane.b32.xlu1 %v1958_v43, %s3671_s1 }
0x33a0   :  { %v1961_v44 = vpop.permute.xlu1 %1960 }
0x33a1   :  { %v1963_v2 = vadd.f32 %v1961_v44, %v1953_v42 }
0x33a3   :  { %3624 = vtanh.f32 %v1963_v2 }
0x33ad   :  { %v3625_v46 = vpop.eup %3624 }
0x33ae   :  { %1966 = vrot.lane.b32.xlu0 %v3625_v46, %s3670_s18 }
0x3420   :  { %v1967_v48 = vpop.permute.xlu0 %1966 }
0x3421   :  { %v4285_v5 = vmul.f32 %v3623_v39, %v1967_v48 }
0x3423   :  { %v1970_v49 = vpack.c.bf16 %v4285_v5, %v4285_v5 }
0x3425   :  { %1972 = vrot.lane.b32.xlu1 %v1970_v49, %s3671_s1 }
0x3497   :  { %v1973_v24 = vpop.permute.xlu1 %1972 }
0x3498   :  { %3293 = vmatmul.mubr.msk.bf16.vlgmr.msra.gmra.mrb[56].mxu1 %vm179_vm3, %v1973_v24 }
0x3499   :  { %3305 = vmatpush3.bf16.msra.mxu1 %v4157_v25  ;;  %3308 = vmatprep.mubr.msk.bf16.mxu1 %vm3669_vm2, %v3667_v10 }
0x349a   :  { %3306 = vmatprep.subr.bf16.mxu1 %v3667_v10 }
0x349d   :  { %3307 = vmatpush3.bf16.msra.mxu1 %v4164_v8 }
0x356b   :  { %v2011_v30 = vpop.f32.mrb[56].mxu1 }
0x356c   :  { %v2017_v50 = vadd.f32 %v2011_v30, %v4245_v11  ;;  %v3294_v51 = vpop.f32.mrb[57].mxu1 }
0x356d   :  { %v2014_v52 = vpop.f32.mrb[58].mxu1 }
0x356e   :  { %v2018_v53 = vadd.f32 %v4191_v37, %v2017_v50  ;;  %v3295_v16 = vpop.f32.mrb[59].mxu1  ;;  %v3457_v50 = vld [vmem:[%s4503_s5 + $0x8] sm:$0xff]  }
0x3570   :  { %3626 = vtanh.f32 %v2018_v53  ;;  %v2926_v25 = vmul.f32 -1.442695, %v2018_v53 }
0x3572   :  { %3628 = vpow2.f32 %v2926_v25 }
0x357a   :  { %v3627_v56 = vpop.eup %3626 }
0x357b   :  { %2028 = vrot.lane.b32.xlu0 %v3627_v56, %s3670_s18 }
0x357c   :  { %v3629_v18 = vpop.eup %3628 }
0x357d   :  { %v2022_v57 = vadd.f32 1.0, %v3629_v18 }
0x357f   :  { %3630 = vrcp.f32 %v2022_v57  ;;  %v3672_v57 = vmov 0.0|0.0  }
0x3580   :  { %3413 = vmatprep.subr.bf16.mxu1 %v3672_v57 }
0x3589   :  { %v3631_v58 = vpop.eup %3630 }
0x358a   :  { %v2026_v11 = vmul.f32 %v3631_v58, %v1963_v2 }
0x35ed   :  { %v2029_v23 = vpop.permute.xlu0 %2028 }
0x35ee   :  { %v2031_v8 = vmul.f32 %v3631_v58, %v2029_v23  ;;  %v2302_v23 = vld [vmem:[%s4504_s6 + $0x18] sm:$0xff] }
0x35f0   :  { %2033 = vrot.lane.b32.xlu1 %v2031_v8, %s3671_s1 }
0x3662   :  { %v2034_v61 = vpop.permute.xlu1 %2033 }
0x3663   :  { %v2036_v62 = vadd.f32 %v2034_v61, %v2026_v11  ;;  %v2299_v11 = vld [vmem:[%s4504_s6] sm:$0xff]  ;;  %v2300_v61 = vld [vmem:[%s4504_s6 + $0x8] sm:$0xff] }
0x3665   :  { %3632 = vtanh.f32 %v2036_v62 }
0x366f   :  { %v3633_v14 = vpop.eup %3632 }
0x3670   :  { %2039 = vrot.lane.b32.xlu0 %v3633_v14, %s3670_s18 }
0x36e2   :  { %v2040_v63 = vpop.permute.xlu0 %2039 }
0x36e3   :  { %v2042_v1 = vmul.f32 %v3631_v58, %v2040_v63 }
0x36e5   :  { %v2043_v3 = vpack.c.bf16 %v2042_v1, %v2042_v1  ;;  %v2191_v24 = vpack.c.bf16 %v2042_v1, %v4285_v5  ;;  %v2190_v5 = vpack.c.bf16 %v4269_v22, %v4252_v60  ;;  %v2301_v22 = vld [vmem:[%s4504_s6 + $0x10] sm:$0xff] }
0x36e7   :  { %2045 = vrot.lane.b32.xlu1 %v2043_v3, %s3671_s1 }
0x3759   :  { %v2046_v13 = vpop.permute.xlu1 %2045 }
0x375a   :  { %3301 = vmatmul.mubr.msk.bf16.vlgmr.msra.gmra.mrb[52].mxu0 %vm179_vm3, %v2046_v13 }
0x382d   :  { %v2084_v45 = vpop.f32.mrb[52].mxu0 }
0x382e   :  { %v2090_v4 = vadd.f32 %v4239_v15, %v2084_v45  ;;  %v3302_v0 = vpop.f32.mrb[53].mxu0 }
0x382f   :  { %v2087_v33 = vpop.f32.mrb[54].mxu0 }
0x3830   :  { %v2091_v54 = vadd.f32 %v4191_v37, %v2090_v4  ;;  %v3303_v6 = vpop.f32.mrb[55].mxu0  ;;  %v2305_v33 = vld [vmem:[%s4504_s6 + $0x30] sm:$0xff] }
0x3832   :  { %3634 = vtanh.f32 %v2091_v54  ;;  %v2928_v35 = vmul.f32 -1.442695, %v2091_v54  ;;  %v2306_v54 = vld [vmem:[%s4504_s6 + $0x38] sm:$0xff] }
0x3834   :  { %3636 = vpow2.f32 %v2928_v35  ;;  %v2304_v35 = vld [vmem:[%s4504_s6 + $0x28] sm:$0xff] }
0x383c   :  { %v3635_v19 = vpop.eup %3634 }
0x383d   :  { %2101 = vrot.lane.b32.xlu0 %v3635_v19, %s3670_s18  ;;  %v2303_v19 = vld [vmem:[%s4504_s6 + $0x20] sm:$0xff]  ;;  %s2945_s6 = sld [smem:[#allocation2 + $0x2]] }
0x383e   :  { %v3637_v7 = vpop.eup %3636 }
0x383f   :  { %v2095_v9 = vadd.f32 1.0, %v3637_v7 }
0x3841   :  { %3638 = vrcp.f32 %v2095_v9 }
0x384b   :  { %v3639_v12 = vpop.eup %3638 }
0x384c   :  { %v2099_v15 = vmul.f32 %v3639_v12, %v2036_v62 }
0x38af   :  { %v2102_v27 = vpop.permute.xlu0 %2101 }
0x38b0   :  { %v2104_v55 = vmul.f32 %v3639_v12, %v2102_v27 }
0x38b2   :  { %2106 = vrot.lane.b32.xlu1 %v2104_v55, %s3671_s1 }
0x3924   :  { %v2107_v28 = vpop.permute.xlu1 %2106 }
0x3925   :  { %v2109_v47 = vadd.f32 %v2107_v28, %v2099_v15 }
0x3927   :  { %3640 = vtanh.f32 %v2109_v47 }
0x3931   :  { %v3641_v21 = vpop.eup %3640 }
0x3932   :  { %2112 = vrot.lane.b32.xlu0 %v3641_v21, %s3670_s18  ;;  %v2298_v21 = vld [vmem:[%s4505_s7] sm:$0xff]  ;;  %s3675_s7 = smov 1  }
0x39a4   :  { %v2113_v26 = vpop.permute.xlu0 %2112 }
0x39a5   :  { %v2115_v40 = vmul.f32 %v3639_v12, %v2113_v26  ;;  %v2315_v26 = vld [vmem:[%s4506_s8] sm:$0xff]  ;;  %s3679_s8 = smov 117  }
0x39a7   :  { %v2116_v31 = vpack.c.bf16 %v2115_v40, %v2115_v40 }
0x39a9   :  { %2118 = vrot.lane.b32.xlu1 %v2116_v31, %s3671_s1 }
0x3a1b   :  { %v2119_v20 = vpop.permute.xlu1 %2118 }
0x3a1c   :  { %3309 = vmatmul.mubr.msk.bf16.vlgmr.msra.gmra.mrb[60].mxu1 %vm179_vm3, %v2119_v20 }
0x3a1d   :  { %3340 = vmatprep.mubr.msk.f32.mxu1 %vm3669_vm2, %v3667_v10 }
0x3aef   :  { %v2157_v17 = vpop.f32.mrb[60].mxu1 }
0x3af0   :  { %v2163_v32 = vadd.f32 %v4243_v29, %v2157_v17  ;;  %v3310_v34 = vpop.f32.mrb[61].mxu1  ;;  %v2189_v29 = vpack.c.bf16 %v4224_v36, %v4199_v59  ;;  %v2392_v17 = vld [vmem:[%s4511_s13] sm:$0xff] }
0x3af1   :  { %v2160_v38 = vpop.f32.mrb[62].mxu1 }
0x3af2   :  { %v2164_v39 = vadd.f32 %v4191_v37, %v2163_v32  ;;  %v3311_v41 = vpop.f32.mrb[63].mxu1  ;;  %v3456_v37 = vld [vmem:[%s4503_s5] sm:$0xff]   ;;  %s3676_s5 = smov 9  }
0x3af3   :  { %3312 = vmatprep.subr.bf16.mxu0 %v3456_v37 }
0x3af4   :  { %3642 = vtanh.f32 %v2164_v39  ;;  %v2930_v42 = vmul.f32 -1.442695, %v2164_v39  ;;  %3313 = vmatpush3.bf16.msra.mxu0 %v3456_v37 }
0x3af5   :  { %3314 = vmatprep.subr.bf16.mxu0 %v3457_v50 }
0x3af6   :  { %3644 = vpow2.f32 %v2930_v42 }
0x3af8   :  { %3315 = vmatpush3.bf16.msra.mxu0 %v3457_v50 }
0x3af9   :  { %3343 = vmatprep.subr.bf16.mxu0 %v3667_v10 }
0x3afe   :  { %v3643_v43 = vpop.eup %3642 }
0x3aff   :  { %2174 = vrot.lane.b32.xlu0 %v3643_v43, %s3670_s18 }
0x3b00   :  { %v3645_v44 = vpop.eup %3644 }
0x3b01   :  { %v2168_v2 = vadd.f32 1.0, %v3645_v44 }
0x3b03   :  { %3646 = vrcp.f32 %v2168_v2 }
0x3b0d   :  { %v3647_v46 = vpop.eup %3646 }
0x3b0e   :  { %v2172_v30 = vmul.f32 %v3647_v46, %v2109_v47 }
0x3b71   :  { %v2175_v48 = vpop.permute.xlu0 %2174 }
0x3b72   :  { %v2177_v49 = vmul.f32 %v3647_v46, %v2175_v48 }
0x3b74   :  { %2179 = vrot.lane.b32.xlu1 %v2177_v49, %s3671_s1 }
0x3b78   :  { %2201 = vrot.lane.b32.xlu1 %v2189_v29, %s3671_s1 }
0x3b7c   :  { %2205 = vrot.lane.b32.xlu1 %v2191_v24, %s3671_s1  ;;  %v2391_v24 = vld [vmem:[%s4508_s10] sm:$0xf] }
0x3be6   :  { %v2180_v51 = vpop.permute.xlu1 %2179 }
0x3be7   :  { %v2182_v52 = vadd.f32 %v2180_v51, %v2172_v30  ;;  %v2468_v51 = vstv %s2466_s30 }
0x3be9   :  { %3648 = vtanh.f32 %v2182_v52 }
0x3bea   :  { %v2202_v59 = vpop.permute.xlu1 %2201 }
0x3beb   :  { %3316 = vmatprep.mubr.msk.bf16.mxu0 %vm179_vm3, %v2202_v59 }
0x3bee   :  { %v2206_v18 = vpop.permute.xlu1 %2205 }
0x3bf3   :  { %v3649_v36 = vpop.eup %3648 }
0x3bf4   :  { %2185 = vrot.lane.b32.xlu0 %v3649_v36, %s3670_s18  ;;  %s3677_s18 = smov 119  }
0x3bf8   :  { %2203 = vrot.lane.b32.xlu0 %v2190_v5, %s3671_s1  ;;  %v4398_v5 = vld [vmem:[%s4507_s9] sm:$0xff] }
0x3c66   :  { %v2186_v53 = vpop.permute.xlu0 %2185 }
0x3c67   :  { %v2188_v16 = vmul.f32 %v3647_v46, %v2186_v53 }
0x3c69   :  { %v2192_v56 = vpack.c.bf16 %v2188_v16, %v2115_v40 }
0x3c6a   :  { %v2204_v25 = vpop.permute.xlu0 %2203 }
0x3c6b   :  { %2207 = vrot.lane.b32.xlu0 %v2192_v56, %s3671_s1  ;;  %3317 = vmatmul.mubr.msk.bf16.vlgmr.msra.gmra.mrb[56].mxu0 %vm179_vm3, %v2204_v25 }
0x3c6c   :  { %3320 = vmatprep.mubr.msk.bf16.mxu0 %vm179_vm3, %v2206_v18  ;;  %v2939_v18 = vld [vmem:[%s4511_s13 + $0x8] sm:$0xff] }
0x3cdd   :  { %v2208_v58 = vpop.permute.xlu0 %2207 }
0x3cde   :  { %3321 = vmatmul.mubr.msk.bf16.gmra.mrb[60].mxu0 %vm179_vm3, %v2208_v58 }
0x3cdf   :  { %3353 = vmatprep.mubr.msk.bf16.mxu0 %vm3669_vm2, %v3667_v10 }
0x3d3e   :  { %v3318_v60 = vpop.f32.mrb[56].mxu0 }
0x3d3f   :  { %v2267_v8 = vpop.f32.mrb[57].mxu0  ;;  %v2309_v14 = vmul.f32 %v3318_v60, %v2301_v22 }
0x3d40   :  { %v3319_v62 = vpop.f32.mrb[58].mxu0  ;;  %v2307_v3 = vmul.f32 %v2299_v11, %v2267_v8 }
0x3d41   :  { %v2310_v63 = vmul.f32 %v3319_v62, %v2302_v23  ;;  %v2270_v1 = vpop.f32.mrb[59].mxu0 }
0x3d42   :  { %v2308_v13 = vmul.f32 %v2300_v61, %v2270_v1 }
0x3d43   :  { %v3417_v45 = vpack.c.bf16 %v2310_v63, %v2309_v14 }
0x3d44   :  { %v3414_v4 = vpack.c.bf16 %v2308_v13, %v2307_v3 }
0x3d46   :  { %3415 = vmatpush3.bf16.msra.mxu1 %v3414_v4 }
0x3d47   :  { %3416 = vmatprep.subr.bf16.mxu1 %v3672_v57 }
0x3d4a   :  { %3418 = vmatpush3.bf16.msra.mxu1 %v3417_v45  ;;  %v2472_v45 = vld [vmem:[%s4509_s11] sm:$0xf] }
0x3d4b   :  { %3419 = vmatprep.subr.bf16.mxu1 %v3672_v57 }
0x3db1   :  { %v3322_v0 = vpop.f32.mrb[60].mxu0 }
0x3db2   :  { %v2283_v6 = vpop.f32.mrb[61].mxu0  ;;  %v2313_v9 = vmul.f32 %v3322_v0, %v2305_v33  ;;  %v2549_v33 = vstv %s2941_s19 }
0x3db3   :  { %v3323_v7 = vpop.f32.mrb[62].mxu0  ;;  %v2311_v55 = vmul.f32 %v2303_v19, %v2283_v6 }
0x3db4   :  { %v2314_v12 = vmul.f32 %v3323_v7, %v2306_v54  ;;  %v2286_v27 = vpop.f32.mrb[63].mxu0 }
0x3db5   :  { %v2312_v15 = vmul.f32 %v2304_v35, %v2286_v27 }
0x3db6   :  { %v3423_v28 = vpack.c.bf16 %v2314_v12, %v2313_v9 }
0x3db7   :  { %v3420_v47 = vpack.c.bf16 %v2312_v15, %v2311_v55  ;;  %v2943_v55 = vld [vmem:[%s4511_s13 + $0x10] sm:$0xff] }
0x3db9   :  { %3421 = vmatpush3.bf16.msra.mxu1 %v3420_v47 }
0x3dba   :  { %3422 = vmatprep.subr.bf16.mxu1 %v3672_v57 }
0x3dbd   :  { %3424 = vmatpush3.bf16.msra.mxu1 %v3423_v28 }
0x3dbe   :  { %3357 = vmatprep.subr.bf16.mxu1 %v3667_v10 }
0x3dc0   :  { %3341 = vmatmul.mubr.msk.f32.vlgmr.msra.gmra.mrb[64].mxu1 %vm2316_vm4, %v2298_v21 }
0x3dc1   :  { %3367 = vmatprep.mubr.msk.bf16.mxu1 %vm3669_vm2, %v3667_v10 }
0x3e93   :  { %v2386_v40 = vpop.f32.mrb[64].mxu1 }
0x3e94   :  { %v2387_v31 = vadd.f32 %v2386_v40, %v2315_v26  ;;  %v3342_v20 = vpop.f32.mrb[65].mxu1 }
0x3e96   :  { %2395 = vrot.lane.b32.xlu0 %v2387_v31, %s3673_s23  ;;  %2393 = vrot.lane.b32.xlu1 %v2387_v31, %s3674_s24 }
0x3e9a   :  { %2399 = vrot.lane.b32.xlu0 %v2387_v31, %s3675_s7  ;;  %2397 = vrot.lane.b32.xlu1 %v2387_v31, %s3676_s5 }
0x3e9e   :  { %2403 = vrot.lane.b32.xlu0 %v2387_v31, %s3677_s18  ;;  %2401 = vrot.lane.b32.xlu1 %v2387_v31, %s3678_s25 }
0x3ea2   :  { %2407 = vrot.lane.b32.xlu0 %v2387_v31, %s3679_s8  ;;  %2405 = vrot.lane.b32.xlu1 %v2387_v31, %s3680_s26 }
0x3ea6   :  { %2416 = vperm.xlu1 %3444, %v2392_v17  }
0x3f08   :  { %v2396_v32 = vpop.permute.xlu0 %2395  ;;  %v2394_v34 = vpop.permute.xlu1 %2393 }
0x3f09   :  { %v2409_v38 = vpack.c.bf16 %v2396_v32, %v2394_v34 }
0x3f0b   :  { %3344 = vmatpush3.bf16.msra.mxu0 %v2409_v38 }
0x3f0c   :  { %v2400_v39 = vpop.permute.xlu0 %2399  ;;  %v2398_v41 = vpop.permute.xlu1 %2397  ;;  %3345 = vmatprep.subr.bf16.mxu0 %v3667_v10 }
0x3f0d   :  { %v2410_v43 = vpack.c.bf16 %v2400_v39, %v2398_v41 }
0x3f0f   :  { %3346 = vmatpush3.bf16.msra.mxu0 %v2410_v43  ;;  %v2942_v43 = vld [vmem:[%s4509_s11 + $0x4] sm:$0xf] }
0x3f10   :  { %v2404_v42 = vpop.permute.xlu0 %2403  ;;  %v2402_v44 = vpop.permute.xlu1 %2401  ;;  %3347 = vmatprep.subr.bf16.mxu0 %v3667_v10 }
0x3f11   :  { %v2411_v2 = vpack.c.bf16 %v2402_v44, %v2387_v31 }
0x3f13   :  { %3348 = vmatpush3.bf16.msra.mxu0 %v2411_v2  ;;  %v2632_v2 = vstv %s2945_s6 }
0x3f14   :  { %v2408_v46 = vpop.permute.xlu0 %2407  ;;  %v2406_v48 = vpop.permute.xlu1 %2405  ;;  %3349 = vmatprep.subr.bf16.mxu0 %v3667_v10 }
0x3f15   :  { %v2412_v49 = vpack.c.bf16 %v2406_v48, %v2404_v42  ;;  %v2413_v29 = vpack.c.bf16 %v2408_v46, %v2408_v46 }
0x3f17   :  { %3350 = vmatpush3.bf16.msra.mxu0 %v2412_v49  ;;  %v2424_v37 = vsel %vm93_vm0, %v2413_v29, 0 }
0x3f18   :  { %3351 = vmatprep.subr.bf16.mxu0 %v3667_v10 }
0x3f1b   :  { %3352 = vmatpush3.bf16.msra.mxu0 %v2424_v37 }
0x3f1c   :  { %3371 = vmatprep.subr.bf16.mxu0 %v3667_v10 }
0x3f1e   :  { %3354 = vmatmul.mubr.msk.bf16.vlgmr.msra.gmra.mrb[64].mxu0 %vm2419_vm5, %v2391_v24 }
0x3f1f   :  { %3381 = vmatprep.mubr.msk.bf16.mxu0 %vm3669_vm2, %v3667_v10 }
0x3f25   :  { %v2417_v30 = vpop.permute.xlu1 %2416 }
0x3ff1   :  { %v2460_v50 = vpop.f32.mrb[64].mxu0 }
0x3ff2   :  { %v2461_v52 = vadd.f32 %v2460_v50, %v2417_v30  ;;  %v3355_v59 = vpop.f32.mrb[65].mxu0 }
0x3ff3   :  { %v2463_v36 = vpop.f32.mrb[66].mxu0 }
0x3ff4   :  { %vm2467_vm6 = vcmp.gt.f32.partialorder %v2461_v52, 0.0  ;;  %v2469_v53 = vmul.f32 %v2468_v51, %v2461_v52  ;;  %v3356_v16 = vpop.f32.mrb[67].mxu0  ;;  %v2947_v51 = vld [vmem:[%s4511_s13 + $0x18] sm:$0xff] }
0x3ff6   :  { %v2470_v56 = vsel %vm2467_vm6, %v2461_v52, %v2469_v53 }
0x3ff7   :  { %v2471_v25 = vmul.f32 %v2470_v56, %v4398_v5 }
0x3ff9   :  { %2477 = vrot.lane.b32.xlu1 %v2471_v25, %s3673_s23  ;;  %2475 = vrot.lane.b32.xlu0 %v2471_v25, %s3674_s24 }
0x3ffd   :  { %2481 = vrot.lane.b32.xlu1 %v2471_v25, %s3675_s7  ;;  %2479 = vrot.lane.b32.xlu0 %v2471_v25, %s3676_s5 }
0x4001   :  { %2485 = vrot.lane.b32.xlu1 %v2471_v25, %s3677_s18  ;;  %2483 = vrot.lane.b32.xlu0 %v2471_v25, %s3678_s25 }
0x4005   :  { %2489 = vrot.lane.b32.xlu1 %v2471_v25, %s3679_s8  ;;  %2487 = vrot.lane.b32.xlu0 %v2471_v25, %s3680_s26 }
0x4009   :  { %2498 = vperm.xlu0 %3445, %v2939_v18  }
0x406b   :  { %v2478_v57 = vpop.permute.xlu1 %2477  ;;  %v2476_v58 = vpop.permute.xlu0 %2475 }
0x406c   :  { %v2491_v60 = vpack.c.bf16 %v2478_v57, %v2476_v58 }
0x406e   :  { %3358 = vmatpush3.bf16.msra.mxu1 %v2491_v60 }
0x406f   :  { %v2482_v22 = vpop.permute.xlu1 %2481  ;;  %v2480_v23 = vpop.permute.xlu0 %2479  ;;  %3359 = vmatprep.subr.bf16.mxu1 %v3667_v10 }
0x4070   :  { %v2492_v8 = vpack.c.bf16 %v2482_v22, %v2480_v23 }
0x4072   :  { %3360 = vmatpush3.bf16.msra.mxu1 %v2492_v8 }
0x4073   :  { %v2486_v11 = vpop.permute.xlu1 %2485  ;;  %v2484_v61 = vpop.permute.xlu0 %2483  ;;  %3361 = vmatprep.subr.bf16.mxu1 %v3667_v10 }
0x4074   :  { %v2493_v62 = vpack.c.bf16 %v2484_v61, %v2471_v25 }
0x4076   :  { %3362 = vmatpush3.bf16.msra.mxu1 %v2493_v62 }
0x4077   :  { %v2490_v14 = vpop.permute.xlu1 %2489  ;;  %v2488_v63 = vpop.permute.xlu0 %2487  ;;  %3363 = vmatprep.subr.bf16.mxu1 %v3667_v10 }
0x4078   :  { %v2494_v1 = vpack.c.bf16 %v2488_v63, %v2486_v11  ;;  %v2495_v3 = vpack.c.bf16 %v2490_v14, %v2490_v14  ;;  %v2946_v11 = vld [vmem:[%s4509_s11 + $0x8] sm:$0xf]  ;;  %v2715_v14 = vstv %s2949_s15 }
0x407a   :  { %3364 = vmatpush3.bf16.msra.mxu1 %v2494_v1  ;;  %v2505_v13 = vsel %vm93_vm0, %v2495_v3, 0 }
0x407b   :  { %3365 = vmatprep.subr.bf16.mxu1 %v3667_v10 }
0x407e   :  { %3366 = vmatpush3.bf16.msra.mxu1 %v2505_v13 }
0x407f   :  { %3385 = vmatprep.subr.bf16.mxu1 %v3667_v10 }
0x4081   :  { %3368 = vmatmul.mubr.msk.bf16.vlgmr.msra.gmra.mrb[68].mxu1 %vm2419_vm5, %v2472_v45 }
0x4082   :  { %3395 = vmatprep.mubr.msk.bf16.mxu1 %vm3669_vm2, %v3667_v10 }
0x4088   :  { %v2499_v4 = vpop.permute.xlu0 %2498 }
0x4154   :  { %v2541_v0 = vpop.f32.mrb[68].mxu1 }
0x4155   :  { %v2542_v54 = vadd.f32 %v2541_v0, %v2499_v4  ;;  %v3369_v6 = vpop.f32.mrb[69].mxu1 }
0x4156   :  { %v2544_v19 = vpop.f32.mrb[70].mxu1 }
0x4157   :  { %vm2548_vm7 = vcmp.gt.f32.partialorder %v2542_v54, 0.0  ;;  %v2550_v35 = vmul.f32 %v2549_v33, %v2542_v54  ;;  %v3370_v7 = vpop.f32.mrb[71].mxu1 }
0x4159   :  { %v2551_v9 = vsel %vm2548_vm7, %v2542_v54, %v2550_v35  ;;  %v2950_v54 = vld [vmem:[%s4511_s13 + $0x20] sm:$0xff] }
0x415a   :  { %v2552_v12 = vadd.f32 %v2551_v9, %v2471_v25 }
0x415c   :  { %v2553_v27 = vmul.f32 %v2552_v12, %v4398_v5 }
0x415e   :  { %2562 = vrot.lane.b32.xlu0 %v2553_v27, %s3676_s5  ;;  %2558 = vrot.lane.b32.xlu1 %v2553_v27, %s3674_s24 }
0x4162   :  { %2566 = vrot.lane.b32.xlu0 %v2553_v27, %s3678_s25  ;;  %2560 = vrot.lane.b32.xlu1 %v2553_v27, %s3673_s23 }
0x4166   :  { %2570 = vrot.lane.b32.xlu0 %v2553_v27, %s3680_s26  ;;  %2564 = vrot.lane.b32.xlu1 %v2553_v27, %s3675_s7 }
0x416a   :  { %2581 = vperm.xlu0 %3445, %v2943_v55   ;;  %2568 = vrot.lane.b32.xlu1 %v2553_v27, %s3677_s18 }
0x416e   :  { %2572 = vrot.lane.b32.xlu1 %v2553_v27, %s3679_s8 }
0x41d0   :  { %v2559_v15 = vpop.permute.xlu1 %2558  ;;  %v2563_v28 = vpop.permute.xlu0 %2562 }
0x41d4   :  { %v2561_v47 = vpop.permute.xlu1 %2560  ;;  %v2567_v31 = vpop.permute.xlu0 %2566 }
0x41d5   :  { %v2574_v21 = vpack.c.bf16 %v2561_v47, %v2559_v15  ;;  %v2576_v17 = vpack.c.bf16 %v2567_v31, %v2553_v27  ;;  %v2720_v31 = vld [vmem:[%s4510_s12] sm:$0xf] }
0x41d7   :  { %3372 = vmatpush3.bf16.msra.mxu0 %v2574_v21 }
0x41d8   :  { %v2565_v26 = vpop.permute.xlu1 %2564  ;;  %3373 = vmatprep.subr.bf16.mxu0 %v3667_v10  ;;  %v2571_v32 = vpop.permute.xlu0 %2570 }
0x41d9   :  { %v2575_v40 = vpack.c.bf16 %v2565_v26, %v2563_v28 }
0x41db   :  { %3374 = vmatpush3.bf16.msra.mxu0 %v2575_v40 }
0x41dc   :  { %v2569_v20 = vpop.permute.xlu1 %2568  ;;  %3375 = vmatprep.subr.bf16.mxu0 %v3667_v10 }
0x41dd   :  { %v2577_v38 = vpack.c.bf16 %v2571_v32, %v2569_v20 }
0x41df   :  { %3376 = vmatpush3.bf16.msra.mxu0 %v2576_v17 }
0x41e0   :  { %v2573_v34 = vpop.permute.xlu1 %2572  ;;  %3377 = vmatprep.subr.bf16.mxu0 %v3667_v10 }
0x41e1   :  { %v2578_v39 = vpack.c.bf16 %v2573_v34, %v2573_v34 }
0x41e3   :  { %3378 = vmatpush3.bf16.msra.mxu0 %v2577_v38  ;;  %v2588_v41 = vsel %vm93_vm0, %v2578_v39, 0  ;;  %v2798_v38 = vld [vmem:[%s4512_s14] sm:$0x3] }
0x41e4   :  { %3379 = vmatprep.subr.bf16.mxu0 %v3667_v10 }
0x41e7   :  { %3380 = vmatpush3.bf16.msra.mxu0 %v2588_v41 }
0x41e8   :  { %3399 = vmatprep.subr.bf16.mxu0 %v3667_v10 }
0x41e9   :  { %v2582_v42 = vpop.permute.xlu0 %2581 }
0x41ea   :  { %3382 = vmatmul.mubr.msk.bf16.vlgmr.msra.gmra.mrb[68].mxu0 %vm2419_vm5, %v2942_v43 }
0x41eb   :  { %3409 = vmatprep.mubr.msk.bf16.mxu0 %vm3669_vm2, %v3667_v10 }
0x42bd   :  { %v2624_v44 = vpop.f32.mrb[68].mxu0 }
0x42be   :  { %v2625_v46 = vadd.f32 %v2624_v44, %v2582_v42  ;;  %v3383_v48 = vpop.f32.mrb[69].mxu0  ;;  %v2801_v44 = vrot.slane %v2798_v38, 7 }
0x42bf   :  { %v2627_v49 = vpop.f32.mrb[70].mxu0 }
0x42c0   :  { %vm2631_vm8 = vcmp.gt.f32.partialorder %v2625_v46, 0.0  ;;  %v2633_v29 = vmul.f32 %v2632_v2, %v2625_v46  ;;  %v3384_v37 = vpop.f32.mrb[71].mxu0 }
0x42c2   :  { %v2634_v24 = vsel %vm2631_vm8, %v2625_v46, %v2633_v29 }
0x42c3   :  { %v2635_v30 = vadd.f32 %v2634_v24, %v2553_v27 }
0x42c5   :  { %v2636_v50 = vmul.f32 %v2635_v30, %v4398_v5 }
0x42c7   :  { %2643 = vrot.lane.b32.xlu0 %v2636_v50, %s3673_s23  ;;  %2641 = vrot.lane.b32.xlu1 %v2636_v50, %s3674_s24 }
0x42cb   :  { %2647 = vrot.lane.b32.xlu0 %v2636_v50, %s3675_s7  ;;  %2645 = vrot.lane.b32.xlu1 %v2636_v50, %s3676_s5 }
0x42cf   :  { %2651 = vrot.lane.b32.xlu0 %v2636_v50, %s3677_s18  ;;  %2649 = vrot.lane.b32.xlu1 %v2636_v50, %s3678_s25 }
0x42d3   :  { %2655 = vrot.lane.b32.xlu0 %v2636_v50, %s3679_s8  ;;  %2653 = vrot.lane.b32.xlu1 %v2636_v50, %s3680_s26 }
0x42d7   :  { %2664 = vperm.xlu1 %3444, %v2947_v51  }
0x4339   :  { %v2644_v52 = vpop.permute.xlu0 %2643  ;;  %v2642_v59 = vpop.permute.xlu1 %2641 }
0x433a   :  { %v2657_v36 = vpack.c.bf16 %v2644_v52, %v2642_v59 }
0x433c   :  { %3386 = vmatpush3.bf16.msra.mxu1 %v2657_v36 }
0x433d   :  { %v2648_v53 = vpop.permute.xlu0 %2647  ;;  %v2646_v16 = vpop.permute.xlu1 %2645  ;;  %3387 = vmatprep.subr.bf16.mxu1 %v3667_v10 }
0x433e   :  { %v2658_v56 = vpack.c.bf16 %v2648_v53, %v2646_v16 }
0x4340   :  { %3388 = vmatpush3.bf16.msra.mxu1 %v2658_v56 }
0x4341   :  { %v2652_v25 = vpop.permute.xlu0 %2651  ;;  %v2650_v18 = vpop.permute.xlu1 %2649  ;;  %3389 = vmatprep.subr.bf16.mxu1 %v3667_v10 }
0x4342   :  { %v2659_v57 = vpack.c.bf16 %v2650_v18, %v2636_v50 }
0x4344   :  { %3390 = vmatpush3.bf16.msra.mxu1 %v2659_v57 }
0x4345   :  { %v2656_v58 = vpop.permute.xlu0 %2655  ;;  %v2654_v60 = vpop.permute.xlu1 %2653  ;;  %3391 = vmatprep.subr.bf16.mxu1 %v3667_v10 }
0x4346   :  { %v2660_v22 = vpack.c.bf16 %v2654_v60, %v2652_v25  ;;  %v2661_v23 = vpack.c.bf16 %v2656_v58, %v2656_v58 }
0x4348   :  { %3392 = vmatpush3.bf16.msra.mxu1 %v2660_v22  ;;  %v2671_v8 = vsel %vm93_vm0, %v2661_v23, 0 }
0x4349   :  { %3393 = vmatprep.subr.bf16.mxu1 %v3667_v10 }
0x434c   :  { %3394 = vmatpush3.bf16.msra.mxu1 %v2671_v8 }
0x434f   :  { %3396 = vmatmul.mubr.msk.bf16.vlgmr.msra.gmra.mrb[72].mxu1 %vm2419_vm5, %v2946_v11 }
0x4356   :  { %v2665_v61 = vpop.permute.xlu1 %2664 }
0x4422   :  { %v2707_v62 = vpop.f32.mrb[72].mxu1 }
0x4423   :  { %v2708_v63 = vadd.f32 %v2707_v62, %v2665_v61  ;;  %v3397_v1 = vpop.f32.mrb[73].mxu1 }
0x4424   :  { %v2710_v3 = vpop.f32.mrb[74].mxu1 }
0x4425   :  { %vm2714_vm9 = vcmp.gt.f32.partialorder %v2708_v63, 0.0  ;;  %v2716_v13 = vmul.f32 %v2715_v14, %v2708_v63  ;;  %v3398_v45 = vpop.f32.mrb[75].mxu1 }
0x4427   :  { %v2717_v4 = vsel %vm2714_vm9, %v2708_v63, %v2716_v13 }
0x4428   :  { %v2718_v0 = vadd.f32 %v2717_v4, %v2636_v50 }
0x442a   :  { %v2719_v33 = vmul.f32 %v2718_v0, %v4398_v5 }
0x442c   :  { %2725 = vrot.lane.b32.xlu1 %v2719_v33, %s3673_s23  ;;  %2723 = vrot.lane.b32.xlu0 %v2719_v33, %s3674_s24 }
0x4430   :  { %2729 = vrot.lane.b32.xlu1 %v2719_v33, %s3675_s7  ;;  %2727 = vrot.lane.b32.xlu0 %v2719_v33, %s3676_s5 }
0x4434   :  { %2733 = vrot.lane.b32.xlu1 %v2719_v33, %s3677_s18  ;;  %2731 = vrot.lane.b32.xlu0 %v2719_v33, %s3678_s25 }
0x4438   :  { %2737 = vrot.lane.b32.xlu1 %v2719_v33, %s3679_s8  ;;  %2735 = vrot.lane.b32.xlu0 %v2719_v33, %s3680_s26 }
0x443c   :  { %2746 = vperm.xlu0 %3445, %v2950_v54  }
0x449e   :  { %v2726_v6 = vpop.permute.xlu1 %2725  ;;  %v2724_v19 = vpop.permute.xlu0 %2723 }
0x449f   :  { %v2739_v35 = vpack.c.bf16 %v2726_v6, %v2724_v19 }
0x44a1   :  { %3400 = vmatpush3.bf16.msra.mxu0 %v2739_v35 }
0x44a2   :  { %v2730_v7 = vpop.permute.xlu1 %2729  ;;  %v2728_v9 = vpop.permute.xlu0 %2727  ;;  %3401 = vmatprep.subr.bf16.mxu0 %v3667_v10 }
0x44a3   :  { %v2740_v12 = vpack.c.bf16 %v2730_v7, %v2728_v9 }
0x44a5   :  { %3402 = vmatpush3.bf16.msra.mxu0 %v2740_v12 }
0x44a6   :  { %v2734_v27 = vpop.permute.xlu1 %2733  ;;  %v2732_v55 = vpop.permute.xlu0 %2731  ;;  %3403 = vmatprep.subr.bf16.mxu0 %v3667_v10 }
0x44a7   :  { %v2741_v15 = vpack.c.bf16 %v2732_v55, %v2719_v33 }
0x44a9   :  { %3404 = vmatpush3.bf16.msra.mxu0 %v2741_v15 }
0x44aa   :  { %v2738_v28 = vpop.permute.xlu1 %2737  ;;  %v2736_v47 = vpop.permute.xlu0 %2735  ;;  %3405 = vmatprep.subr.bf16.mxu0 %v3667_v10 }
0x44ab   :  { %v2742_v21 = vpack.c.bf16 %v2736_v47, %v2734_v27  ;;  %v2743_v26 = vpack.c.bf16 %v2738_v28, %v2738_v28 }
0x44ad   :  { %3406 = vmatpush3.bf16.msra.mxu0 %v2742_v21  ;;  %v2753_v40 = vsel %vm93_vm0, %v2743_v26, 0 }
0x44ae   :  { %3407 = vmatprep.subr.bf16.mxu0 %v3667_v10 }
0x44b1   :  { %3408 = vmatpush3.bf16.msra.mxu0 %v2753_v40 }
0x44b4   :  { %3410 = vmatmul.mubr.msk.bf16.vlgmr.msra.gmra.mrb[72].mxu0 %vm2419_vm5, %v2720_v31 }
0x44bb   :  { %v2747_v20 = vpop.permute.xlu0 %2746 }
0x4587   :  { %v2789_v17 = vpop.f32.mrb[72].mxu0 }
0x4588   :  { %v2790_v32 = vadd.f32 %v2789_v17, %v2747_v20  ;;  %v3411_v34 = vpop.f32.mrb[73].mxu0 }
0x4589   :  { %v2792_v39 = vpop.f32.mrb[74].mxu0 }
0x458a   :  { %v2795_v10 = vmul.f32 %v2790_v32, %v4398_v5  ;;  %v3412_v41 = vpop.f32.mrb[75].mxu0 }
0x458c   :  { %v2796_v43 = vmul.f32 1.442695, %v2795_v10  ;;  %v2799_v42 = vmul.f32 0.5, %v2795_v10  ;;  %v2805_v2 = vrot.slane %v2795_v10, 1  ;;  %v2821_v30 = vrot.slane %v2795_v10, 7 }
0x458e   :  { %3650 = vpow2.f32 %v2796_v43  ;;  %v2807_v46 = vadd.f32 %v2805_v2, %v2795_v10  ;;  %v2803_v48 = vadd.f32 %v2801_v44, %v2799_v42 }
0x4590   :  { %v2808_v49 = vmul.f32 0.5, %v2807_v46  ;;  %v2819_v37 = vrot.slane %v2803_v48, 1 }
0x4592   :  { %v2809_v29 = vadd.f32 %v2808_v49, %v2798_v38 }
0x4594   :  { %v2829_v24 = vsel %vm2828_vm10, %v2819_v37, %v2809_v29 }
0x4595   :  { %v2831_v59 = vsel %vm2830_vm11, %v2829_v24, %v2821_v30 }
0x4596   :  { %v2833_v16 = vsel %vm2832_vm12, %v2831_v59, %v2821_v30 }
0x4598   :  { %v3651_v50 = vpop.eup %3650 }
0x4599   :  { %v2810_v51 = vmul.f32 %v3651_v50, %v3651_v50  ;;  %v2812_v52 = vrot.slane %v3651_v50, 6  ;;  %v2815_v36 = vrot.slane %v3651_v50, 7 }
0x459b   :  { %v2814_v5 = vmul.f32 %v2812_v52, %v2795_v10  ;;  %v2824_v53 = vrot.slane %v2810_v51, 7  ;;  %v2826_v18 = vrot.slane %v2810_v51, 6 }
0x459d   :  { %v2817_v56 = vmul.f32 %v2815_v36, %v2814_v5  ;;  %v2834_v25 = vsel %vm93_vm0, %v2833_v16, %v2824_v53 }
0x459f   :  { %v2836_v57 = vsel %vm2835_vm13, %v2834_v25, %v2817_v56 }
0x45a0   :  { %v2838_v58 = vsel %vm2837_vm14, %v2836_v57, %v2826_v18 }
0x45a1   :  { %v2840_v60 = vsel %vm2839_vm15, %v2838_v58, 0.0 }
0x45a2   :  { %2841 = vst [vmem:[%s4514_s16] sm:$0xff] %v2840_v60 }
0x45a3   :  { %2846 = vsyncpa [#allocation3], 1 }

</bundles_post_ra>
